<compile_context>
chip_gen: v5e
topology: v5e:2x2
jax: 0.10.0
libtpu: 0.0.40
codegen_flags: <defaults>
</compile_context>

<pallas_src>
import numpy as np
import jax
import jax.numpy as jnp
from jax import lax
from jax.experimental import pallas as pl
from jax.experimental.pallas import tpu as pltpu


def _write_padded(pad_ref, interior):
    """Write `interior` into the center of `pad_ref` and zero the 1-px halo.

    Only the halo is zeroed (4 thin stores), never the full scratch; the
    interior is fully overwritten every grid step.  Done every step (cheap) so
    correctness does not depend on which core ran grid step 0.
    """
    Hp, Wp, C = pad_ref.shape
    H, W = Hp - 2, Wp - 2
    dt = pad_ref.dtype
    pad_ref[0:1, :, :] = jnp.zeros((1, Wp, C), dt)            # top halo row
    pad_ref[H + 1:H + 2, :, :] = jnp.zeros((1, Wp, C), dt)    # bottom halo row
    pad_ref[1:H + 1, 0:1, :] = jnp.zeros((H, 1, C), dt)       # left halo col
    pad_ref[1:H + 1, W + 1:W + 2, :] = jnp.zeros((H, 1, C), dt)  # right halo col
    pad_ref[1:H + 1, 1:W + 1, :] = interior.astype(dt)


def _im2col_3x3(pad_ref, H, W, C, K):
    """Build the (H*W, K*K*C) im2col matrix from a halo-padded VMEM scratch."""
    taps = [pad_ref[kh:kh + H, kw:kw + W, :]
            for kh in range(K) for kw in range(K)]
    # Concat on the lane axis first, then a single (H, W, KKC) -> (HW, KKC)
    # reshape (one relayout instead of nine).
    return jnp.concatenate(taps, axis=-1).reshape(H * W, K * K * C)


def res_channel_att_kernel(x_ref, w1_ref, b1_ref, w2_ref, b2_ref,
                           wd_ref, bd_ref, wu_ref, bu_ref,
                           out_ref, xpad_ref, ypad_ref):
    # x_ref   : (1, H, W, C)       unpadded input tile (one batch element)
    # w1/w2   : (9*C, C)           3x3 conv weights, pre-reshaped host-side (HWIO order)
    # b1/b2   : (1, C)
    # wd/bd   : (C, C//r), (1, C//r)   1x1 "down" conv as matmul
    # wu/bu   : (C//r, C), (1, C)      1x1 "up"   conv as matmul
    # out_ref : (1, H, W, C)
    # xpad_ref, ypad_ref : (H+2, W+2, C) VMEM scratch (halo-padded staging)
    _, H, W, C = out_ref.shape
    HW = H * W
    K = 3
    cdt = xpad_ref.dtype  # compute dtype for the MXU operands

    x_in = x_ref[0]                                              # (H, W, C), f32

    # ---- conv1 (3x3, same padding) + bias + ReLU : one im2col matmul ----
    _write_padded(xpad_ref, x_in)
    pmat1 = _im2col_3x3(xpad_ref, H, W, C, K)                    # (HW, 9C), cdt
    acc1 = jnp.dot(pmat1, w1_ref[...],
                   preferred_element_type=jnp.float32)           # (HW, C), f32
    y = jnp.maximum(acc1 + b1_ref[...], 0.0)

    # ---- conv2 (3x3, same padding) + bias : one im2col matmul ----
    _write_padded(ypad_ref, y.reshape(H, W, C))
    pmat2 = _im2col_3x3(ypad_ref, H, W, C, K)                    # (HW, 9C), cdt
    z = jnp.dot(pmat2, w2_ref[...],
                preferred_element_type=jnp.float32) + b2_ref[...]  # (HW, C), f32

    # ---- channel attention: GAP -> 1x1 -> ReLU -> 1x1 -> sigmoid ----
    pooled = jnp.mean(z, axis=0, keepdims=True)                  # (1, C)
    hmid = jnp.maximum(
        jnp.dot(pooled, wd_ref[...], preferred_element_type=jnp.float32)
        + bd_ref[...], 0.0)                                      # (1, C//r)
    s = jax.nn.sigmoid(
        jnp.dot(hmid, wu_ref[...], preferred_element_type=jnp.float32)
        + bu_ref[...])                                           # (1, C)

    # ---- gate + residual ----
    res = (z * s).reshape(H, W, C)                               # broadcast over HW
    out_ref[0] = (res + x_in).astype(out_ref.dtype)


def res_channel_att_block(x_nhwc, params, compute_dtype=jnp.float32):
    """x_nhwc: (B, H, W, C) float32. Returns (B, H, W, C)."""
    w1, b1, w2, b2, wd, bd, wu, bu = params
    B, H, W, C = x_nhwc.shape
    Hp, Wp = H + 2, W + 2
    K = w1.shape[0]

    # Host-side weight reshape (free): (K, K, Cin, Cout) -> (K*K*Cin, Cout),
    # matching the im2col column order [tap(kh,kw) major, ci minor].
    w1r = jnp.asarray(w1).reshape(K * K * C, C).astype(compute_dtype)
    w2r = jnp.asarray(w2).reshape(K * K * C, C).astype(compute_dtype)

    def replicated(shape):
        nd = len(shape)
        return pl.BlockSpec(shape, lambda b, nd=nd: (0,) * nd)

    return pl.pallas_call(
        res_channel_att_kernel,
        out_shape=jax.ShapeDtypeStruct((B, H, W, C), x_nhwc.dtype),
        grid_spec=pltpu.PrefetchScalarGridSpec(
            num_scalar_prefetch=0,
            grid=(B,),
            in_specs=[
                pl.BlockSpec((1, H, W, C), lambda b: (b, 0, 0, 0)),
                replicated(w1r.shape), replicated(b1.shape),
                replicated(w2r.shape), replicated(b2.shape),
                replicated(wd.shape), replicated(bd.shape),
                replicated(wu.shape), replicated(bu.shape),
            ],
            out_specs=pl.BlockSpec((1, H, W, C), lambda b: (b, 0, 0, 0)),
            scratch_shapes=[
                pltpu.VMEM((Hp, Wp, C), compute_dtype),   # padded x staging
                pltpu.VMEM((Hp, Wp, C), compute_dtype),   # padded ReLU staging
            ],
        ),
        compiler_params=pltpu.CompilerParams(
            # Batch elements are independent -> let v7x megacore split them.
            dimension_semantics=("parallel",)),
    )(x_nhwc, w1r, b1, w2r, b2, wd, bd, wu, bu)


def ref_forward(x, w1, b1, w2, b2, wd, bd, wu, bu):
    """Plain-JAX reference (NHWC) mirroring the PyTorch forward."""
    dn = ('NHWC', 'HWIO', 'NHWC')
    y = lax.conv_general_dilated(x, w1, (1, 1), 'SAME', dimension_numbers=dn)
    y = jnp.maximum(y + b1.reshape(1, 1, 1, -1), 0.0)
    z = lax.conv_general_dilated(y, w2, (1, 1), 'SAME', dimension_numbers=dn)
    z = z + b2.reshape(1, 1, 1, -1)
    pooled = jnp.mean(z, axis=(1, 2))                            # AdaptiveAvgPool2d(1)
    h = jnp.maximum(pooled @ wd + bd.reshape(-1), 0.0)
    s = jax.nn.sigmoid(h @ wu + bu.reshape(-1))
    return z * s[:, None, None, :] + x


if __name__ == "__main__":
    # n_feats=16, reduction=4, kernel_size=3, batch=2, spatial=12
    B, C, H, W = 2, 16, 12, 12
    reduction = 4
    Cr = C // reduction

    key = jax.random.PRNGKey(0)
    keys = jax.random.split(key, 9)
    # PyTorch module takes NCHW; generate in NCHW and transpose for the kernel.
    x_nchw = jax.random.normal(keys[0], (B, C, H, W), jnp.float32)
    # Deterministic synthetic weights (HWIO for 3x3 convs, (in,out) for 1x1 convs).
    w1 = jax.random.normal(keys[1], (3, 3, C, C), jnp.float32) * 0.1
    b1 = jax.random.normal(keys[2], (1, C), jnp.float32) * 0.1
    w2 = jax.random.normal(keys[3], (3, 3, C, C), jnp.float32) * 0.1
    b2 = jax.random.normal(keys[4], (1, C), jnp.float32) * 0.1
    wd = jax.random.normal(keys[5], (C, Cr), jnp.float32) * 0.1
    bd = jax.random.normal(keys[6], (1, Cr), jnp.float32) * 0.1
    wu = jax.random.normal(keys[7], (Cr, C), jnp.float32) * 0.1
    bu = jax.random.normal(keys[8], (1, C), jnp.float32) * 0.1

    x_nhwc = jnp.transpose(x_nchw, (0, 2, 3, 1))
    params = (w1, b1, w2, b2, wd, bd, wu, bu)

    out = res_channel_att_block(x_nhwc, params, compute_dtype=jnp.float32)
    out = jax.block_until_ready(out)

    ref = ref_forward(x_nhwc, *params)
    np.testing.assert_allclose(np.asarray(out), np.asarray(ref),
                               rtol=2e-4, atol=2e-4)
    print("KERNEL_OK")
</pallas_src>

<mosaic_0001>
module attributes {stable_mosaic.version = 11 : i64} {
  func.func @res_channel_att_kernel(%arg0: i32, %arg1: memref<1x12x12x16xf32, #tpu.memory_space<vmem>>, %arg2: memref<144x16xf32, #tpu.memory_space<vmem>>, %arg3: memref<1x16xf32, #tpu.memory_space<vmem>>, %arg4: memref<144x16xf32, #tpu.memory_space<vmem>>, %arg5: memref<1x16xf32, #tpu.memory_space<vmem>>, %arg6: memref<16x4xf32, #tpu.memory_space<vmem>>, %arg7: memref<1x4xf32, #tpu.memory_space<vmem>>, %arg8: memref<4x16xf32, #tpu.memory_space<vmem>>, %arg9: memref<1x16xf32, #tpu.memory_space<vmem>>, %arg10: memref<1x12x12x16xf32, #tpu.memory_space<vmem>>, %arg11: memref<14x14x16xf32, #tpu.memory_space<vmem>>, %arg12: memref<14x14x16xf32, #tpu.memory_space<vmem>>) attributes {dimension_semantics = [#tpu.dimension_semantics<parallel>], iteration_bounds = array<i64: 2>, scalar_prefetch = 0 : i64, scratch_operands = 2 : i64, tpu.core_type = #tpu.core_type<tc>, window_params = [{transform_indices = @transform_0, window_bounds = array<i64: 1, 12, 12, 16>}, {pipeline_mode = #tpu.pipeline_mode<synchronous>, transform_indices = @transform_1, window_bounds = array<i64: 144, 16>}, {pipeline_mode = #tpu.pipeline_mode<synchronous>, transform_indices = @transform_2, window_bounds = array<i64: 1, 16>}, {pipeline_mode = #tpu.pipeline_mode<synchronous>, transform_indices = @transform_3, window_bounds = array<i64: 144, 16>}, {pipeline_mode = #tpu.pipeline_mode<synchronous>, transform_indices = @transform_4, window_bounds = array<i64: 1, 16>}, {pipeline_mode = #tpu.pipeline_mode<synchronous>, transform_indices = @transform_5, window_bounds = array<i64: 16, 4>}, {pipeline_mode = #tpu.pipeline_mode<synchronous>, transform_indices = @transform_6, window_bounds = array<i64: 1, 4>}, {pipeline_mode = #tpu.pipeline_mode<synchronous>, transform_indices = @transform_7, window_bounds = array<i64: 4, 16>}, {pipeline_mode = #tpu.pipeline_mode<synchronous>, transform_indices = @transform_8, window_bounds = array<i64: 1, 16>}, {transform_indices = @transform_9, window_bounds = array<i64: 1, 12, 12, 16>}]} {
    %c0 = arith.constant 0 : index
    %c0_0 = arith.constant 0 : index
    %c0_1 = arith.constant 0 : index
    %c0_2 = arith.constant 0 : index
    %0 = vector.load %arg1[%c0, %c0_0, %c0_1, %c0_2] : memref<1x12x12x16xf32, #tpu.memory_space<vmem>>, vector<1x12x12x16xf32>
    %1 = vector.shape_cast %0 : vector<1x12x12x16xf32> to vector<12x12x16xf32>
    %cst = arith.constant 0.000000e+00 : f32
    %2 = vector.broadcast %cst : f32 to vector<1x14x16xf32>
    %c0_3 = arith.constant 0 : index
    %c0_4 = arith.constant 0 : index
    %c0_5 = arith.constant 0 : index
    %3 = vector.load %arg11[%c0_3, %c0_4, %c0_5] : memref<14x14x16xf32, #tpu.memory_space<vmem>>, vector<1x14x16xf32>
    tpu.vector_store %arg11[%c0_3, %c0_4, %c0_5], %2 {strides = array<i32>} : memref<14x14x16xf32, #tpu.memory_space<vmem>>, vector<1x14x16xf32>,
    %cst_6 = arith.constant 0.000000e+00 : f32
    %4 = vector.broadcast %cst_6 : f32 to vector<1x14x16xf32>
    %c13 = arith.constant 13 : index
    %c0_7 = arith.constant 0 : index
    %c0_8 = arith.constant 0 : index
    %5 = vector.load %arg11[%c13, %c0_7, %c0_8] : memref<14x14x16xf32, #tpu.memory_space<vmem>>, vector<1x14x16xf32>
    tpu.vector_store %arg11[%c13, %c0_7, %c0_8], %4 {strides = array<i32>} : memref<14x14x16xf32, #tpu.memory_space<vmem>>, vector<1x14x16xf32>,
    %cst_9 = arith.constant 0.000000e+00 : f32
    %6 = vector.broadcast %cst_9 : f32 to vector<12x1x16xf32>
    %c1 = arith.constant 1 : index
    %c0_10 = arith.constant 0 : index
    %c0_11 = arith.constant 0 : index
    %7 = vector.load %arg11[%c1, %c0_10, %c0_11] : memref<14x14x16xf32, #tpu.memory_space<vmem>>, vector<12x1x16xf32>
    tpu.vector_store %arg11[%c1, %c0_10, %c0_11], %6 {strides = array<i32>} : memref<14x14x16xf32, #tpu.memory_space<vmem>>, vector<12x1x16xf32>,
    %cst_12 = arith.constant 0.000000e+00 : f32
    %8 = vector.broadcast %cst_12 : f32 to vector<12x1x16xf32>
    %c1_13 = arith.constant 1 : index
    %c13_14 = arith.constant 13 : index
    %c0_15 = arith.constant 0 : index
    %9 = vector.load %arg11[%c1_13, %c13_14, %c0_15] : memref<14x14x16xf32, #tpu.memory_space<vmem>>, vector<12x1x16xf32>
    tpu.vector_store %arg11[%c1_13, %c13_14, %c0_15], %8 {strides = array<i32>} : memref<14x14x16xf32, #tpu.memory_space<vmem>>, vector<12x1x16xf32>,
    %c1_16 = arith.constant 1 : index
    %c1_17 = arith.constant 1 : index
    %c0_18 = arith.constant 0 : index
    %10 = vector.load %arg11[%c1_16, %c1_17, %c0_18] : memref<14x14x16xf32, #tpu.memory_space<vmem>>, vector<12x12x16xf32>
    tpu.vector_store %arg11[%c1_16, %c1_17, %c0_18], %1 {strides = array<i32>} : memref<14x14x16xf32, #tpu.memory_space<vmem>>, vector<12x12x16xf32>,
    %c0_19 = arith.constant 0 : index
    %c0_20 = arith.constant 0 : index
    %c0_21 = arith.constant 0 : index
    %11 = vector.load %arg11[%c0_19, %c0_20, %c0_21] : memref<14x14x16xf32, #tpu.memory_space<vmem>>, vector<12x12x16xf32>
    %c0_22 = arith.constant 0 : index
    %c1_23 = arith.constant 1 : index
    %c0_24 = arith.constant 0 : index
    %12 = vector.load %arg11[%c0_22, %c1_23, %c0_24] : memref<14x14x16xf32, #tpu.memory_space<vmem>>, vector<12x12x16xf32>
    %c0_25 = arith.constant 0 : index
    %c2 = arith.constant 2 : index
    %c0_26 = arith.constant 0 : index
    %13 = vector.load %arg11[%c0_25, %c2, %c0_26] : memref<14x14x16xf32, #tpu.memory_space<vmem>>, vector<12x12x16xf32>
    %c1_27 = arith.constant 1 : index
    %c0_28 = arith.constant 0 : index
    %c0_29 = arith.constant 0 : index
    %14 = vector.load %arg11[%c1_27, %c0_28, %c0_29] : memref<14x14x16xf32, #tpu.memory_space<vmem>>, vector<12x12x16xf32>
    %c1_30 = arith.constant 1 : index
    %c1_31 = arith.constant 1 : index
    %c0_32 = arith.constant 0 : index
    %15 = vector.load %arg11[%c1_30, %c1_31, %c0_32] : memref<14x14x16xf32, #tpu.memory_space<vmem>>, vector<12x12x16xf32>
    %c1_33 = arith.constant 1 : index
    %c2_34 = arith.constant 2 : index
    %c0_35 = arith.constant 0 : index
    %16 = vector.load %arg11[%c1_33, %c2_34, %c0_35] : memref<14x14x16xf32, #tpu.memory_space<vmem>>, vector<12x12x16xf32>
    %c2_36 = arith.constant 2 : index
    %c0_37 = arith.constant 0 : index
    %c0_38 = arith.constant 0 : index
    %17 = vector.load %arg11[%c2_36, %c0_37, %c0_38] : memref<14x14x16xf32, #tpu.memory_space<vmem>>, vector<12x12x16xf32>
    %c2_39 = arith.constant 2 : index
    %c1_40 = arith.constant 1 : index
    %c0_41 = arith.constant 0 : index
    %18 = vector.load %arg11[%c2_39, %c1_40, %c0_41] : memref<14x14x16xf32, #tpu.memory_space<vmem>>, vector<12x12x16xf32>
    %c2_42 = arith.constant 2 : index
    %c2_43 = arith.constant 2 : index
    %c0_44 = arith.constant 0 : index
    %19 = vector.load %arg11[%c2_42, %c2_43, %c0_44] : memref<14x14x16xf32, #tpu.memory_space<vmem>>, vector<12x12x16xf32>
    %20 = tpu.concatenate %11, %12, %13, %14, %15, %16, %17, %18, %19 in 2 : vector<12x12x16xf32>, vector<12x12x16xf32>, vector<12x12x16xf32>, vector<12x12x16xf32>, vector<12x12x16xf32>, vector<12x12x16xf32>, vector<12x12x16xf32>, vector<12x12x16xf32>, vector<12x12x16xf32> -> vector<12x12x144xf32>
    %21 = vector.shape_cast %20 : vector<12x12x144xf32> to vector<144x144xf32>
    %c0_45 = arith.constant 0 : index
    %c0_46 = arith.constant 0 : index
    %22 = vector.load %arg2[%c0_45, %c0_46] : memref<144x16xf32, #tpu.memory_space<vmem>>, vector<144x16xf32>
    %cst_47 = arith.constant dense<0.000000e+00> : vector<144x16xf32>
    %23 = tpu.matmul %21, %22, %cst_47 {dimension_numbers = #tpu.dot_dimension_numbers<[1], [0], [0], [1], [0, 0, 1, 1], [], []>} : vector<144x144xf32>, vector<144x16xf32>, vector<144x16xf32> -> vector<144x16xf32>
    %c0_48 = arith.constant 0 : index
    %c0_49 = arith.constant 0 : index
    %24 = vector.load %arg3[%c0_48, %c0_49] : memref<1x16xf32, #tpu.memory_space<vmem>>, vector<1x16xf32>
    %25 = vector.broadcast %24 : vector<1x16xf32> to vector<144x16xf32>
    %26 = arith.addf %23, %25 : vector<144x16xf32>
    %cst_50 = arith.constant 0.000000e+00 : f32
    %27 = vector.broadcast %cst_50 : f32 to vector<144x16xf32>
    %28 = arith.maximumf %26, %27 : vector<144x16xf32>
    %29 = vector.shape_cast %28 : vector<144x16xf32> to vector<12x12x16xf32>
    %cst_51 = arith.constant 0.000000e+00 : f32
    %30 = vector.broadcast %cst_51 : f32 to vector<1x14x16xf32>
    %c0_52 = arith.constant 0 : index
    %c0_53 = arith.constant 0 : index
    %c0_54 = arith.constant 0 : index
    %31 = vector.load %arg12[%c0_52, %c0_53, %c0_54] : memref<14x14x16xf32, #tpu.memory_space<vmem>>, vector<1x14x16xf32>
    tpu.vector_store %arg12[%c0_52, %c0_53, %c0_54], %30 {strides = array<i32>} : memref<14x14x16xf32, #tpu.memory_space<vmem>>, vector<1x14x16xf32>,
    %cst_55 = arith.constant 0.000000e+00 : f32
    %32 = vector.broadcast %cst_55 : f32 to vector<1x14x16xf32>
    %c13_56 = arith.constant 13 : index
    %c0_57 = arith.constant 0 : index
    %c0_58 = arith.constant 0 : index
    %33 = vector.load %arg12[%c13_56, %c0_57, %c0_58] : memref<14x14x16xf32, #tpu.memory_space<vmem>>, vector<1x14x16xf32>
    tpu.vector_store %arg12[%c13_56, %c0_57, %c0_58], %32 {strides = array<i32>} : memref<14x14x16xf32, #tpu.memory_space<vmem>>, vector<1x14x16xf32>,
    %cst_59 = arith.constant 0.000000e+00 : f32
    %34 = vector.broadcast %cst_59 : f32 to vector<12x1x16xf32>
    %c1_60 = arith.constant 1 : index
    %c0_61 = arith.constant 0 : index
    %c0_62 = arith.constant 0 : index
    %35 = vector.load %arg12[%c1_60, %c0_61, %c0_62] : memref<14x14x16xf32, #tpu.memory_space<vmem>>, vector<12x1x16xf32>
    tpu.vector_store %arg12[%c1_60, %c0_61, %c0_62], %34 {strides = array<i32>} : memref<14x14x16xf32, #tpu.memory_space<vmem>>, vector<12x1x16xf32>,
    %cst_63 = arith.constant 0.000000e+00 : f32
    %36 = vector.broadcast %cst_63 : f32 to vector<12x1x16xf32>
    %c1_64 = arith.constant 1 : index
    %c13_65 = arith.constant 13 : index
    %c0_66 = arith.constant 0 : index
    %37 = vector.load %arg12[%c1_64, %c13_65, %c0_66] : memref<14x14x16xf32, #tpu.memory_space<vmem>>, vector<12x1x16xf32>
    tpu.vector_store %arg12[%c1_64, %c13_65, %c0_66], %36 {strides = array<i32>} : memref<14x14x16xf32, #tpu.memory_space<vmem>>, vector<12x1x16xf32>,
    %c1_67 = arith.constant 1 : index
    %c1_68 = arith.constant 1 : index
    %c0_69 = arith.constant 0 : index
    %38 = vector.load %arg12[%c1_67, %c1_68, %c0_69] : memref<14x14x16xf32, #tpu.memory_space<vmem>>, vector<12x12x16xf32>
    tpu.vector_store %arg12[%c1_67, %c1_68, %c0_69], %29 {strides = array<i32>} : memref<14x14x16xf32, #tpu.memory_space<vmem>>, vector<12x12x16xf32>,
    %c0_70 = arith.constant 0 : index
    %c0_71 = arith.constant 0 : index
    %c0_72 = arith.constant 0 : index
    %39 = vector.load %arg12[%c0_70, %c0_71, %c0_72] : memref<14x14x16xf32, #tpu.memory_space<vmem>>, vector<12x12x16xf32>
    %c0_73 = arith.constant 0 : index
    %c1_74 = arith.constant 1 : index
    %c0_75 = arith.constant 0 : index
    %40 = vector.load %arg12[%c0_73, %c1_74, %c0_75] : memref<14x14x16xf32, #tpu.memory_space<vmem>>, vector<12x12x16xf32>
    %c0_76 = arith.constant 0 : index
    %c2_77 = arith.constant 2 : index
    %c0_78 = arith.constant 0 : index
    %41 = vector.load %arg12[%c0_76, %c2_77, %c0_78] : memref<14x14x16xf32, #tpu.memory_space<vmem>>, vector<12x12x16xf32>
    %c1_79 = arith.constant 1 : index
    %c0_80 = arith.constant 0 : index
    %c0_81 = arith.constant 0 : index
    %42 = vector.load %arg12[%c1_79, %c0_80, %c0_81] : memref<14x14x16xf32, #tpu.memory_space<vmem>>, vector<12x12x16xf32>
    %c1_82 = arith.constant 1 : index
    %c1_83 = arith.constant 1 : index
    %c0_84 = arith.constant 0 : index
    %43 = vector.load %arg12[%c1_82, %c1_83, %c0_84] : memref<14x14x16xf32, #tpu.memory_space<vmem>>, vector<12x12x16xf32>
    %c1_85 = arith.constant 1 : index
    %c2_86 = arith.constant 2 : index
    %c0_87 = arith.constant 0 : index
    %44 = vector.load %arg12[%c1_85, %c2_86, %c0_87] : memref<14x14x16xf32, #tpu.memory_space<vmem>>, vector<12x12x16xf32>
    %c2_88 = arith.constant 2 : index
    %c0_89 = arith.constant 0 : index
    %c0_90 = arith.constant 0 : index
    %45 = vector.load %arg12[%c2_88, %c0_89, %c0_90] : memref<14x14x16xf32, #tpu.memory_space<vmem>>, vector<12x12x16xf32>
    %c2_91 = arith.constant 2 : index
    %c1_92 = arith.constant 1 : index
    %c0_93 = arith.constant 0 : index
    %46 = vector.load %arg12[%c2_91, %c1_92, %c0_93] : memref<14x14x16xf32, #tpu.memory_space<vmem>>, vector<12x12x16xf32>
    %c2_94 = arith.constant 2 : index
    %c2_95 = arith.constant 2 : index
    %c0_96 = arith.constant 0 : index
    %47 = vector.load %arg12[%c2_94, %c2_95, %c0_96] : memref<14x14x16xf32, #tpu.memory_space<vmem>>, vector<12x12x16xf32>
    %48 = tpu.concatenate %39, %40, %41, %42, %43, %44, %45, %46, %47 in 2 : vector<12x12x16xf32>, vector<12x12x16xf32>, vector<12x12x16xf32>, vector<12x12x16xf32>, vector<12x12x16xf32>, vector<12x12x16xf32>, vector<12x12x16xf32>, vector<12x12x16xf32>, vector<12x12x16xf32> -> vector<12x12x144xf32>
    %49 = vector.shape_cast %48 : vector<12x12x144xf32> to vector<144x144xf32>
    %c0_97 = arith.constant 0 : index
    %c0_98 = arith.constant 0 : index
    %50 = vector.load %arg4[%c0_97, %c0_98] : memref<144x16xf32, #tpu.memory_space<vmem>>, vector<144x16xf32>
    %cst_99 = arith.constant dense<0.000000e+00> : vector<144x16xf32>
    %51 = tpu.matmul %49, %50, %cst_99 {dimension_numbers = #tpu.dot_dimension_numbers<[1], [0], [0], [1], [0, 0, 1, 1], [], []>} : vector<144x144xf32>, vector<144x16xf32>, vector<144x16xf32> -> vector<144x16xf32>
    %c0_100 = arith.constant 0 : index
    %c0_101 = arith.constant 0 : index
    %52 = vector.load %arg5[%c0_100, %c0_101] : memref<1x16xf32, #tpu.memory_space<vmem>>, vector<1x16xf32>
    %53 = vector.broadcast %52 : vector<1x16xf32> to vector<144x16xf32>
    %54 = arith.addf %51, %53 : vector<144x16xf32>
    %cst_102 = arith.constant dense<0.000000e+00> : vector<16xf32>
    %55 = vector.multi_reduction <add>, %54, %cst_102 [0] : vector<144x16xf32> to vector<16xf32>
    %56 = vector.shape_cast %55 : vector<16xf32> to vector<1x16xf32>
    %cst_103 = arith.constant 1.440000e+02 : f32
    %57 = vector.broadcast %cst_103 : f32 to vector<1x16xf32>
    %58 = arith.divf %56, %57 : vector<1x16xf32>
    %c0_104 = arith.constant 0 : index
    %c0_105 = arith.constant 0 : index
    %59 = vector.load %arg6[%c0_104, %c0_105] : memref<16x4xf32, #tpu.memory_space<vmem>>, vector<16x4xf32>
    %cst_106 = arith.constant dense<0.000000e+00> : vector<1x4xf32>
    %60 = tpu.matmul %58, %59, %cst_106 {dimension_numbers = #tpu.dot_dimension_numbers<[1], [0], [0], [1], [0, 0, 1, 1], [], []>} : vector<1x16xf32>, vector<16x4xf32>, vector<1x4xf32> -> vector<1x4xf32>
    %c0_107 = arith.constant 0 : index
    %c0_108 = arith.constant 0 : index
    %61 = vector.load %arg7[%c0_107, %c0_108] : memref<1x4xf32, #tpu.memory_space<vmem>>, vector<1x4xf32>
    %62 = arith.addf %60, %61 : vector<1x4xf32>
    %cst_109 = arith.constant 0.000000e+00 : f32
    %63 = vector.broadcast %cst_109 : f32 to vector<1x4xf32>
    %64 = arith.maximumf %62, %63 : vector<1x4xf32>
    %c0_110 = arith.constant 0 : index
    %c0_111 = arith.constant 0 : index
    %65 = vector.load %arg8[%c0_110, %c0_111] : memref<4x16xf32, #tpu.memory_space<vmem>>, vector<4x16xf32>
    %cst_112 = arith.constant dense<0.000000e+00> : vector<1x16xf32>
    %66 = tpu.matmul %64, %65, %cst_112 {dimension_numbers = #tpu.dot_dimension_numbers<[1], [0], [0], [1], [0, 0, 1, 1], [], []>} : vector<1x4xf32>, vector<4x16xf32>, vector<1x16xf32> -> vector<1x16xf32>
    %c0_113 = arith.constant 0 : index
    %c0_114 = arith.constant 0 : index
    %67 = vector.load %arg9[%c0_113, %c0_114] : memref<1x16xf32, #tpu.memory_space<vmem>>, vector<1x16xf32>
    %68 = arith.addf %66, %67 : vector<1x16xf32>
    %69 = arith.negf %68 : vector<1x16xf32>
    %70 = math.exp %69 : vector<1x16xf32>
    %cst_115 = arith.constant 1.000000e+00 : f32
    %71 = vector.broadcast %cst_115 : f32 to vector<1x16xf32>
    %72 = arith.addf %71, %70 : vector<1x16xf32>
    %73 = arith.divf %71, %72 : vector<1x16xf32>
    %74 = vector.broadcast %73 : vector<1x16xf32> to vector<144x16xf32>
    %75 = arith.mulf %54, %74 : vector<144x16xf32>
    %76 = vector.shape_cast %75 : vector<144x16xf32> to vector<12x12x16xf32>
    %77 = arith.addf %76, %1 : vector<12x12x16xf32>
    %c0_116 = arith.constant 0 : index
    %c0_117 = arith.constant 0 : index
    %c0_118 = arith.constant 0 : index
    %c0_119 = arith.constant 0 : index
    %78 = vector.load %arg10[%c0_116, %c0_117, %c0_118, %c0_119] : memref<1x12x12x16xf32, #tpu.memory_space<vmem>>, vector<1x12x12x16xf32>
    %79 = vector.shape_cast %78 : vector<1x12x12x16xf32> to vector<12x12x16xf32>
    %80 = vector.shape_cast %77 : vector<12x12x16xf32> to vector<1x12x12x16xf32>
    tpu.vector_store %arg10[%c0_116, %c0_117, %c0_118, %c0_119], %80 {strides = array<i32>} : memref<1x12x12x16xf32, #tpu.memory_space<vmem>>, vector<1x12x12x16xf32>,
    return
  }
  func.func @transform_0(%arg0: i32) -> (i32, i32, i32, i32) {
    %c0_i32 = arith.constant 0 : i32
    %c0_i32_0 = arith.constant 0 : i32
    %c0_i32_1 = arith.constant 0 : i32
    %c0_i32_2 = arith.constant 0 : i32
    return %arg0, %c0_i32, %c0_i32_0, %c0_i32_1 : i32, i32, i32, i32
  }
  func.func @transform_1(%arg0: i32) -> (i32, i32) {
    %c0_i32 = arith.constant 0 : i32
    %c0_i32_0 = arith.constant 0 : i32
    %c0_i32_1 = arith.constant 0 : i32
    return %c0_i32, %c0_i32_0 : i32, i32
  }
  func.func @transform_2(%arg0: i32) -> (i32, i32) {
    %c0_i32 = arith.constant 0 : i32
    %c0_i32_0 = arith.constant 0 : i32
    %c0_i32_1 = arith.constant 0 : i32
    return %c0_i32, %c0_i32_0 : i32, i32
  }
  func.func @transform_3(%arg0: i32) -> (i32, i32) {
    %c0_i32 = arith.constant 0 : i32
    %c0_i32_0 = arith.constant 0 : i32
    %c0_i32_1 = arith.constant 0 : i32
    return %c0_i32, %c0_i32_0 : i32, i32
  }
  func.func @transform_4(%arg0: i32) -> (i32, i32) {
    %c0_i32 = arith.constant 0 : i32
    %c0_i32_0 = arith.constant 0 : i32
    %c0_i32_1 = arith.constant 0 : i32
    return %c0_i32, %c0_i32_0 : i32, i32
  }
  func.func @transform_5(%arg0: i32) -> (i32, i32) {
    %c0_i32 = arith.constant 0 : i32
    %c0_i32_0 = arith.constant 0 : i32
    %c0_i32_1 = arith.constant 0 : i32
    return %c0_i32, %c0_i32_0 : i32, i32
  }
  func.func @transform_6(%arg0: i32) -> (i32, i32) {
    %c0_i32 = arith.constant 0 : i32
    %c0_i32_0 = arith.constant 0 : i32
    %c0_i32_1 = arith.constant 0 : i32
    return %c0_i32, %c0_i32_0 : i32, i32
  }
  func.func @transform_7(%arg0: i32) -> (i32, i32) {
    %c0_i32 = arith.constant 0 : i32
    %c0_i32_0 = arith.constant 0 : i32
    %c0_i32_1 = arith.constant 0 : i32
    return %c0_i32, %c0_i32_0 : i32, i32
  }
  func.func @transform_8(%arg0: i32) -> (i32, i32) {
    %c0_i32 = arith.constant 0 : i32
    %c0_i32_0 = arith.constant 0 : i32
    %c0_i32_1 = arith.constant 0 : i32
    return %c0_i32, %c0_i32_0 : i32, i32
  }
  func.func @transform_9(%arg0: i32) -> (i32, i32, i32, i32) {
    %c0_i32 = arith.constant 0 : i32
    %c0_i32_0 = arith.constant 0 : i32
    %c0_i32_1 = arith.constant 0 : i32
    %c0_i32_2 = arith.constant 0 : i32
    return %arg0, %c0_i32, %c0_i32_0, %c0_i32_1 : i32, i32, i32, i32
  }
}

</mosaic_0001>

<bundles_post_ra>
// kernel: tpu_custom_call.1
= control target key start
LH: loop header
LB: loop body
LE: loop exit
PB: predicated region body
PF: predicated region fallthrough
CT: control target
= control target key end

     0   :  { %s4184_s30 = smov 0   ;;  %s6150_s0 = inlined_call_operand.vmem [shape: f32[2,12,12,16], index: 0, kind: input, shape index: {}]   ;;  %s6151_s1 = inlined_call_operand.vmem [shape: f32[144,16], index: 1, kind: input, shape index: {}]   ;;  %s6152_s2 = inlined_call_operand.vmem [shape: f32[1,16], index: 2, kind: input, shape index: {}]   ;;  %s6153_s3 = inlined_call_operand.vmem [shape: f32[144,16], index: 3, kind: input, shape index: {}]   ;;  %s6154_s4 = inlined_call_operand.vmem [shape: f32[1,16], index: 4, kind: input, shape index: {}]   ;;  %s6155_s5 = inlined_call_operand.vmem [shape: f32[16,4], index: 5, kind: input, shape index: {}]   ;;  %s6156_s6 = inlined_call_operand.vmem [shape: f32[1,4], index: 6, kind: input, shape index: {}]   ;;  %s6157_s7 = inlined_call_operand.vmem [shape: f32[4,16], index: 7, kind: input, shape index: {}]   ;;  %s6158_s8 = inlined_call_operand.vmem [shape: f32[1,16], index: 8, kind: input, shape index: {}]   ;;  %s6159_s9 = inlined_call_operand.vmem [shape: f32[2,12,12,16], index: 9, kind: output, shape index: {}]  }
   0x1 LB: > { %s4040_s10 = sadd.s32 4294967295, %s4123_s30   ;;  %p4044_p0 = scmp.ge.s32.totalorder %s4123_s30, 1  ;;  %s4123_s30 = sphi %s4184_s30, %s19_s30  }
   0x2   : > { %p287_p1 = scmp.lt.s32.totalorder %s4123_s30, 3 }
   0x4   : > { %p288_p2 = pnand %p4044_p0, %p287_p1 }
   0x5   : > { %p323_p3 = scmp.lt.s32.totalorder (!%p288_p2), %s4040_s10, 1  ;;  %s4126_s15 = smov (!%p288_p2), 16  }
   0x6   : > { %291 = sbr.rel (%p288_p2) target bundleno = 1693 (0x69d), region = 56  ;;  %s4127_s16 = smov (!%p288_p2), 32  }
   0x7   : > { %s4128_s17 = smov (!%p288_p2), 48   ;;  %s4129_s18 = smov (!%p288_p2), 80  }
   0x8   : > { %s4130_s19 = smov (!%p288_p2), 96   ;;  %s4131_s20 = smov (!%p288_p2), 64  }
   0x9   : > { %s4132_s21 = smov (!%p288_p2), 112  }
   0xb   : > { %vm357_vm0 = vcmask 130048   ;;  %vm359_vm1 = vcmask 128000   ;;  %v4125_v0 = vmov 0.0   ;;  %s6161_s10 = smov (!%p323_p3, %s4040_s10), 1  ;;  %vm391_vm2 = vcmask 125952   ;;  %v1614_v57 = vld [vmem:[%s6151_s1 + $0x78] sm:$0xff] }
   0xc   : > { %358 = vst.msk [vmem:[#allocation2] sm:$0xff] %vm357_vm0, %v4125_v0  ;;  %s4089_s11 = smul.u32 192, %s6161_s10  ;;  %vm365_vm3 = vcmask 122880   ;;  %1754 = vmatpush.msra.mxu0 %v1614_v57  ;;  %v1613_v62 = vld [vmem:[%s6151_s1 + $0x70] sm:$0xff]  ;;  %v1600_v57 = vld [vmem:[%s6151_s1 + $0x8] sm:$0xff]  ;;  %vm1328_vm4 = vcmask 261120  }
   0xd   : > { %360 = vst.msk [vmem:[#allocation2 + $0x8] sm:$0x3f] %vm359_vm1, %v4125_v0  ;;  %vm1353_vm5 = vcmask 392192   ;;  %vm1378_vm6 = vcmask 523264   ;;  %vm1403_vm7 = vcmask 654336   ;;  %vm1428_vm8 = vcmask 785408  }
   0xe   : > { %362 = vst.msk [vmem:[#allocation2 + $0xd0] sm:$0xff] %vm357_vm0, %v4125_v0  ;;  %s4212_s14 = scalar_lea.vmem %s6150_s0, %s4089_s11  ;;  %1755 = vmatpush.msra.mxu0 %v1613_v62  ;;  %v1599_v62 = vld [vmem:[%s6151_s1] sm:$0xff]  ;;  %vm1453_vm9 = vcmask 916480   ;;  %vm1550_vm10 = vcmask 1043456   ;;  %vm3645_vm12 = vcmask 31744   ;;  %s6053_s22 = scalar_lea.vmem %s6159_s9, %s4089_s11 }
   0xf   : > { %363 = vst.msk [vmem:[#allocation2 + $0xd8] sm:$0x3f] %vm359_vm1, %v4125_v0  ;;  %v4217_v1 = vld [vmem:[%s4212_s14] sm:$0xff]  ;;  %v4220_v2 = vld [vmem:[%s4212_s14 + $0x8] sm:$0xf]  ;;  %v4241_v7 = vld [vmem:[%s4212_s14 + $0x10] sm:$0xff] }
  0x10   : > { %1950 = vst.msk [vmem:[#allocation3] sm:$0xff] %vm357_vm0, %v4125_v0  ;;  %v4225_v3 = vld [vmem:[%s4212_s14 + $0x20] sm:$0xff]  ;;  %v4230_v5 = vld [vmem:[%s4212_s14 + $0x28] sm:$0xf]  ;;  %v4236_v6 = vld [vmem:[%s4212_s14 + $0x38] sm:$0xf] }
  0x11   : > { %1951 = vst.msk [vmem:[#allocation3 + $0x8] sm:$0x3f] %vm359_vm1, %v4125_v0  ;;  %v4246_v8 = vld [vmem:[%s4212_s14 + $0x40] sm:$0xff]  ;;  %v4251_v9 = vld [vmem:[%s4212_s14 + $0x50] sm:$0xff]  ;;  %v4256_v10 = vld [vmem:[%s4212_s14 + $0x18] sm:$0xf] }
  0x12   : > { %1953 = vst.msk [vmem:[#allocation3 + $0xd0] sm:$0xff] %vm357_vm0, %v4125_v0  ;;  %v4261_v12 = vld [vmem:[%s4212_s14 + $0x58] sm:$0xf]  ;;  %v4268_v14 = vld [vmem:[%s4212_s14 + $0x30] sm:$0xff]  ;;  %v4405_v30 = vld [vmem:[%s4212_s14 + $0x48] sm:$0xf] }
  0x13   : > { %1954 = vst.msk [vmem:[#allocation3 + $0xd8] sm:$0x3f] %vm359_vm1, %v4125_v0  ;;  %v4413_v31 = vld [vmem:[%s4212_s14 + $0x60] sm:$0xff] }
  0x14   : > { %v439_v4 = vld [vmem:[#allocation2 + $0x1] sm:$0xff]  ;;  %390 = vst.msk [vmem:[#allocation2 + $0x11] sm:$0xff] %vm357_vm0, %v4217_v1  ;;  %v440_v11 = vld [vmem:[#allocation2 + $0x9] sm:$0xf] }
  0x15   : > { %656 = vrot.lane.b32.xlu0 %v439_v4, %s4126_s15  ;;  %392 = vst.msk [vmem:[#allocation2 + $0x19] sm:$0xf] %vm391_vm2, %v4220_v2  ;;  %v463_v25 = vld [vmem:[#allocation2 + $0x2] sm:$0xff]  ;;  %v464_v29 = vld [vmem:[#allocation2 + $0xa] sm:$0xf]  ;;  %v1611_v4 = vld [vmem:[%s6151_s1 + $0x60] sm:$0xff] }
  0x16   : > { %395 = vst.msk [vmem:[#allocation2 + $0x31] sm:$0xff] %vm357_vm0, %v4225_v3 }
  0x17   : > { %396 = vst.msk [vmem:[#allocation2 + $0x39] sm:$0xf] %vm391_vm2, %v4230_v5 }
  0x18   : > { %398 = vst.msk [vmem:[#allocation2 + $0x49] sm:$0xf] %vm391_vm2, %v4236_v6 }
  0x19   : > { %393 = vst.msk [vmem:[#allocation2 + $0x21] sm:$0xff] %vm357_vm0, %v4241_v7 }
  0x1a   : > { %399 = vst.msk [vmem:[#allocation2 + $0x51] sm:$0xff] %vm357_vm0, %v4246_v8 }
  0x1b   : > { %v4263_v13 = vld [vmem:[#allocation2 + $0x11] sm:$0xff]  ;;  %401 = vst.msk [vmem:[#allocation2 + $0x61] sm:$0xff] %vm357_vm0, %v4251_v9 }
  0x1c   : > { %660 = vrot.lane.b32.xlu1 %v4263_v13, %s4126_s15  ;;  %394 = vst.msk [vmem:[#allocation2 + $0x29] sm:$0xf] %vm391_vm2, %v4256_v10  ;;  %v442_v16 = vld [vmem:[#allocation2 + $0x19] sm:$0xf] }
  0x1d   : > { %658 = vrot.lane.b32.xlu0 %v440_v11, %s4126_s15  ;;  %402 = vst.msk [vmem:[#allocation2 + $0x69] sm:$0xf] %vm391_vm2, %v4261_v12  ;;  %v4289_v17 = vld [vmem:[#allocation2 + $0x31] sm:$0xff]  ;;  %v512_v33 = vld [vmem:[#allocation2 + $0x19] sm:$0xf] }
  0x1e   : > { %397 = vst.msk [vmem:[#allocation2 + $0x41] sm:$0xff] %vm357_vm0, %v4268_v14  ;;  %v446_v19 = vld [vmem:[#allocation2 + $0x39] sm:$0xf] }
  0x1f   : > { %366 = vst.msk [vmem:[#allocation2 + $0x10] sm:$0x1] %vm365_vm3, %v4125_v0  ;;  %v448_v20 = vld [vmem:[#allocation2 + $0x49] sm:$0xf]  ;;  %v535_v27 = vld [vmem:[#allocation2 + $0x12] sm:$0xff] }
  0x20   : > { %v4281_v15 = vld [vmem:[#allocation2 + $0x21] sm:$0xff]  ;;  %367 = vst.msk [vmem:[#allocation2 + $0x20] sm:$0x1] %vm365_vm3, %v4125_v0  ;;  %v488_v42 = vld [vmem:[#allocation2 + $0x18] sm:$0xf] }
  0x21   : > { %664 = vrot.lane.b32.xlu2 %v4281_v15, %s4126_s15  ;;  %368 = vst.msk [vmem:[#allocation2 + $0x30] sm:$0x1] %vm365_vm3, %v4125_v0  ;;  %v4329_v22 = vld [vmem:[#allocation2 + $0x51] sm:$0xff]  ;;  %v516_v55 = vld [vmem:[#allocation2 + $0x39] sm:$0xf] }
  0x22   : > { %369 = vst.msk [vmem:[#allocation2 + $0x40] sm:$0x1] %vm365_vm3, %v4125_v0  ;;  %v4335_v23 = vld [vmem:[#allocation2 + $0x61] sm:$0xff]  ;;  %v563_v43 = vld [vmem:[#allocation2 + $0x38] sm:$0xf] }
  0x23   : > { %370 = vst.msk [vmem:[#allocation2 + $0x50] sm:$0x1] %vm365_vm3, %v4125_v0  ;;  %v444_v18 = vld [vmem:[#allocation2 + $0x29] sm:$0xf]  ;;  %v4453_v44 = vld [vmem:[#allocation2 + $0x32] sm:$0xff] }
  0x24   : > { %662 = vrot.lane.b32.xlu1 %v442_v16, %s4126_s15  ;;  %371 = vst.msk [vmem:[#allocation2 + $0x60] sm:$0x1] %vm365_vm3, %v4125_v0  ;;  %v452_v24 = vld [vmem:[#allocation2 + $0x69] sm:$0xf]  ;;  %v587_v58 = vld [vmem:[#allocation2 + $0x39] sm:$0xf] }
  0x25   : > { %668 = vrot.lane.b32.xlu0 %v4289_v17, %s4126_s15  ;;  %372 = vst.msk [vmem:[#allocation2 + $0x70] sm:$0x1] %vm365_vm3, %v4125_v0  ;;  %v4321_v21 = vld [vmem:[#allocation2 + $0x41] sm:$0xff]  ;;  %v585_v38 = vld [vmem:[#allocation2 + $0x29] sm:$0xf] }
  0x26   : > { %373 = vst.msk [vmem:[#allocation2 + $0x80] sm:$0x1] %vm365_vm3, %v4125_v0  ;;  %v4373_v26 = vld [vmem:[#allocation2 + $0x10] sm:$0xff]  ;;  %v4431_v36 = vld [vmem:[#allocation2 + $0x22] sm:$0xff] }
  0x27   : > { %374 = vst.msk [vmem:[#allocation2 + $0x90] sm:$0x1] %vm365_vm3, %v4125_v0  ;;  %v4396_v28 = vld [vmem:[#allocation2 + $0x20] sm:$0xff]  ;;  %v490_v40 = vld [vmem:[#allocation2 + $0x28] sm:$0xf] }
  0x28   : > { %375 = vst.msk [vmem:[#allocation2 + $0xa0] sm:$0x1] %vm365_vm3, %v4125_v0  ;;  %v4433_v37 = vld [vmem:[#allocation2 + $0x30] sm:$0xff]  ;;  %v561_v45 = vld [vmem:[#allocation2 + $0x28] sm:$0xf] }
  0x29   : > { %666 = vrot.lane.b32.xlu2 %v444_v18, %s4126_s15  ;;  %376 = vst.msk [vmem:[#allocation2 + $0xb0] sm:$0x1] %vm365_vm3, %v4125_v0  ;;  %v4462_v47 = vld [vmem:[#allocation2 + $0x40] sm:$0xff]  ;;  %v514_v52 = vld [vmem:[#allocation2 + $0x29] sm:$0xf] }
  0x2a   : > { %377 = vst.msk [vmem:[#allocation2 + $0xc0] sm:$0x1] %vm365_vm3, %v4125_v0  ;;  %v4499_v63 = vld [vmem:[#allocation2 + $0x42] sm:$0xff]  ;;  %v4507_v11 = vld [vmem:[#allocation2 + $0x50] sm:$0xff] }
  0x2b   : > { %378 = vst.msk [vmem:[#allocation2 + $0x1d] sm:$0x1] %vm365_vm3, %v4125_v0 }
  0x2c   : > { %670 = vrot.lane.b32.xlu1 %v446_v19, %s4126_s15  ;;  %379 = vst.msk [vmem:[#allocation2 + $0x2d] sm:$0x1] %vm365_vm3, %v4125_v0  ;;  %v1609_v19 = vld [vmem:[%s6151_s1 + $0x50] sm:$0xff] }
  0x2d   : > { %674 = vrot.lane.b32.xlu0 %v448_v20, %s4126_s15  ;;  %380 = vst.msk [vmem:[#allocation2 + $0x3d] sm:$0x1] %vm365_vm3, %v4125_v0  ;;  %v589_v20 = vld [vmem:[#allocation2 + $0x49] sm:$0xf] }
  0x2e   : > { %381 = vst.msk [vmem:[#allocation2 + $0x4d] sm:$0x1] %vm365_vm3, %v4125_v0 }
  0x2f   : > { %382 = vst.msk [vmem:[#allocation2 + $0x5d] sm:$0x1] %vm365_vm3, %v4125_v0 }
  0x30   : > { %383 = vst.msk [vmem:[#allocation2 + $0x6d] sm:$0x1] %vm365_vm3, %v4125_v0 }
  0x31   : > { %672 = vrot.lane.b32.xlu2 %v4321_v21, %s4126_s15  ;;  %384 = vst.msk [vmem:[#allocation2 + $0x7d] sm:$0x1] %vm365_vm3, %v4125_v0 }
  0x32   : > { %385 = vst.msk [vmem:[#allocation2 + $0x8d] sm:$0x1] %vm365_vm3, %v4125_v0  ;;  %v536_v34 = vld [vmem:[#allocation2 + $0x1a] sm:$0xf] }
  0x33   : > { %386 = vst.msk [vmem:[#allocation2 + $0x9d] sm:$0x1] %vm365_vm3, %v4125_v0  ;;  %v466_v39 = vld [vmem:[#allocation2 + $0x1a] sm:$0xf]  ;;  %v538_v41 = vld [vmem:[#allocation2 + $0x2a] sm:$0xf] }
  0x34   : > { %676 = vrot.lane.b32.xlu1 %v4329_v22, %s4126_s15  ;;  %387 = vst.msk [vmem:[#allocation2 + $0xad] sm:$0x1] %vm365_vm3, %v4125_v0  ;;  %v468_v48 = vld [vmem:[#allocation2 + $0x2a] sm:$0xf]  ;;  %v540_v56 = vld [vmem:[#allocation2 + $0x3a] sm:$0xf] }
  0x35   : > { %680 = vrot.lane.b32.xlu0 %v4335_v23, %s4126_s15  ;;  %388 = vst.msk [vmem:[#allocation2 + $0xbd] sm:$0x1] %vm365_vm3, %v4125_v0 }
  0x36   : > { %389 = vst.msk [vmem:[#allocation2 + $0xcd] sm:$0x1] %vm365_vm3, %v4125_v0 }
  0x37   : > { %1956 = vst.msk [vmem:[#allocation3 + $0x10] sm:$0x1] %vm365_vm3, %v4125_v0 }
  0x38   : > { %1957 = vst.msk [vmem:[#allocation3 + $0x20] sm:$0x1] %vm365_vm3, %v4125_v0 }
  0x39   : > { %1958 = vst.msk [vmem:[#allocation3 + $0x30] sm:$0x1] %vm365_vm3, %v4125_v0 }
  0x3a   : > { %1959 = vst.msk [vmem:[#allocation3 + $0x40] sm:$0x1] %vm365_vm3, %v4125_v0 }
  0x3b   : > { %1960 = vst.msk [vmem:[#allocation3 + $0x50] sm:$0x1] %vm365_vm3, %v4125_v0 }
  0x3c   : > { %682 = vrot.lane.b32.xlu1 %v452_v24, %s4126_s15  ;;  %1961 = vst.msk [vmem:[#allocation3 + $0x60] sm:$0x1] %vm365_vm3, %v4125_v0  ;;  %v1608_v24 = vld [vmem:[%s6151_s1 + $0x48] sm:$0xff] }
  0x3d   : > { %752 = vrot.lane.b32.xlu0 %v463_v25, %s4127_s16  ;;  %1962 = vst.msk [vmem:[#allocation3 + $0x70] sm:$0x1] %vm365_vm3, %v4125_v0  ;;  %v1607_v25 = vld [vmem:[%s6151_s1 + $0x40] sm:$0xff] }
  0x3e   : > { %1963 = vst.msk [vmem:[#allocation3 + $0x80] sm:$0x1] %vm365_vm3, %v4125_v0 }
  0x3f   : > { %1964 = vst.msk [vmem:[#allocation3 + $0x90] sm:$0x1] %vm365_vm3, %v4125_v0 }
  0x40   : > { %1965 = vst.msk [vmem:[#allocation3 + $0xa0] sm:$0x1] %vm365_vm3, %v4125_v0 }
  0x41   : > { %1966 = vst.msk [vmem:[#allocation3 + $0xb0] sm:$0x1] %vm365_vm3, %v4125_v0 }
  0x42   : > { %1967 = vst.msk [vmem:[#allocation3 + $0xc0] sm:$0x1] %vm365_vm3, %v4125_v0 }
  0x43   : > { %1968 = vst.msk [vmem:[#allocation3 + $0x1d] sm:$0x1] %vm365_vm3, %v4125_v0 }
  0x44   : > { %848 = vrot.lane.b32.xlu1 %v4373_v26, %s4128_s17  ;;  %1969 = vst.msk [vmem:[#allocation3 + $0x2d] sm:$0x1] %vm365_vm3, %v4125_v0 }
  0x45   : > { %1970 = vst.msk [vmem:[#allocation3 + $0x3d] sm:$0x1] %vm365_vm3, %v4125_v0  ;;  %1040 = vrot.lane.b32.xlu0 %v535_v27, %s4129_s18 }
  0x46   : > { %1971 = vst.msk [vmem:[#allocation3 + $0x4d] sm:$0x1] %vm365_vm3, %v4125_v0 }
  0x47   : > { %1972 = vst.msk [vmem:[#allocation3 + $0x5d] sm:$0x1] %vm365_vm3, %v4125_v0 }
  0x48   : > { %1973 = vst.msk [vmem:[#allocation3 + $0x6d] sm:$0x1] %vm365_vm3, %v4125_v0 }
  0x49   : > { %1974 = vst.msk [vmem:[#allocation3 + $0x7d] sm:$0x1] %vm365_vm3, %v4125_v0 }
  0x4a   : > { %1975 = vst.msk [vmem:[#allocation3 + $0x8d] sm:$0x1] %vm365_vm3, %v4125_v0 }
  0x4b   : > { %1976 = vst.msk [vmem:[#allocation3 + $0x9d] sm:$0x1] %vm365_vm3, %v4125_v0 }
  0x4c   : > { %1977 = vst.msk [vmem:[#allocation3 + $0xad] sm:$0x1] %vm365_vm3, %v4125_v0  ;;  %1136 = vrot.lane.b32.xlu1 %v4396_v28, %s4130_s19 }
  0x4d   : > { %1978 = vst.msk [vmem:[#allocation3 + $0xbd] sm:$0x1] %vm365_vm3, %v4125_v0  ;;  %754 = vrot.lane.b32.xlu0 %v464_v29, %s4127_s16 }
  0x4e   : > { %1979 = vst.msk [vmem:[#allocation3 + $0xcd] sm:$0x1] %vm365_vm3, %v4125_v0  ;;  %v1612_v0 = vld [vmem:[%s6151_s1 + $0x68] sm:$0xff] }
  0x4f   : > { %400 = vst.msk [vmem:[#allocation2 + $0x59] sm:$0xf] %vm391_vm2, %v4405_v30  ;;  %1756 = vmatpush.msra.mxu0 %v1612_v0  ;;  %v1615_v0 = vld [vmem:[%s6151_s1 + $0x80] sm:$0xff] }
  0x50   : > { %403 = vst.msk [vmem:[#allocation2 + $0x71] sm:$0xff] %vm357_vm0, %v4413_v31 }
  0x51   : > { %1757 = vmatpush.msra.mxu0 %v1611_v4  ;;  %v415_v4 = vld [vmem:[#allocation2] sm:$0xff] }
  0x54   : > { %756 = vrot.lane.b32.xlu1 %v535_v27, %s4127_s16  ;;  %v470_v27 = vld [vmem:[#allocation2 + $0x3a] sm:$0xf] }
  0x55   : > { %852 = vrot.lane.b32.xlu0 %v4396_v28, %s4128_s17 }
  0x56   : > { %v450_v32 = vld [vmem:[#allocation2 + $0x59] sm:$0xf] }
  0x57   : > { %678 = vrot.lane.b32.xlu2 %v450_v32, %s4126_s15  ;;  %v4425_v35 = vld [vmem:[#allocation2 + $0x71] sm:$0xff] }
  0x5c   : > { %946 = vrot.lane.b32.xlu1 %v512_v33, %s4131_s20  ;;  %v1605_v33 = vld [vmem:[%s6151_s1 + $0x30] sm:$0xff] }
  0x5d   : > { %1042 = vrot.lane.b32.xlu0 %v536_v34, %s4129_s18 }
  0x5f   : > { %684 = vrot.lane.b32.xlu2 %v4425_v35, %s4126_s15 }
  0x64   : > { %1044 = vrot.lane.b32.xlu1 %v4431_v36, %s4129_s18 }
  0x65   : > { %1140 = vrot.lane.b32.xlu0 %v4433_v37, %s4130_s19 }
  0x67   : > { %944 = vrot.lane.b32.xlu2 %v4263_v13, %s4131_s20  ;;  %v1610_v13 = vld [vmem:[%s6151_s1 + $0x58] sm:$0xff] }
  0x68   : > { %1758 = vmatpush.msra.mxu0 %v1610_v13 }
  0x6a   : > { %1759 = vmatpush.msra.mxu0 %v1609_v19 }
  0x6c   : > { %1234 = vrot.lane.b32.xlu1 %v585_v38, %s4132_s21  ;;  %1760 = vmatpush.msra.mxu0 %v1608_v24  ;;  %v494_v38 = vld [vmem:[#allocation2 + $0x48] sm:$0xf] }
  0x6d   : > { %758 = vrot.lane.b32.xlu0 %v466_v39, %s4127_s16  ;;  %v1604_v39 = vld [vmem:[%s6151_s1 + $0x28] sm:$0xff] }
  0x6e   : > { %1761 = vmatpush.msra.mxu0 %v1607_v25 }
  0x6f   : > { %1232 = vrot.lane.b32.xlu2 %v4281_v15, %s4132_s21 }
  0x74   : > { %854 = vrot.lane.b32.xlu1 %v490_v40, %s4128_s17  ;;  %v542_v40 = vld [vmem:[#allocation2 + $0x4a] sm:$0xf] }
  0x75   : > { %1046 = vrot.lane.b32.xlu0 %v538_v41, %s4129_s18  ;;  %v1603_v41 = vld [vmem:[%s6151_s1 + $0x20] sm:$0xff] }
  0x77   : > { %850 = vrot.lane.b32.xlu2 %v488_v42, %s4128_s17  ;;  %v492_v42 = vld [vmem:[#allocation2 + $0x38] sm:$0xf] }
  0x7b   : > { %v4473_v51 = vpop.permute.xlu2 %664 }
  0x7c   : > { %1142 = vrot.lane.b32.xlu1 %v563_v43, %s4130_s19  ;;  %v1602_v43 = vld [vmem:[%s6151_s1 + $0x18] sm:$0xff] }
  0x7d   : > { %760 = vrot.lane.b32.xlu0 %v4431_v36, %s4127_s16 }
  0x7f   : > { %948 = vrot.lane.b32.xlu2 %v4281_v15, %s4131_s20 }
  0x83   : > { %v4488_v59 = vpop.permute.xlu2 %666 }
  0x84   : > { %856 = vrot.lane.b32.xlu1 %v4433_v37, %s4128_s17 }
  0x85   : > { %1048 = vrot.lane.b32.xlu0 %v4453_v44, %s4129_s18 }
  0x87   : > { %1138 = vrot.lane.b32.xlu2 %v561_v45, %s4130_s19  ;;  %v4460_v46 = vpop.permute.xlu0 %656 }
  0x88   : > { %v1304_v13 = vsel %vm357_vm0, %v415_v4, %v4460_v46 }
  0x8b   : > { %v4520_v16 = vpop.permute.xlu2 %672 }
  0x8c   : > { %1144 = vrot.lane.b32.xlu1 %v4462_v47, %s4130_s19 }
  0x8d   : > { %762 = vrot.lane.b32.xlu0 %v468_v48, %s4127_s16 }
  0x8e   : > { %v4467_v49 = vpop.permute.xlu1 %660 }
  0x8f   : > { %1236 = vrot.lane.b32.xlu2 %v4289_v17, %s4132_s21  ;;  %v4471_v50 = vpop.permute.xlu0 %658 }
  0x94   : > { %764 = vrot.lane.b32.xlu1 %v4453_v44, %s4127_s16 }
  0x95   : > { %860 = vrot.lane.b32.xlu0 %v4462_v47, %s4128_s17 }
  0x96   : > { %v4479_v53 = vpop.permute.xlu1 %662 }
  0x97   : > { %950 = vrot.lane.b32.xlu2 %v514_v52, %s4131_s20  ;;  %v4482_v54 = vpop.permute.xlu0 %668  ;;  %v1601_v52 = vld [vmem:[%s6151_s1 + $0x10] sm:$0xff] }
  0x9c   : > { %954 = vrot.lane.b32.xlu1 %v516_v55, %s4131_s20 }
  0x9d   : > { %1050 = vrot.lane.b32.xlu0 %v540_v56, %s4129_s18  ;;  %v567_v56 = vld [vmem:[#allocation2 + $0x58] sm:$0xf] }
  0x9e   : > { %v4491_v60 = vpop.permute.xlu1 %670 }
  0x9f   : > { %1238 = vrot.lane.b32.xlu2 %v587_v58, %s4132_s21  ;;  %v4494_v61 = vpop.permute.xlu0 %674  ;;  %v1616_v58 = vld [vmem:[%s6151_s1 + $0x88] sm:$0xff] }
  0xa0   : > { %1839 = vmatpush.msra.mxu1 %v1616_v58 }
  0xa2   : > { %1840 = vmatpush.msra.mxu1 %v1615_v0  ;;  %v518_v0 = vld [vmem:[#allocation2 + $0x49] sm:$0xf] }
  0xa4   : > { %1052 = vrot.lane.b32.xlu1 %v4499_v63, %s4129_s18 }
  0xa5   : > { %1148 = vrot.lane.b32.xlu0 %v4507_v11, %s4130_s19 }
  0xa6   : > { %v4516_v15 = vpop.permute.xlu1 %676 }
  0xa7   : > { %952 = vrot.lane.b32.xlu2 %v4289_v17, %s4131_s20  ;;  %v4522_v18 = vpop.permute.xlu0 %680  ;;  %v1606_v17 = vld [vmem:[%s6151_s1 + $0x38] sm:$0xff] }
  0xa8   : > { %1762 = vmatpush.msra.mxu0 %v1606_v17  ;;  %v4585_v17 = vld [vmem:[#allocation2 + $0x52] sm:$0xff] }
  0xaa   : > { %1763 = vmatpush.msra.mxu0 %v1605_v33 }
  0xac   : > { %1242 = vrot.lane.b32.xlu1 %v589_v20, %s4132_s21  ;;  %1764 = vmatpush.msra.mxu0 %v1604_v39 }
  0xad   : > { %766 = vrot.lane.b32.xlu0 %v470_v27, %s4127_s16 }
  0xae   : > { %v4538_v29 = vpop.permute.xlu1 %682  ;;  %1765 = vmatpush.msra.mxu0 %v1603_v41 }
  0xaf   : > { %1240 = vrot.lane.b32.xlu2 %v4321_v21, %s4132_s21  ;;  %v753_v32 = vpop.permute.xlu0 %752 }
  0xb0   : > { %1766 = vmatpush.msra.mxu0 %v1602_v43  ;;  %v1329_v20 = vsel %vm1328_vm4, %v1304_v13, %v753_v32  ;;  %v1526_v32 = vrot.slane %v4431_v36, 4  ;;  %v472_v43 = vld [vmem:[#allocation2 + $0x4a] sm:$0xf] }
  0xb1   : > { %v4545_v34 = vpop.permute.xlu2 %678 }
  0xb2   : > { %1767 = vmatpush.msra.mxu0 %v1601_v52 }
  0xb4   : > { %862 = vrot.lane.b32.xlu1 %v494_v38, %s4128_s17  ;;  %1768 = vmatpush.msra.mxu0 %v1600_v57  ;;  %v565_v38 = vld [vmem:[#allocation2 + $0x48] sm:$0xf] }
  0xb5   : > { %1054 = vrot.lane.b32.xlu0 %v542_v40, %s4129_s18 }
  0xb6   : > { %v849_v45 = vpop.permute.xlu1 %848  ;;  %1769 = vmatpush.msra.mxu0 %v1599_v62  ;;  %v416_v62 = vld [vmem:[#allocation2 + $0x8] sm:$0xf] }
  0xb7   : > { %858 = vrot.lane.b32.xlu2 %v492_v42, %s4128_s17  ;;  %v1041_v48 = vpop.permute.xlu0 %1040  ;;  %v1354_v25 = vsel %vm1353_vm5, %v1329_v20, %v849_v45  ;;  %v4597_v45 = vld [vmem:[#allocation2 + $0x60] sm:$0xff]  ;;  %v1305_v20 = vsel %vm357_vm0, %v416_v62, %v4471_v50 }
  0xb9   : > { %v4562_v55 = vpop.permute.xlu2 %684 }
  0xbc   : > { %1150 = vrot.lane.b32.xlu1 %v567_v56, %s4130_s19 }
  0xbd   : > { %768 = vrot.lane.b32.xlu0 %v4499_v63, %s4127_s16 }
  0xbe   : > { %v1137_v19 = vpop.permute.xlu1 %1136 }
  0xbf   : > { %956 = vrot.lane.b32.xlu2 %v4321_v21, %s4131_s20  ;;  %v755_v24 = vpop.permute.xlu0 %754 }
  0xc1   : > { %v945_v27 = vpop.permute.xlu2 %944 }
  0xc2   : > { %v1379_v33 = vsel %vm1378_vm6, %v1354_v25, %v945_v27  ;;  %v1330_v27 = vsel %vm1328_vm4, %v1305_v20, %v755_v24  ;;  %v1528_v20 = vrot.slane %v4453_v44, 4 }
  0xc3   : > { %v1404_v21 = vsel %vm1403_vm7, %v1379_v33, %v1041_v48 }
  0xc4   : > { %864 = vrot.lane.b32.xlu1 %v4507_v11, %s4128_s17  ;;  %v1429_v39 = vsel %vm1428_vm8, %v1404_v21, %v1137_v19  ;;  %v544_v21 = vld [vmem:[#allocation2 + $0x5a] sm:$0xf] }
  0xc5   : > { %1056 = vrot.lane.b32.xlu0 %v4585_v17, %s4129_s18 }
  0xc6   : > { %v757_v46 = vpop.permute.xlu1 %756 }
  0xc7   : > { %1146 = vrot.lane.b32.xlu2 %v565_v38, %s4130_s19  ;;  %v853_v40 = vpop.permute.xlu0 %852  ;;  %v520_v38 = vld [vmem:[#allocation2 + $0x59] sm:$0xf] }
  0xc9   : > { %v1233_v41 = vpop.permute.xlu2 %1232 }
  0xca   : > { %v1454_v42 = vsel %vm1453_vm9, %v1429_v39, %v1233_v41  ;;  %v1306_v39 = vsel %vm357_vm0, %v4373_v26, %v4467_v49  ;;  %v591_v41 = vld [vmem:[#allocation2 + $0x59] sm:$0xf] }
  0xcb   : > { %v1551_v52 = vsel %vm1550_vm10, %v1454_v42, %v1526_v32  ;;  %v1552_v48 = vsel %vm1550_vm10, %v1526_v32, %v1454_v42  ;;  %v1331_v50 = vsel %vm1328_vm4, %v1306_v39, %v757_v46  ;;  %v418_v39 = vld [vmem:[#allocation2 + $0x18] sm:$0xf] }
  0xcc   : > { %v1553_v56 = vrot.slane %v1552_v48, 4  ;;  %1621 = vst [vmem:[#allocation1] ss:$2 sm:$0xff] %v1551_v52  ;;  %1152 = vrot.lane.b32.xlu1 %v4597_v45, %s4130_s19 }
  0xcd   : > { %770 = vrot.lane.b32.xlu0 %v472_v43, %s4127_s16  ;;  %v609_v43 = vld [vmem:[#allocation2 + $0x2a] sm:$0xf] }
  0xce   : > { %1623 = vst [vmem:[#allocation1 + $0x1] ss:$2 sm:$0xff] %v1553_v56  ;;  %v947_v36 = vpop.permute.xlu1 %946  ;;  %v1356_v56 = vsel %vm1353_vm5, %v1331_v50, %v853_v40  ;;  %v1527_v26 = vrot.slane %v609_v43, 4  ;;  %v4638_v40 = vld [vmem:[%s4212_s14 + $0x68] sm:$0xf] }
  0xcf   : > { %1244 = vrot.lane.b32.xlu2 %v4329_v22, %s4132_s21  ;;  %v1043_v57 = vpop.permute.xlu0 %1042  ;;  %404 = vst.msk [vmem:[#allocation2 + $0x79] sm:$0xf] %vm391_vm2, %v4638_v40 }
  0xd1   : > { %v851_v58 = vpop.permute.xlu2 %850 }
  0xd2   : > { %v1355_v32 = vsel %vm1353_vm5, %v1330_v27, %v851_v58  ;;  %v4626_v58 = vld [vmem:[#allocation2 + $0x62] sm:$0xff] }
  0xd3   : > { %v1380_v42 = vsel %vm1378_vm6, %v1355_v32, %v947_v36  ;;  %v474_v32 = vld [vmem:[#allocation2 + $0x5a] sm:$0xf] }
  0xd4   : > { %772 = vrot.lane.b32.xlu1 %v4585_v17, %s4127_s16  ;;  %v1405_v52 = vsel %vm1403_vm7, %v1380_v42, %v1043_v57 }
  0xd5   : > { %v1636_v4 = vld.sshfl [vmem:[#allocation1] sm:$0xff pattern:$0x75316420]  ;;  %v1637_v13 = vld.sshfl [vmem:[#allocation1 + $0x8] sm:$0xff pattern:$0x75316420]  ;;  %868 = vrot.lane.b32.xlu0 %v4597_v45, %s4128_s17 }
  0xd6   : > { %1770 = vmatmul.f32.vlgmr.msra.gmra.mxu0 %v1636_v4  ;;  %4047 = vmatmul.msk.f32.vlgmr.msra.gmra.mxu1 %vm357_vm0, %v1637_v13  ;;  %v1045_v19 = vpop.permute.xlu1 %1044 }
  0xd7   : > { %958 = vrot.lane.b32.xlu2 %v518_v0, %s4131_s20  ;;  %v1141_v25 = vpop.permute.xlu0 %1140  ;;  %v4631_v0 = vld [vmem:[#allocation2 + $0x70] sm:$0xff] }
  0xd9   : > { %v949_v33 = vpop.permute.xlu2 %948 }
  0xda   : > { %v1381_v46 = vsel %vm1378_vm6, %v1356_v56, %v949_v33  ;;  %v498_v56 = vld [vmem:[#allocation2 + $0x68] sm:$0xf] }
  0xdb   : > { %v1406_v4 = vsel %vm1403_vm7, %v1381_v46, %v1045_v19 }
  0xdc   : > { %962 = vrot.lane.b32.xlu1 %v520_v38, %s4131_s20  ;;  %v1431_v19 = vsel %vm1428_vm8, %v1406_v4, %v1141_v25  ;;  %v593_v38 = vld [vmem:[#allocation2 + $0x69] sm:$0xf] }
  0xdd   : > { %1058 = vrot.lane.b32.xlu0 %v544_v21, %s4129_s18  ;;  %v4662_v4 = vld [vmem:[%s4212_s14 + $0x70] sm:$0xff] }
  0xde   : > { %v1235_v24 = vpop.permute.xlu1 %1234  ;;  %405 = vst.msk [vmem:[#allocation2 + $0x81] sm:$0xff] %vm357_vm0, %v4662_v4 }
  0xdf   : > { %1246 = vrot.lane.b32.xlu2 %v591_v41, %s4132_s21  ;;  %v759_v48 = vpop.permute.xlu0 %758 }
  0xe1   : > { %v1139_v49 = vpop.permute.xlu2 %1138 }
  0xe2   : > { %v1430_v36 = vsel %vm1428_vm8, %v1405_v52, %v1139_v49 }
  0xe3   : > { %v1455_v62 = vsel %vm1453_vm9, %v1430_v36, %v1235_v24 }
  0xe4   : > { %v1554_v13 = vsel %vm1550_vm10, %v1455_v62, %v1527_v26  ;;  %1060 = vrot.lane.b32.xlu1 %v4626_v58, %s4129_s18  ;;  %v546_v26 = vld [vmem:[#allocation2 + $0x6a] sm:$0xf]  ;;  %v496_v62 = vld [vmem:[#allocation2 + $0x58] sm:$0xf] }
  0xe5   : > { %1625 = vst [vmem:[#allocation1 + $0x10] ss:$2 sm:$0xff] %v1554_v13  ;;  %1156 = vrot.lane.b32.xlu0 %v4631_v0, %s4130_s19 }
  0xe6   : > { %v855_v57 = vpop.permute.xlu1 %854 }
  0xe7   : > { %960 = vrot.lane.b32.xlu2 %v4329_v22, %s4131_s20  ;;  %v1047_v27 = vpop.permute.xlu0 %1046  ;;  %v1307_v22 = vsel %vm357_vm0, %v418_v39, %v4479_v53  ;;  %v611_v53 = vld [vmem:[#allocation2 + $0x3a] sm:$0xf] }
  0xe8   : > { %v1332_v25 = vsel %vm1328_vm4, %v1307_v22, %v759_v48 }
  0xe9   : > { %v1237_v33 = vpop.permute.xlu2 %1236  ;;  %v1357_v24 = vsel %vm1353_vm5, %v1332_v25, %v855_v57  ;;  %v1529_v57 = vrot.slane %v611_v53, 4 }
  0xea   : > { %v1456_v21 = vsel %vm1453_vm9, %v1431_v19, %v1237_v33 }
  0xeb   : > { %v1555_v41 = vsel %vm1550_vm10, %v1456_v21, %v1528_v20  ;;  %v1556_v42 = vsel %vm1550_vm10, %v1528_v20, %v1456_v21  ;;  %v571_v21 = vld [vmem:[#allocation2 + $0x78] sm:$0xf] }
  0xec   : > { %v1557_v50 = vrot.slane %v1556_v42, 4  ;;  %1627 = vst [vmem:[#allocation1 + $0x11] ss:$2 sm:$0xff] %v1555_v41  ;;  %1250 = vrot.lane.b32.xlu1 %v593_v38, %s4132_s21 }
  0xed   : > { %774 = vrot.lane.b32.xlu0 %v474_v32, %s4127_s16 }
  0xee   : > { %1629 = vst [vmem:[#allocation1 + $0x20] ss:$2 sm:$0xff] %v1557_v50  ;;  %v1143_v44 = vpop.permute.xlu1 %1142 }
  0xef   : > { %1248 = vrot.lane.b32.xlu2 %v4335_v23, %s4132_s21  ;;  %v761_v43 = vpop.permute.xlu0 %760 }
  0xf1   : > { %v951_v52 = vpop.permute.xlu2 %950 }
  0xf2   : > { %v1382_v46 = vsel %vm1378_vm6, %v1357_v24, %v951_v52 }
  0xf3   : > { %v1638_v49 = vld.sshfl [vmem:[#allocation1 + $0x10] sm:$0xff pattern:$0x75316420]  ;;  %v1639_v36 = vld.sshfl [vmem:[#allocation1 + $0x18] sm:$0xff pattern:$0x75316420]  ;;  %v1407_v48 = vsel %vm1403_vm7, %v1382_v46, %v1047_v27  ;;  %v1308_v27 = vsel %vm357_vm0, %v4396_v28, %v4473_v51 }
  0xf4   : > { %1773 = vmatmul.f32.gmra.mxu0 %v1638_v49  ;;  %4048 = vmatmul.msk.f32.gmra.mxu1 %vm357_vm0, %v1639_v36  ;;  %v1432_v19 = vsel %vm1428_vm8, %v1407_v48, %v1143_v44  ;;  %v1333_v41 = vsel %vm1328_vm4, %v1308_v27, %v761_v43  ;;  %v4683_v44 = vld [vmem:[#allocation2 + $0x72] sm:$0xff]  ;;  %v1530_v51 = vrot.slane %v4499_v63, 4  ;;  %v4696_v46 = vld [vmem:[#allocation2 + $0x80] sm:$0xff] }
  0xf5   : > { %870 = vrot.lane.b32.xlu1 %v498_v56, %s4128_s17  ;;  %1062 = vrot.lane.b32.xlu0 %v546_v26, %s4129_s18  ;;  %v569_v56 = vld [vmem:[#allocation2 + $0x68] sm:$0xf]  ;;  %v4704_v63 = vld [vmem:[%s4212_s14 + $0x78] sm:$0xf] }
  0xf6   : > { %v857_v13 = vpop.permute.xlu1 %856  ;;  %406 = vst.msk [vmem:[#allocation2 + $0x89] sm:$0xf] %vm391_vm2, %v4704_v63 }
  0xf7   : > { %866 = vrot.lane.b32.xlu2 %v496_v62, %s4128_s17  ;;  %v1049_v20 = vpop.permute.xlu0 %1048  ;;  %v1358_v50 = vsel %vm1353_vm5, %v1333_v41, %v857_v13  ;;  %v476_v62 = vld [vmem:[#allocation2 + $0x6a] sm:$0xf] }
  0xf9   : > { %v1239_v33 = vpop.permute.xlu2 %1238 }
  0xfa   : > { %v1457_v38 = vsel %vm1453_vm9, %v1432_v19, %v1239_v33 }
  0xfb   : > { %v1558_v32 = vsel %vm1550_vm10, %v1457_v38, %v1529_v57  ;;  %v4707_v57 = vld [vmem:[%s4212_s14 + $0x80] sm:$0xff]  ;;  %v420_v38 = vld [vmem:[#allocation2 + $0x28] sm:$0xf] }
  0xfc   : > { %1631 = vst [vmem:[#allocation1 + $0x21] ss:$2 sm:$0xff] %v1558_v32  ;;  %v1309_v41 = vsel %vm357_vm0, %v420_v38, %v4488_v59  ;;  %v613_v59 = vld [vmem:[#allocation2 + $0x4a] sm:$0xf] }
  0xfd   : > { %1158 = vrot.lane.b32.xlu1 %v571_v21, %s4130_s19  ;;  %776 = vrot.lane.b32.xlu0 %v4626_v58, %s4127_s16  ;;  %407 = vst.msk [vmem:[#allocation2 + $0x91] sm:$0xff] %vm357_vm0, %v4707_v57  ;;  %v522_v21 = vld [vmem:[#allocation2 + $0x69] sm:$0xf] }
  0xfe   : > { %v1145_v39 = vpop.permute.xlu1 %1144 }
  0xff   : > { %964 = vrot.lane.b32.xlu2 %v4335_v23, %s4131_s20  ;;  %v763_v42 = vpop.permute.xlu0 %762 }
 0x101   : > { %v953_v22 = vpop.permute.xlu2 %952 }
 0x102   : > { %v1383_v52 = vsel %vm1378_vm6, %v1358_v50, %v953_v22  ;;  %v1334_v22 = vsel %vm1328_vm4, %v1309_v41, %v763_v42 }
 0x103   : > { %v1640_v25 = vld.sshfl [vmem:[#allocation1 + $0x20] sm:$0xff pattern:$0x75316420]  ;;  %v1641_v24 = vld.sshfl [vmem:[#allocation1 + $0x28] sm:$0xff pattern:$0x75316420]  ;;  %v1408_v23 = vsel %vm1403_vm7, %v1383_v52, %v1049_v20 }
 0x104   : > { %1776 = vmatmul.f32.gmra.mxu0 %v1640_v25  ;;  %4049 = vmatmul.msk.f32.gmra.mxu1 %vm357_vm0, %v1641_v24  ;;  %v1433_v43 = vsel %vm1428_vm8, %v1408_v23, %v1145_v39  ;;  %v524_v24 = vld [vmem:[#allocation2 + $0x79] sm:$0xf]  ;;  %v1310_v23 = vsel %vm357_vm0, %v4433_v37, %v4482_v54 }
 0x105   : > { %872 = vrot.lane.b32.xlu1 %v4631_v0, %s4128_s17  ;;  %1064 = vrot.lane.b32.xlu0 %v4683_v44, %s4129_s18  ;;  %v548_v52 = vld [vmem:[#allocation2 + $0x7a] sm:$0xf] }
 0x106   : > { %v765_v28 = vpop.permute.xlu1 %764 }
 0x107   : > { %1154 = vrot.lane.b32.xlu2 %v569_v56, %s4130_s19  ;;  %v861_v26 = vpop.permute.xlu0 %860 }
 0x109   : > { %v1241_v49 = vpop.permute.xlu2 %1240 }
 0x10a   : > { %v1458_v36 = vsel %vm1453_vm9, %v1433_v43, %v1241_v49  ;;  %v1335_v49 = vsel %vm1328_vm4, %v1310_v23, %v765_v28  ;;  %v4738_v28 = vld [vmem:[#allocation2 + $0x90] sm:$0xff] }
 0x10b   : > { %v1559_v53 = vsel %vm1550_vm10, %v1458_v36, %v1530_v51  ;;  %v1560_v48 = vsel %vm1550_vm10, %v1530_v51, %v1458_v36  ;;  %v595_v51 = vld [vmem:[#allocation2 + $0x79] sm:$0xf] }
 0x10c   : > { %v1561_v13 = vrot.slane %v1560_v48, 4  ;;  %1633 = vst [vmem:[#allocation1 + $0x30] ss:$2 sm:$0xff] %v1559_v53  ;;  %v1360_v53 = vsel %vm1353_vm5, %v1335_v49, %v861_v26  ;;  %v1531_v48 = vrot.slane %v613_v59, 4 }
 0x10d   : > { %1160 = vrot.lane.b32.xlu1 %v4696_v46, %s4130_s19  ;;  %778 = vrot.lane.b32.xlu0 %v476_v62, %s4127_s16 }
 0x10e   : > { %1635 = vst [vmem:[#allocation1 + $0x31] ss:$2 sm:$0xff] %v1561_v13  ;;  %v955_v19 = vpop.permute.xlu1 %954  ;;  %v4736_v13 = vld [vmem:[#allocation2 + $0x82] sm:$0xff] }
 0x10f   : > { %1252 = vrot.lane.b32.xlu2 %v4425_v35, %s4132_s21  ;;  %v1051_v20 = vpop.permute.xlu0 %1050 }
 0x111   : > { %v859_v33 = vpop.permute.xlu2 %858 }
 0x112   : > { %v1359_v56 = vsel %vm1353_vm5, %v1334_v22, %v859_v33  ;;  %v597_v22 = vld [vmem:[#allocation2 + $0x89] sm:$0xf] }
 0x113   : > { %v1384_v43 = vsel %vm1378_vm6, %v1359_v56, %v955_v19 }
 0x114   : > { %v1409_v36 = vsel %vm1403_vm7, %v1384_v43, %v1051_v20  ;;  %v4756_v43 = vld [vmem:[%s4212_s14 + $0x88] sm:$0xf] }
 0x115   : > { %v1642_v32 = vld.sshfl [vmem:[#allocation1 + $0x30] sm:$0xff pattern:$0x75316420]  ;;  %v1643_v27 = vld.sshfl [vmem:[#allocation1 + $0x38] sm:$0xff pattern:$0x75316420]  ;;  %780 = vrot.lane.b32.xlu1 %v4683_v44, %s4127_s16  ;;  %876 = vrot.lane.b32.xlu0 %v4696_v46, %s4128_s17 }
 0x116   : > { %1779 = vmatmul.f32.gmra.mxu0 %v1642_v32  ;;  %4050 = vmatmul.msk.f32.gmra.mxu1 %vm357_vm0, %v1643_v27  ;;  %v1053_v39 = vpop.permute.xlu1 %1052  ;;  %v1532_v32 = vrot.slane %v4585_v17, 4  ;;  %408 = vst.msk [vmem:[#allocation2 + $0x99] sm:$0xf] %vm391_vm2, %v4756_v43 }
 0x117   : > { %966 = vrot.lane.b32.xlu2 %v522_v21, %s4131_s20  ;;  %v1149_v50 = vpop.permute.xlu0 %1148 }
 0x119   : > { %v957_v25 = vpop.permute.xlu2 %956 }
 0x11a   : > { %v1385_v19 = vsel %vm1378_vm6, %v1360_v53, %v957_v25  ;;  %v454_v25 = vld [vmem:[#allocation2 + $0x79] sm:$0xf]  ;;  %v526_v53 = vld [vmem:[#allocation2 + $0x89] sm:$0xf] }
 0x11b   : > { %v1410_v38 = vsel %vm1403_vm7, %v1385_v19, %v1053_v39  ;;  %v500_v19 = vld [vmem:[#allocation2 + $0x78] sm:$0xf] }
 0x11c   : > { %v1435_v20 = vsel %vm1428_vm8, %v1410_v38, %v1149_v50 }
 0x11d   : > { %970 = vrot.lane.b32.xlu1 %v524_v24, %s4131_s20  ;;  %1066 = vrot.lane.b32.xlu0 %v548_v52, %s4129_s18  ;;  %v422_v24 = vld [vmem:[#allocation2 + $0x38] sm:$0xf] }
 0x11e   : > { %v1243_v42 = vpop.permute.xlu1 %1242 }
 0x11f   : > { %1254 = vrot.lane.b32.xlu2 %v595_v51, %s4132_s21  ;;  %v767_v62 = vpop.permute.xlu0 %766  ;;  %v596_v51 = vld [vmem:[#allocation2 + $0x81] sm:$0xff] }
 0x121   : > { %v1147_v37 = vpop.permute.xlu2 %1146 }
 0x122   : > { %v1434_v54 = vsel %vm1428_vm8, %v1409_v36, %v1147_v37  ;;  %v478_v36 = vld [vmem:[#allocation2 + $0x7a] sm:$0xf] }
 0x123   : > { %v1459_v33 = vsel %vm1453_vm9, %v1434_v54, %v1243_v42 }
 0x124   : > { %v1562_v21 = vsel %vm1550_vm10, %v1459_v33, %v1531_v48 }
 0x125   : > { %1644 = vst [vmem:[#allocation1] ss:$2 sm:$0xff] %v1562_v21  ;;  %1068 = vrot.lane.b32.xlu1 %v4736_v13, %s4129_s18  ;;  %1164 = vrot.lane.b32.xlu0 %v4738_v28, %s4130_s19 }
 0x126   : > { %v863_v26 = vpop.permute.xlu1 %862 }
 0x127   : > { %968 = vrot.lane.b32.xlu2 %v4425_v35, %s4131_s20  ;;  %v1055_v27 = vpop.permute.xlu0 %1054  ;;  %v1311_v35 = vsel %vm357_vm0, %v422_v24, %v4491_v60  ;;  %v615_v60 = vld [vmem:[#allocation2 + $0x5a] sm:$0xf] }
 0x128   : > { %v1336_v50 = vsel %vm1328_vm4, %v1311_v35, %v767_v62  ;;  %v4772_v62 = vld [vmem:[%s4212_s14 + $0x90] sm:$0xff]  ;;  %v1533_v21 = vrot.slane %v615_v60, 4  ;;  %v599_v35 = vld [vmem:[#allocation2 + $0x99] sm:$0xf]  ;;  %v598_v60 = vld [vmem:[#allocation2 + $0x91] sm:$0xff] }
 0x129   : > { %v1245_v39 = vpop.permute.xlu2 %1244  ;;  %v1361_v59 = vsel %vm1353_vm5, %v1336_v50, %v863_v26  ;;  %409 = vst.msk [vmem:[#allocation2 + $0xa1] sm:$0xff] %vm357_vm0, %v4772_v62 }
 0x12a   : > { %v1460_v41 = vsel %vm1453_vm9, %v1435_v20, %v1245_v39 }
 0x12b   : > { %v1563_v52 = vsel %vm1550_vm10, %v1460_v41, %v1532_v32  ;;  %v1564_v56 = vsel %vm1550_vm10, %v1532_v32, %v1460_v41  ;;  %v550_v41 = vld [vmem:[#allocation2 + $0x8a] sm:$0xf] }
 0x12c   : > { %v1565_v23 = vrot.slane %v1564_v56, 4  ;;  %1645 = vst [vmem:[#allocation1 + $0x1] ss:$2 sm:$0xff] %v1563_v52 }
 0x12d   : > { %1258 = vrot.lane.b32.xlu1 %v597_v22, %s4132_s21  ;;  %686 = vrot.lane.b32.xlu0 %v454_v25, %s4126_s15 }
 0x12e   : > { %1646 = vst [vmem:[#allocation1 + $0x10] ss:$2 sm:$0xff] %v1565_v23  ;;  %v1151_v17 = vpop.permute.xlu1 %1150 }
 0x12f   : > { %1256 = vrot.lane.b32.xlu2 %v596_v51, %s4132_s21  ;;  %v769_v49 = vpop.permute.xlu0 %768 }
 0x131   : > { %v959_v42 = vpop.permute.xlu2 %958 }
 0x132   : > { %v1386_v54 = vsel %vm1378_vm6, %v1361_v59, %v959_v42  ;;  %v573_v42 = vld [vmem:[#allocation2 + $0x88] sm:$0xf] }
 0x133   : > { %v1652_v48 = vld.sshfl [vmem:[#allocation1] sm:$0xff pattern:$0x75316420]  ;;  %v1653_v37 = vld.sshfl [vmem:[#allocation1 + $0x8] sm:$0xff pattern:$0x75316420]  ;;  %v1411_v33 = vsel %vm1403_vm7, %v1386_v54, %v1055_v27  ;;  %v1312_v27 = vsel %vm357_vm0, %v4462_v47, %v4520_v16 }
 0x134   : > { %1782 = vmatmul.f32.gmra.mxu0 %v1652_v48  ;;  %4051 = vmatmul.msk.f32.gmra.mxu1 %vm357_vm0, %v1653_v37  ;;  %v1436_v26 = vsel %vm1428_vm8, %v1411_v33, %v1151_v17  ;;  %v1337_v24 = vsel %vm1328_vm4, %v1312_v27, %v769_v49  ;;  %v4799_v37 = vld [vmem:[#allocation2 + $0xa0] sm:$0xff] }
 0x135   : > { %782 = vrot.lane.b32.xlu1 %v478_v36, %s4127_s16  ;;  %974 = vrot.lane.b32.xlu0 %v526_v53, %s4131_s20 }
 0x136   : > { %v865_v38 = vpop.permute.xlu1 %864 }
 0x137   : > { %874 = vrot.lane.b32.xlu2 %v500_v19, %s4128_s17  ;;  %v1057_v20 = vpop.permute.xlu0 %1056  ;;  %v1362_v56 = vsel %vm1353_vm5, %v1337_v24, %v865_v38 }
 0x139   : > { %v1247_v32 = vpop.permute.xlu2 %1246 }
 0x13a   : > { %v1461_v39 = vsel %vm1453_vm9, %v1436_v26, %v1247_v32 }
 0x13b   : > { %v1566_v22 = vsel %vm1550_vm10, %v1461_v39, %v1533_v21  ;;  %v4810_v21 = vld [vmem:[%s6152_s2] ss:$0 sm:$0xff]  ;;  %v424_v39 = vld [vmem:[#allocation2 + $0x48] sm:$0xf] }
 0x13c   : > { %1647 = vst [vmem:[#allocation1 + $0x11] ss:$2 sm:$0xff] %v1566_v22 }
 0x13d   : > { %1070 = vrot.lane.b32.xlu1 %v550_v41, %s4129_s18  ;;  %688 = vrot.lane.b32.xlu0 %v596_v51, %s4126_s15  ;;  %v502_v41 = vld [vmem:[#allocation2 + $0x88] sm:$0xf] }
 0x13e   : > { %v1153_v25 = vpop.permute.xlu1 %1152 }
 0x13f   : > { %972 = vrot.lane.b32.xlu2 %v596_v51, %s4131_s20  ;;  %v771_v52 = vpop.permute.xlu0 %770  ;;  %v1534_v51 = vrot.slane %v4626_v58, 4 }
 0x141   : > { %v961_v23 = vpop.permute.xlu2 %960 }
 0x142   : > { %v1387_v59 = vsel %vm1378_vm6, %v1362_v56, %v961_v23 }
 0x143   : > { %v1654_v17 = vld.sshfl [vmem:[#allocation1 + $0x10] sm:$0xff pattern:$0x75316420]  ;;  %v1655_v50 = vld.sshfl [vmem:[#allocation1 + $0x18] sm:$0xff pattern:$0x75316420]  ;;  %v1412_v47 = vsel %vm1403_vm7, %v1387_v59, %v1057_v20 }
 0x144   : > { %1785 = vmatmul.f32.gmra.mxu0 %v1654_v17  ;;  %4052 = vmatmul.msk.f32.gmra.mxu1 %vm357_vm0, %v1655_v50  ;;  %v1437_v49 = vsel %vm1428_vm8, %v1412_v47, %v1153_v25  ;;  %v4812_v20 = vld [vmem:[#allocation2 + $0xa1] sm:$0xff]  ;;  %v1313_v17 = vsel %vm357_vm0, %v424_v39, %v4494_v61  ;;  %v480_v47 = vld [vmem:[#allocation2 + $0x8a] sm:$0xf] }
 0x145   : > { %1262 = vrot.lane.b32.xlu1 %v599_v35, %s4132_s21  ;;  %880 = vrot.lane.b32.xlu0 %v4738_v28, %s4128_s17  ;;  %v4822_v35 = vld [vmem:[%s4212_s14 + $0x98] sm:$0xf]  ;;  %v1338_v59 = vsel %vm1328_vm4, %v1313_v17, %v771_v52  ;;  %v617_v52 = vld [vmem:[#allocation2 + $0x6a] sm:$0xf]  ;;  %v552_v17 = vld [vmem:[#allocation2 + $0x9a] sm:$0xf] }
 0x146   : > { %v773_v16 = vpop.permute.xlu1 %772  ;;  %410 = vst.msk [vmem:[#allocation2 + $0xa9] sm:$0xf] %vm391_vm2, %v4822_v35 }
 0x147   : > { %1162 = vrot.lane.b32.xlu2 %v573_v42, %s4130_s19  ;;  %v869_v36 = vpop.permute.xlu0 %868 }
 0x149   : > { %v1249_v53 = vpop.permute.xlu2 %1248 }
 0x14a   : > { %v1462_v48 = vsel %vm1453_vm9, %v1437_v49, %v1249_v53  ;;  %v1314_v53 = vsel %vm357_vm0, %v4507_v11, %v4516_v15 }
 0x14b   : > { %v1567_v54 = vsel %vm1550_vm10, %v1462_v48, %v1534_v51  ;;  %v1568_v19 = vsel %vm1550_vm10, %v1534_v51, %v1462_v48  ;;  %v504_v51 = vld [vmem:[#allocation2 + $0x98] sm:$0xf] }
 0x14c   : > { %v1569_v33 = vrot.slane %v1568_v19, 4  ;;  %1648 = vst [vmem:[#allocation1 + $0x20] ss:$2 sm:$0xff] %v1567_v54  ;;  %v575_v48 = vld [vmem:[#allocation2 + $0x98] sm:$0xf]  ;;  %v1339_v19 = vsel %vm1328_vm4, %v1314_v53, %v773_v16 }
 0x14d   : > { %976 = vrot.lane.b32.xlu1 %v598_v60, %s4131_s20  ;;  %1168 = vrot.lane.b32.xlu0 %v4799_v37, %s4130_s19  ;;  %v4836_v54 = vld [vmem:[%s4212_s14 + $0xa0] sm:$0xff] }
 0x14e   : > { %1649 = vst [vmem:[#allocation1 + $0x21] ss:$2 sm:$0xff] %v1569_v33  ;;  %v963_v58 = vpop.permute.xlu1 %962  ;;  %v1364_v33 = vsel %vm1353_vm5, %v1339_v19, %v869_v36  ;;  %v4862_v53 = vld [vmem:[#allocation2 + $0x92] sm:$0xff] }
 0x14f   : > { %1260 = vrot.lane.b32.xlu2 %v598_v60, %s4132_s21  ;;  %v1059_v38 = vpop.permute.xlu0 %1058  ;;  %411 = vst.msk [vmem:[#allocation2 + $0xb1] sm:$0xff] %vm357_vm0, %v4836_v54 }
 0x151   : > { %v867_v26 = vpop.permute.xlu2 %866 }
 0x152   : > { %v1363_v49 = vsel %vm1353_vm5, %v1338_v59, %v867_v26  ;;  %v577_v59 = vld [vmem:[#allocation2 + $0xa8] sm:$0xf] }
 0x153   : > { %v1771_v32 = vpop.f32.mrf.mxu0  ;;  %v1842_v24 = vpop.f32.mrf.mxu1  ;;  %v1388_v61 = vsel %vm1378_vm6, %v1363_v49, %v963_v58  ;;  %v1535_v58 = vrot.slane %v617_v52, 4 }
 0x154   : > { %v1772_v22 = vadd.f32 %v4810_v21, %v1771_v32  ;;  %v1413_v11 = vsel %vm1403_vm7, %v1388_v61, %v1059_v38  ;;  %v1536_v38 = vrot.slane %v4683_v44, 4  ;;  %v4867_v44 = vld [vmem:[%s4212_s14 + $0xa8] sm:$0xf] }
 0x155   : > { %v1656_v27 = vld.sshfl [vmem:[#allocation1 + $0x20] sm:$0xff pattern:$0x75316420]  ;;  %v1657_v25 = vld.sshfl [vmem:[#allocation1 + $0x28] sm:$0xff pattern:$0x75316420]  ;;  %1264 = vrot.lane.b32.xlu1 %v4812_v20, %s4132_s21  ;;  %692 = vrot.lane.b32.xlu0 %v598_v60, %s4126_s15 }
 0x156   : > { %v4818_v56 = vadd.f32 %v1842_v24, %v1772_v22  ;;  %1788 = vmatmul.f32.gmra.mxu0 %v1656_v27  ;;  %4053 = vmatmul.msk.f32.gmra.mxu1 %vm357_vm0, %v1657_v25  ;;  %v1061_v23 = vpop.permute.xlu1 %1060  ;;  %412 = vst.msk [vmem:[#allocation2 + $0xb9] sm:$0xf] %vm391_vm2, %v4867_v44 }
 0x157   : > { %878 = vrot.lane.b32.xlu2 %v502_v41, %s4128_s17  ;;  %v1157_v50 = vpop.permute.xlu0 %1156 }
 0x159   : > { %v965_v42 = vpop.permute.xlu2 %964 }
 0x15a   : > { %v1389_v32 = vsel %vm1378_vm6, %v1364_v33, %v965_v42  ;;  %v426_v42 = vld [vmem:[#allocation2 + $0x58] sm:$0xf] }
 0x15b   : > { %v1414_v41 = vsel %vm1403_vm7, %v1389_v32, %v1061_v23  ;;  %v4879_v33 = vld [vmem:[#allocation2 + $0xb1] sm:$0xff] }
 0x15c   : > { %v1439_v36 = vsel %vm1428_vm8, %v1414_v41, %v1157_v50  ;;  %v1315_v50 = vsel %vm357_vm0, %v426_v42, %v4545_v34 }
 0x15d   : > { %786 = vrot.lane.b32.xlu1 %v480_v47, %s4127_s16  ;;  %882 = vrot.lane.b32.xlu0 %v504_v51, %s4128_s17 }
 0x15e   : > { %v1251_v60 = vpop.permute.xlu1 %1250 }
 0x15f   : > { %1166 = vrot.lane.b32.xlu2 %v575_v48, %s4130_s19  ;;  %v775_v15 = vpop.permute.xlu0 %774 }
 0x160   : > { %v1340_v48 = vsel %vm1328_vm4, %v1315_v50, %v775_v15  ;;  %v619_v15 = vld [vmem:[#allocation2 + $0x7a] sm:$0xf]  ;;  %v530_v50 = vld [vmem:[#allocation2 + $0xa9] sm:$0xf] }
 0x161   : > { %v1155_v26 = vpop.permute.xlu2 %1154 }
 0x162   : > { %v1438_v16 = vsel %vm1428_vm8, %v1413_v11, %v1155_v26  ;;  %v4877_v11 = vld [vmem:[#allocation2 + $0xb0] sm:$0xff] }
 0x163   : > { %v1463_v39 = vsel %vm1453_vm9, %v1438_v16, %v1251_v60  ;;  %v456_v16 = vld [vmem:[#allocation2 + $0x89] sm:$0xf] }
 0x164   : > { %v1570_v22 = vsel %vm1550_vm10, %v1463_v39, %v1535_v58  ;;  %v1537_v39 = vrot.slane %v619_v15, 4 }
 0x165   : > { %1650 = vst [vmem:[#allocation1 + $0x30] ss:$2 sm:$0xff] %v1570_v22  ;;  %884 = vrot.lane.b32.xlu1 %v4799_v37, %s4128_s17  ;;  %980 = vrot.lane.b32.xlu0 %v4812_v20, %s4131_s20 }
 0x167   : > { %784 = vrot.lane.b32.xlu2 %v4736_v13, %s4127_s16  ;;  %v871_v27 = vpop.permute.xlu1 %870  ;;  %v1063_v25 = vpop.permute.xlu0 %1062 }
 0x168   : > { %v1365_v52 = vsel %vm1353_vm5, %v1340_v48, %v871_v27  ;;  %v579_v48 = vld [vmem:[#allocation2 + $0xb8] sm:$0xf] }
 0x169   : > { %v1253_v24 = vpop.permute.xlu2 %1252 }
 0x16a   : > { %v1464_v23 = vsel %vm1453_vm9, %v1439_v36, %v1253_v24  ;;  %v458_v24 = vld [vmem:[#allocation2 + $0x99] sm:$0xf] }
 0x16b   : > { %v1571_v47 = vsel %vm1550_vm10, %v1464_v23, %v1536_v38  ;;  %v1572_v51 = vsel %vm1550_vm10, %v1536_v38, %v1464_v23  ;;  %v506_v23 = vld [vmem:[#allocation2 + $0xa8] sm:$0xf] }
 0x16c   : > { %v1573_v49 = vrot.slane %v1572_v51, 4  ;;  %1651 = vst [vmem:[#allocation1 + $0x31] ss:$2 sm:$0xff] %v1571_v47 }
 0x16d   : > { %1074 = vrot.lane.b32.xlu1 %v552_v17, %s4129_s18  ;;  %1170 = vrot.lane.b32.xlu0 %v577_v59, %s4130_s19 }
 0x16e   : > { %1660 = vst [vmem:[#allocation1] ss:$2 sm:$0xff] %v1573_v49 }
 0x16f   : > { %1072 = vrot.lane.b32.xlu2 %v4862_v53, %s4129_s18  ;;  %v1159_v61 = vpop.permute.xlu1 %1158  ;;  %v777_v19 = vpop.permute.xlu0 %776 }
 0x171   : > { %v967_v60 = vpop.permute.xlu2 %966 }
 0x172   : > { %v1390_v26 = vsel %vm1378_vm6, %v1365_v52, %v967_v60 }
 0x173   : > { %v1658_v58 = vld.sshfl [vmem:[#allocation1 + $0x30] sm:$0xff pattern:$0x75316420]  ;;  %v1659_v34 = vld.sshfl [vmem:[#allocation1 + $0x38] sm:$0xff pattern:$0x75316420]  ;;  %v1415_v32 = vsel %vm1403_vm7, %v1390_v26, %v1063_v25  ;;  %v1316_v25 = vsel %vm357_vm0, %v4597_v45, %v4522_v18 }
 0x174   : > { %1791 = vmatmul.f32.gmra.mxu0 %v1658_v58  ;;  %4054 = vmatmul.msk.f32.gmra.mxu1 %vm357_vm0, %v1659_v34  ;;  %v1440_v41 = vsel %vm1428_vm8, %v1415_v32, %v1159_v61  ;;  %v1341_v59 = vsel %vm1328_vm4, %v1316_v25, %v777_v19  ;;  %v4901_v61 = vpop.f32.mrf.mxu0  ;;  %v528_v18 = vld [vmem:[#allocation2 + $0x99] sm:$0xf]  ;;  %v4906_v45 = vld [vmem:[%s4212_s14 + $0xb0] sm:$0xff]  ;;  %v4908_v19 = vpop.f32.mrf.mxu1  ;;  %v1538_v26 = vrot.slane %v4736_v13, 4 }
 0x175   : > { %1172 = vrot.lane.b32.xlu1 %v4877_v11, %s4130_s19  ;;  %1268 = vrot.lane.b32.xlu0 %v4879_v33, %s4132_s21  ;;  %413 = vst.msk [vmem:[#allocation2 + $0xc1] sm:$0xff] %vm357_vm0, %v4906_v45 }
 0x177   : > { %690 = vrot.lane.b32.xlu2 %v456_v16, %s4126_s15  ;;  %v873_v22 = vpop.permute.xlu1 %872  ;;  %v1065_v36 = vpop.permute.xlu0 %1064 }
 0x178   : > { %v1366_v51 = vsel %vm1353_vm5, %v1341_v59, %v873_v22  ;;  %v4933_v59 = vld [vmem:[#allocation2 + $0xb2] sm:$0xff] }
 0x179   : > { %v1255_v38 = vpop.permute.xlu2 %1254 }
 0x17a   : > { %v1465_v27 = vsel %vm1453_vm9, %v1440_v41, %v1255_v38 }
 0x17b   : > { %v1574_v17 = vsel %vm1550_vm10, %v1465_v27, %v1537_v39 }
 0x17c   : > { %1661 = vst [vmem:[#allocation1 + $0x1] ss:$2 sm:$0xff] %v1574_v17 }
 0x17d   : > { %694 = vrot.lane.b32.xlu1 %v458_v24, %s4126_s15  ;;  %886 = vrot.lane.b32.xlu0 %v506_v23, %s4128_s17  ;;  %v4923_v24 = vld [vmem:[#allocation2 + $0xa2] sm:$0xff] }
 0x17f   : > { %788 = vrot.lane.b32.xlu2 %v4862_v53, %s4127_s16  ;;  %v1161_v42 = vpop.permute.xlu1 %1160  ;;  %v779_v47 = vpop.permute.xlu0 %778 }
 0x181   : > { %v969_v49 = vpop.permute.xlu2 %968  ;;  %v4919_v22 = vpop.f32.mrf.mxu0 }
 0x182   : > { %v1391_v58 = vsel %vm1378_vm6, %v1366_v51, %v969_v49  ;;  %v4925_v23 = vpop.f32.mrf.mxu1  ;;  %v428_v51 = vld [vmem:[#allocation2 + $0x68] sm:$0xf] }
 0x183   : > { %v1668_v52 = vld.sshfl [vmem:[#allocation1] sm:$0xff pattern:$0x75316420]  ;;  %v1669_v60 = vld.sshfl [vmem:[#allocation1 + $0x8] sm:$0xff pattern:$0x75316420]  ;;  %v1416_v34 = vsel %vm1403_vm7, %v1391_v58, %v1065_v36  ;;  %v1317_v58 = vsel %vm357_vm0, %v428_v51, %v4538_v29 }
 0x184   : > { %1794 = vmatmul.f32.gmra.mxu0 %v1668_v52  ;;  %4055 = vmatmul.msk.f32.gmra.mxu1 %vm357_vm0, %v1669_v60  ;;  %v1441_v16 = vsel %vm1428_vm8, %v1416_v34, %v1161_v42  ;;  %v601_v49 = vld [vmem:[#allocation2 + $0xa9] sm:$0xf]  ;;  %v4959_v51 = vld [vmem:[%s4212_s14 + $0xb8] sm:$0xf] }
 0x185   : > { %982 = vrot.lane.b32.xlu1 %v530_v50, %s4131_s20  ;;  %1174 = vrot.lane.b32.xlu0 %v579_v48, %s4130_s19  ;;  %414 = vst.msk [vmem:[#allocation2 + $0xc9] sm:$0xf] %vm391_vm2, %v4959_v51 }
 0x187   : > { %978 = vrot.lane.b32.xlu2 %v528_v18, %s4131_s20  ;;  %v781_v15 = vpop.permute.xlu1 %780  ;;  %v877_v32 = vpop.permute.xlu0 %876 }
 0x189   : > { %v1257_v39 = vpop.permute.xlu2 %1256 }
 0x18a   : > { %v1466_v41 = vsel %vm1453_vm9, %v1441_v16, %v1257_v39  ;;  %v4947_v39 = vld [vmem:[#allocation2 + $0xc0] sm:$0xff] }
 0x18b   : > { %v1575_v38 = vsel %vm1550_vm10, %v1466_v41, %v1538_v26  ;;  %v1576_v27 = vsel %vm1550_vm10, %v1538_v26, %v1466_v41  ;;  %v1342_v26 = vsel %vm1328_vm4, %v1317_v58, %v779_v47  ;;  %v460_v41 = vld [vmem:[#allocation2 + $0xa9] sm:$0xf] }
 0x18c   : > { %v1577_v36 = vrot.slane %v1576_v27, 4  ;;  %1662 = vst [vmem:[#allocation1 + $0x10] ss:$2 sm:$0xff] %v1575_v38  ;;  %v1318_v27 = vsel %vm357_vm0, %v4631_v0, %v4562_v55  ;;  %v621_v47 = vld [vmem:[#allocation2 + $0x8a] sm:$0xf] }
 0x18d   : > { %696 = vrot.lane.b32.xlu1 %v4812_v20, %s4126_s15  ;;  %792 = vrot.lane.b32.xlu0 %v4923_v24, %s4127_s16 }
 0x18e   : > { %1663 = vst [vmem:[#allocation1 + $0x11] ss:$2 sm:$0xff] %v1577_v36  ;;  %v482_v36 = vld [vmem:[#allocation2 + $0x9a] sm:$0xf] }
 0x18f   : > { %1076 = vrot.lane.b32.xlu2 %v4923_v24, %s4129_s18  ;;  %v971_v13 = vpop.permute.xlu1 %970  ;;  %v1067_v17 = vpop.permute.xlu0 %1066 }
 0x191   : > { %v875_v25 = vpop.permute.xlu2 %874 }
 0x192   : > { %v1367_v38 = vsel %vm1353_vm5, %v1342_v26, %v875_v25 }
 0x193   : > { %v1780_v42 = vpop.f32.mrf.mxu0  ;;  %v1851_v20 = vpop.f32.mrf.mxu1  ;;  %v1392_v29 = vsel %vm1378_vm6, %v1367_v38, %v971_v13 }
 0x194   : > { %v1781_v50 = vadd.f32 %v4810_v21, %v1780_v42  ;;  %v1343_v42 = vsel %vm1328_vm4, %v1318_v27, %v781_v15  ;;  %v1417_v55 = vsel %vm1403_vm7, %v1392_v29, %v1067_v17  ;;  %v1539_v15 = vrot.slane %v621_v47, 4  ;;  %v430_v27 = vld [vmem:[#allocation2 + $0x78] sm:$0xf] }
 0x195   : > { %v1670_v48 = vld.sshfl [vmem:[#allocation1 + $0x10] sm:$0xff pattern:$0x75316420]  ;;  %v1671_v52 = vld.sshfl [vmem:[#allocation1 + $0x18] sm:$0xff pattern:$0x75316420]  ;;  %888 = vrot.lane.b32.xlu1 %v4877_v11, %s4128_s17  ;;  %1080 = vrot.lane.b32.xlu0 %v4933_v59, %s4129_s18  ;;  %v1368_v13 = vsel %vm1353_vm5, %v1343_v42, %v877_v32 }
 0x196   : > { %v4940_v60 = vadd.f32 %v1851_v20, %v1781_v50  ;;  %1797 = vmatmul.f32.gmra.mxu0 %v1670_v48  ;;  %4056 = vmatmul.msk.f32.gmra.mxu1 %vm357_vm0, %v1671_v52  ;;  %v554_v20 = vld [vmem:[#allocation2 + $0xaa] sm:$0xf]  ;;  %v1540_v17 = vrot.slane %v4862_v53, 4  ;;  %v532_v29 = vld [vmem:[#allocation2 + $0xb9] sm:$0xf] }
 0x197   : > { %1266 = vrot.lane.b32.xlu2 %v601_v49, %s4132_s21  ;;  %v1069_v18 = vpop.permute.xlu1 %1068  ;;  %v1165_v34 = vpop.permute.xlu0 %1164 }
 0x199   : > { %v973_v16 = vpop.permute.xlu2 %972 }
 0x19a   : > { %v1393_v48 = vsel %vm1378_vm6, %v1368_v13, %v973_v16 }
 0x19b   : > { %v1418_v58 = vsel %vm1403_vm7, %v1393_v48, %v1069_v18 }
 0x19c   : > { %v1443_v32 = vsel %vm1428_vm8, %v1418_v58, %v1165_v34  ;;  %v623_v58 = vld [vmem:[#allocation2 + $0x9a] sm:$0xf] }
 0x19d   : > { %1176 = vrot.lane.b32.xlu1 %v4947_v39, %s4130_s19  ;;  %698 = vrot.lane.b32.xlu0 %v460_v41, %s4126_s15 }
 0x19f   : > { %790 = vrot.lane.b32.xlu2 %v482_v36, %s4127_s16  ;;  %v1259_v0 = vpop.permute.xlu1 %1258  ;;  %v687_v25 = vpop.permute.xlu0 %686  ;;  %v508_v36 = vld [vmem:[#allocation2 + $0xb8] sm:$0xf] }
 0x1a0   : > { %v1319_v13 = vsel %vm357_vm0, %v430_v27, %v687_v25  ;;  %v604_v25 = vld [vmem:[#allocation2 + $0xc1] sm:$0xff] }
 0x1a1   : > { %v1163_v49 = vpop.permute.xlu2 %1162 }
 0x1a2   : > { %v1442_v50 = vsel %vm1428_vm8, %v1417_v55, %v1163_v49 }
 0x1a3   : > { %v1467_v52 = vsel %vm1453_vm9, %v1442_v50, %v1259_v0  ;;  %v603_v0 = vld [vmem:[#allocation2 + $0xb9] sm:$0xf]  ;;  %v4986_v50 = vld [vmem:[#allocation2 + $0xc2] sm:$0xff] }
 0x1a4   : > { %v1578_v26 = vsel %vm1550_vm10, %v1467_v52, %v1539_v15 }
 0x1a5   : > { %1664 = vst [vmem:[#allocation1 + $0x20] ss:$2 sm:$0xff] %v1578_v26  ;;  %700 = vrot.lane.b32.xlu1 %v4879_v33, %s4126_s15  ;;  %796 = vrot.lane.b32.xlu0 %v4933_v59, %s4127_s16 }
 0x1a7   : > { %1078 = vrot.lane.b32.xlu2 %v554_v20, %s4129_s18  ;;  %v783_v16 = vpop.permute.xlu1 %782  ;;  %v975_v41 = vpop.permute.xlu0 %974 }
 0x1a8   : > { %v1344_v15 = vsel %vm1328_vm4, %v1319_v13, %v783_v16 }
 0x1a9   : > { %v1261_v38 = vpop.permute.xlu2 %1260 }
 0x1aa   : > { %v1468_v18 = vsel %vm1453_vm9, %v1443_v32, %v1261_v38  ;;  %v1541_v38 = vrot.slane %v623_v58, 4 }
 0x1ab   : > { %v1579_v42 = vsel %vm1550_vm10, %v1468_v18, %v1540_v17  ;;  %v1580_v47 = vsel %vm1550_vm10, %v1540_v17, %v1468_v18 }
 0x1ac   : > { %v1581_v55 = vrot.slane %v1580_v47, 4  ;;  %1665 = vst [vmem:[#allocation1 + $0x21] ss:$2 sm:$0xff] %v1579_v42 }
 0x1ad   : > { %890 = vrot.lane.b32.xlu1 %v508_v36, %s4128_s17  ;;  %986 = vrot.lane.b32.xlu0 %v532_v29, %s4131_s20  ;;  %v581_v36 = vld [vmem:[#allocation2 + $0xc8] sm:$0xf] }
 0x1ae   : > { %1666 = vst [vmem:[#allocation1 + $0x30] ss:$2 sm:$0xff] %v1581_v55  ;;  %v605_v29 = vld [vmem:[#allocation2 + $0xc9] sm:$0xf] }
 0x1af   : > { %1270 = vrot.lane.b32.xlu2 %v603_v0, %s4132_s21  ;;  %v1071_v53 = vpop.permute.xlu1 %1070  ;;  %v689_v34 = vpop.permute.xlu0 %688 }
 0x1b0   : > { %v1320_v55 = vsel %vm357_vm0, %v4696_v46, %v689_v34 }
 0x1b1   : > { %v879_v49 = vpop.permute.xlu2 %878  ;;  %v5005_v13 = vpop.f32.mrf.mxu0 }
 0x1b2   : > { %v1369_v20 = vsel %vm1353_vm5, %v1344_v15, %v879_v49  ;;  %v484_v15 = vld [vmem:[#allocation2 + $0xaa] sm:$0xf]  ;;  %v606_v49 = vld [vmem:[#allocation2 + $0xd1] sm:$0xff]  ;;  %v5008_v58 = vpop.f32.mrf.mxu1 }
 0x1b3   : > { %v1672_v48 = vld.sshfl [vmem:[#allocation1 + $0x20] sm:$0xff pattern:$0x75316420]  ;;  %v1673_v52 = vld.sshfl [vmem:[#allocation1 + $0x28] sm:$0xff pattern:$0x75316420]  ;;  %v1394_v26 = vsel %vm1378_vm6, %v1369_v20, %v975_v41 }
 0x1b4   : > { %1800 = vmatmul.f32.gmra.mxu0 %v1672_v48  ;;  %4057 = vmatmul.msk.f32.gmra.mxu1 %vm357_vm0, %v1673_v52  ;;  %v1419_v32 = vsel %vm1403_vm7, %v1394_v26, %v1071_v53  ;;  %v486_v48 = vld [vmem:[#allocation2 + $0xba] sm:$0xf] }
 0x1b5   : > { %988 = vrot.lane.b32.xlu1 %v604_v25, %s4131_s20  ;;  %1084 = vrot.lane.b32.xlu0 %v4986_v50, %s4129_s18 }
 0x1b7   : > { %984 = vrot.lane.b32.xlu2 %v4879_v33, %s4131_s20  ;;  %v1263_v17 = vpop.permute.xlu1 %1262  ;;  %v881_v16 = vpop.permute.xlu0 %880 }
 0x1b9   : > { %v1167_v18 = vpop.permute.xlu2 %1166 }
 0x1ba   : > { %v1444_v27 = vsel %vm1428_vm8, %v1419_v32, %v1167_v18 }
 0x1bb   : > { %v1469_v42 = vsel %vm1453_vm9, %v1444_v27, %v1263_v17  ;;  %v1542_v17 = vrot.slane %v4923_v24, 4 }
 0x1bc   : > { %v1582_v47 = vsel %vm1550_vm10, %v1469_v42, %v1541_v38 }
 0x1bd   : > { %1667 = vst [vmem:[#allocation1 + $0x31] ss:$2 sm:$0xff] %v1582_v47  ;;  %1178 = vrot.lane.b32.xlu1 %v581_v36, %s4130_s19  ;;  %1274 = vrot.lane.b32.xlu0 %v605_v29, %s4132_s21  ;;  %v558_v36 = vld [vmem:[#allocation2 + $0xca] sm:$0xf] }
 0x1bf   : > { %1272 = vrot.lane.b32.xlu2 %v604_v25, %s4132_s21  ;;  %v977_v33 = vpop.permute.xlu1 %976  ;;  %v1169_v41 = vpop.permute.xlu0 %1168 }
 0x1c1   : > { %v785_v0 = vpop.permute.xlu2 %784  ;;  %v5018_v18 = vpop.f32.mrf.mxu0 }
 0x1c2   : > { %v1345_v53 = vsel %vm1328_vm4, %v1320_v55, %v785_v0  ;;  %v5022_v42 = vpop.f32.mrf.mxu1 }
 0x1c3   : > { %v1370_v25 = vsel %vm1353_vm5, %v1345_v53, %v881_v16  ;;  %v510_v16 = vld [vmem:[#allocation2 + $0xc8] sm:$0xf] }
 0x1c4   : > { %v1674_v52 = vld.sshfl [vmem:[#allocation1 + $0x30] sm:$0xff pattern:$0x75316420]  ;;  %v1675_v20 = vld.sshfl [vmem:[#allocation1 + $0x38] sm:$0xff pattern:$0x75316420]  ;;  %v1395_v46 = vsel %vm1378_vm6, %v1370_v25, %v977_v33 }
 0x1c5   : > { %1803 = vmatmul.f32.gmra.mxu0 %v1674_v52  ;;  %4058 = vmatmul.msk.f32.gmra.mxu1 %vm357_vm0, %v1675_v20 }
 0x1c6   : > { %1276 = vrot.lane.b32.xlu1 %v606_v49, %s4132_s21  ;;  %798 = vrot.lane.b32.xlu0 %v486_v48, %s4127_s16  ;;  %v556_v49 = vld [vmem:[#allocation2 + $0xba] sm:$0xf] }
 0x1c7   : > { %794 = vrot.lane.b32.xlu2 %v484_v15, %s4127_s16  ;;  %v1265_v34 = vpop.permute.xlu1 %1264  ;;  %v693_v26 = vpop.permute.xlu0 %692  ;;  %v583_v15 = vld [vmem:[#allocation2 + $0xd8] sm:$0xf] }
 0x1c9   : > { %v1073_v32 = vpop.permute.xlu2 %1072 }
 0x1ca   : > { %v1420_v38 = vsel %vm1403_vm7, %v1395_v46, %v1073_v32 }
 0x1cb   : > { %v1445_v27 = vsel %vm1428_vm8, %v1420_v38, %v1169_v41 }
 0x1cc   : > { %v1470_v29 = vsel %vm1453_vm9, %v1445_v27, %v1265_v34 }
 0x1cd   : > { %v1583_v47 = vsel %vm1550_vm10, %v1470_v29, %v1542_v17  ;;  %v1584_v33 = vsel %vm1550_vm10, %v1542_v17, %v1470_v29  ;;  %v582_v17 = vld [vmem:[#allocation2 + $0xd0] sm:$0xff] }
 0x1ce   : > { %v1585_v55 = vrot.slane %v1584_v33, 4  ;;  %1676 = vst [vmem:[#allocation1] ss:$2 sm:$0xff] %v1583_v47  ;;  %894 = vrot.lane.b32.xlu1 %v510_v16, %s4128_s17  ;;  %1086 = vrot.lane.b32.xlu0 %v558_v36, %s4129_s18  ;;  %v1322_v16 = vsel %vm357_vm0, %v4738_v28, %v693_v26  ;;  %v432_v36 = vld [vmem:[#allocation2 + $0x88] sm:$0xf]  ;;  %v1544_v26 = vrot.slane %v4933_v59, 4 }
 0x1cf   : > { %892 = vrot.lane.b32.xlu2 %v4947_v39, %s4128_s17  ;;  %v787_v24 = vpop.permute.xlu1 %786  ;;  %v883_v41 = vpop.permute.xlu0 %882 }
 0x1d0   : > { %1677 = vst [vmem:[#allocation1 + $0x1] ss:$2 sm:$0xff] %v1585_v55 }
 0x1d1   : > { %v691_v0 = vpop.permute.xlu2 %690 }
 0x1d2   : > { %v1321_v33 = vsel %vm357_vm0, %v432_v36, %v691_v0 }
 0x1d3   : > { %v1789_v53 = vpop.f32.mrf.mxu0  ;;  %v1860_v52 = vpop.f32.mrf.mxu1 }
 0x1d4   : > { %v1790_v48 = vadd.f32 %v4810_v21, %v1789_v53  ;;  %v462_v53 = vld [vmem:[#allocation2 + $0xb9] sm:$0xf] }
 0x1d6   : > { %v5031_v20 = vadd.f32 %v1860_v52, %v1790_v48  ;;  %1182 = vrot.lane.b32.xlu1 %v583_v15, %s4130_s19  ;;  %v1346_v15 = vsel %vm1328_vm4, %v1321_v33, %v787_v24  ;;  %v625_v24 = vld [vmem:[#allocation2 + $0xaa] sm:$0xf] }
 0x1d7   : > { %1082 = vrot.lane.b32.xlu2 %v556_v49, %s4129_s18  ;;  %v1684_v25 = vld.sshfl [vmem:[#allocation1] sm:$0xff pattern:$0x75316420]  ;;  %v1685_v46 = vld.sshfl [vmem:[#allocation1 + $0x8] sm:$0xff pattern:$0x75316420]  ;;  %v885_v34 = vpop.permute.xlu1 %884  ;;  %v981_v39 = vpop.permute.xlu0 %980 }
 0x1d8   : > { %1806 = vmatmul.f32.gmra.mxu0 %v1684_v25  ;;  %4059 = vmatmul.msk.f32.gmra.mxu1 %vm357_vm0, %v1685_v46  ;;  %v1371_v25 = vsel %vm1353_vm5, %v1346_v15, %v883_v41  ;;  %v607_v15 = vld [vmem:[#allocation2 + $0xd9] sm:$0xf] }
 0x1d9   : > { %v789_v32 = vpop.permute.xlu2 %788 }
 0x1da   : > { %v1347_v47 = vsel %vm1328_vm4, %v1322_v16, %v789_v32 }
 0x1db   : > { %v1372_v55 = vsel %vm1353_vm5, %v1347_v47, %v885_v34  ;;  %v1543_v47 = vrot.slane %v625_v24, 4 }
 0x1dc   : > { %v1397_v49 = vsel %vm1378_vm6, %v1372_v55, %v981_v39 }
 0x1df   : > { %1180 = vrot.lane.b32.xlu2 %v582_v17, %s4130_s19  ;;  %v1075_v38 = vpop.permute.xlu1 %1074  ;;  %v1171_v27 = vpop.permute.xlu0 %1170  ;;  %v534_v17 = vld [vmem:[#allocation2 + $0xc9] sm:$0xf] }
 0x1e1   : > { %v979_v29 = vpop.permute.xlu2 %978 }
 0x1e2   : > { %v1396_v0 = vsel %vm1378_vm6, %v1371_v25, %v979_v29 }
 0x1e3   : > { %v1421_v32 = vsel %vm1403_vm7, %v1396_v0, %v1075_v38 }
 0x1e4   : > { %v1446_v59 = vsel %vm1428_vm8, %v1421_v32, %v1171_v27 }
 0x1e7   : > { %702 = vrot.lane.b32.xlu2 %v462_v53, %s4126_s15  ;;  %v1173_v48 = vpop.permute.xlu1 %1172  ;;  %v1269_v52 = vpop.permute.xlu0 %1268 }
 0x1e9   : > { %v1077_v28 = vpop.permute.xlu2 %1076 }
 0x1ea   : > { %v1422_v46 = vsel %vm1403_vm7, %v1397_v49, %v1077_v28  ;;  %v434_v49 = vld [vmem:[#allocation2 + $0x98] sm:$0xf] }
 0x1eb   : > { %v1447_v34 = vsel %vm1428_vm8, %v1422_v46, %v1173_v48 }
 0x1ec   : > { %v1472_v39 = vsel %vm1453_vm9, %v1447_v34, %v1269_v52 }
 0x1ed   : > { %v1587_v16 = vsel %vm1550_vm10, %v1472_v39, %v1544_v26  ;;  %v1588_v36 = vsel %vm1550_vm10, %v1544_v26, %v1472_v39 }
 0x1ee   : > { %v1589_v41 = vrot.slane %v1588_v36, 4  ;;  %1679 = vst [vmem:[#allocation1 + $0x11] ss:$2 sm:$0xff] %v1587_v16  ;;  %v627_v16 = vld [vmem:[#allocation2 + $0xba] sm:$0xf]  ;;  %v1775_v36 = vadd.f32 %v4810_v21, %v4901_v61 }
 0x1ef   : > { %990 = vrot.lane.b32.xlu2 %v534_v17, %s4131_s20  ;;  %v695_v29 = vpop.permute.xlu1 %694  ;;  %v887_v33 = vpop.permute.xlu0 %886 }
 0x1f0   : > { %1680 = vst [vmem:[#allocation1 + $0x20] ss:$2 sm:$0xff] %v1589_v41  ;;  %v1323_v27 = vsel %vm357_vm0, %v434_v49, %v695_v29 }
 0x1f1   : > { %v1267_v55 = vpop.permute.xlu2 %1266 }
 0x1f2   : > { %v1471_v38 = vsel %vm1453_vm9, %v1446_v59, %v1267_v55  ;;  %v1545_v59 = vrot.slane %v627_v16, 4  ;;  %v1546_v16 = vrot.slane %v4986_v50, 4 }
 0x1f3   : > { %v1586_v53 = vsel %vm1550_vm10, %v1471_v38, %v1543_v47  ;;  %v5069_v38 = vadd.f32 %v4908_v19, %v1775_v36 }
 0x1f4   : > { %1678 = vst [vmem:[#allocation1 + $0x10] ss:$2 sm:$0xff] %v1586_v53 }
 0x1f5   : > { %v1897_v49 = vmax.f32 %v5069_v38, 0.0 }
 0x1f7   : > { %1278 = vrot.lane.b32.xlu2 %v607_v15, %s4132_s21  ;;  %v983_v48 = vpop.permute.xlu1 %982  ;;  %v1175_v52 = vpop.permute.xlu0 %1174 }
 0x1f9   : > { %v791_v25 = vpop.permute.xlu2 %790 }
 0x1fa   : > { %v1348_v46 = vsel %vm1328_vm4, %v1323_v27, %v791_v25 }
 0x1fb   : > { %v1686_v28 = vld.sshfl [vmem:[#allocation1 + $0x10] sm:$0xff pattern:$0x75316420]  ;;  %v1687_v26 = vld.sshfl [vmem:[#allocation1 + $0x18] sm:$0xff pattern:$0x75316420]  ;;  %v1373_v32 = vsel %vm1353_vm5, %v1348_v46, %v887_v33  ;;  %v1778_v33 = vadd.f32 %v4810_v21, %v4919_v22 }
 0x1fc   : > { %1809 = vmatmul.f32.gmra.mxu0 %v1686_v28  ;;  %4060 = vmatmul.msk.f32.gmra.mxu1 %vm357_vm0, %v1687_v26  ;;  %v1398_v17 = vsel %vm1378_vm6, %v1373_v32, %v983_v48  ;;  %v1792_v28 = vpop.f32.mrf.mxu0  ;;  %v1933_v46 = vrot.slane %v1897_v49, 4 }
 0x1fd   : > { %v1849_v48 = vadd.f32 %v4925_v23, %v1778_v33  ;;  %v1787_v23 = vadd.f32 %v4810_v21, %v5018_v18 }
 0x1ff   : > { %v697_v0 = vpop.permute.xlu1 %696  ;;  %v793_v34 = vpop.permute.xlu0 %792  ;;  %v1898_v32 = vmax.f32 %v1849_v48, 0.0 }
 0x200   : > { %v1324_v61 = vsel %vm357_vm0, %v4799_v37, %v697_v0 }
 0x201   : > { %v1079_v24 = vpop.permute.xlu2 %1078  ;;  %v1349_v19 = vsel %vm1328_vm4, %v1324_v61, %v793_v34 }
 0x202   : > { %v1423_v39 = vsel %vm1403_vm7, %v1398_v17, %v1079_v24  ;;  %v1863_v24 = vpop.f32.mrf.mxu1 }
 0x203   : > { %v1448_v41 = vsel %vm1428_vm8, %v1423_v39, %v1175_v52  ;;  %v1784_v52 = vadd.f32 %v4810_v21, %v5005_v13 }
 0x205   : > { %v5086_v37 = vadd.f32 %v5008_v58, %v1784_v52  ;;  %v1858_v58 = vadd.f32 %v5022_v42, %v1787_v23 }
 0x207   : > { %v889_v47 = vpop.permute.xlu1 %888  ;;  %v1081_v29 = vpop.permute.xlu0 %1080  ;;  %v1900_v39 = vmax.f32 %v5086_v37, 0.0 }
 0x208   : > { %v1374_v22 = vsel %vm1353_vm5, %v1349_v19, %v889_v47  ;;  %v1795_v47 = vpop.f32.mrf.mxu0 }
 0x209   : > { %v1271_v55 = vpop.permute.xlu2 %1270  ;;  %v1796_v50 = vadd.f32 %v4810_v21, %v1795_v47 }
 0x20a   : > { %v1473_v53 = vsel %vm1453_vm9, %v1448_v41, %v1271_v55  ;;  %v1866_v19 = vpop.f32.mrf.mxu1 }
 0x20b   : > { %v1590_v15 = vsel %vm1550_vm10, %v1473_v53, %v1545_v59  ;;  %v1793_v59 = vadd.f32 %v4810_v21, %v1792_v28  ;;  %v1936_v53 = vrot.slane %v1900_v39, 4  ;;  %v1867_v28 = vadd.f32 %v1866_v19, %v1796_v50 }
 0x20c   : > { %1681 = vst [vmem:[#allocation1 + $0x21] ss:$2 sm:$0xff] %v1590_v15 }
 0x20d   : > { %v5104_v52 = vadd.f32 %v1863_v24, %v1793_v59  ;;  %v1904_v23 = vmax.f32 %v1867_v28, 0.0  ;;  %v1934_v24 = vrot.slane %v1898_v32, 4 }
 0x20f   : > { %v1177_v25 = vpop.permute.xlu1 %1176  ;;  %v699_v27 = vpop.permute.xlu0 %698 }
 0x211   : > { %v985_v26 = vpop.permute.xlu2 %984 }
 0x212   : > { %v1399_v34 = vsel %vm1378_vm6, %v1374_v22, %v985_v26  ;;  %v1903_v26 = vmax.f32 %v5104_v52, 0.0 }
 0x213   : > { %v1688_v0 = vld.sshfl [vmem:[#allocation1 + $0x20] sm:$0xff pattern:$0x75316420]  ;;  %v1689_v13 = vld.sshfl [vmem:[#allocation1 + $0x28] sm:$0xff pattern:$0x75316420]  ;;  %v1424_v17 = vsel %vm1403_vm7, %v1399_v34, %v1081_v29  ;;  %v5112_v47 = vpop.f32.mrf.mxu0 }
 0x214   : > { %1988 = vst [vmem:[#allocation1 + $0x20] ss:$2 sm:$0xff] %v1933_v46  ;;  %1812 = vmatmul.f32.gmra.mxu0 %v1688_v0  ;;  %4061 = vmatmul.msk.f32.gmra.mxu1 %vm357_vm0, %v1689_v13  ;;  %v1449_v18 = vsel %vm1428_vm8, %v1424_v17, %v1177_v25  ;;  %v1901_v29 = vmax.f32 %v1858_v58, 0.0  ;;  %v1939_v0 = vrot.slane %v1903_v26, 4  ;;  %v436_v34 = vld [vmem:[#allocation2 + $0xa8] sm:$0xf] }
 0x215   : > { %1990 = vst [vmem:[#allocation1 + $0x21] ss:$2 sm:$0xff] %v1898_v32  ;;  %v1325_v59 = vsel %vm357_vm0, %v436_v34, %v699_v27 }
 0x217   : > { %v701_v36 = vpop.permute.xlu1 %700  ;;  %v797_v41 = vpop.permute.xlu0 %796 }
 0x218   : > { %v1326_v27 = vsel %vm357_vm0, %v4877_v11, %v701_v36 }
 0x219   : > { %v1273_v55 = vpop.permute.xlu2 %1272 }
 0x21a   : > { %v1474_v33 = vsel %vm1453_vm9, %v1449_v18, %v1273_v55 }
 0x21b   : > { %v1591_v15 = vsel %vm1550_vm10, %v1474_v33, %v1546_v16  ;;  %v1592_v42 = vsel %vm1550_vm10, %v1546_v16, %v1474_v33  ;;  %v2117_v33 = vld [vmem:[#allocation3 + $0x1] sm:$0xff] }
 0x21c   : > { %v1993_v61 = vld.sshfl [vmem:[#allocation1 + $0x20] sm:$0xff pattern:$0x75316420]  ;;  %v1593_v48 = vrot.slane %v1592_v42, 4  ;;  %1682 = vst [vmem:[#allocation1 + $0x30] ss:$2 sm:$0xff] %v1591_v15  ;;  %2334 = vrot.lane.b32.xlu0 %v2117_v33, %s4126_s15 }
 0x21d   : > { %2000 = vst [vmem:[#allocation1 + $0x20] ss:$2 sm:$0xff] %v1936_v53  ;;  %v5115_v53 = vpop.f32.mrf.mxu1  ;;  %v2141_v15 = vld [vmem:[#allocation3 + $0x2] sm:$0xff] }
 0x21e   : > { %2001 = vst [vmem:[#allocation1 + $0x21] ss:$2 sm:$0xff] %v1901_v29  ;;  %2430 = vrot.lane.b32.xlu1 %v2141_v15, %s4127_s16 }
 0x21f   : > { %2071 = vst.msk [vmem:[#allocation3 + $0x21] sm:$0xff] %vm357_vm0, %v1993_v61  ;;  %v891_v25 = vpop.permute.xlu1 %890  ;;  %v987_v22 = vpop.permute.xlu0 %986  ;;  %v629_v61 = vld [vmem:[#allocation2 + $0xca] sm:$0xf] }
 0x220   : > { %1683 = vst [vmem:[#allocation1 + $0x31] ss:$2 sm:$0xff] %v1593_v48  ;;  %v1937_v48 = vrot.slane %v1901_v29, 4 }
 0x221   : > { %v795_v46 = vpop.permute.xlu2 %794 }
 0x222   : > { %v1350_v32 = vsel %vm1328_vm4, %v1325_v59, %v795_v46  ;;  %v1351_v46 = vsel %vm1328_vm4, %v1326_v27, %v797_v41 }
 0x223   : > { %v1375_v42 = vsel %vm1353_vm5, %v1350_v32, %v891_v25  ;;  %v630_v32 = vld [vmem:[#allocation2 + $0xd2] sm:$0xff] }
 0x224   : > { %v1400_v19 = vsel %vm1378_vm6, %v1375_v42, %v987_v22  ;;  %v1940_v42 = vrot.slane %v1904_v23, 4 }
 0x225   : > { %v2003_v13 = vld.sshfl [vmem:[#allocation1 + $0x20] sm:$0xff pattern:$0x75316420] }
 0x226   : > { %2011 = vst [vmem:[#allocation1 + $0x21] ss:$2 sm:$0xff] %v1904_v23 }
 0x227   : > { %2010 = vst [vmem:[#allocation1 + $0x20] ss:$2 sm:$0xff] %v1939_v0  ;;  %v1690_v17 = vld.sshfl [vmem:[#allocation1 + $0x30] sm:$0xff pattern:$0x75316420]  ;;  %v989_v58 = vpop.permute.xlu1 %988  ;;  %v1085_v16 = vpop.permute.xlu0 %1084 }
 0x228   : > { %2075 = vst.msk [vmem:[#allocation3 + $0x41] sm:$0xff] %vm357_vm0, %v2003_v13  ;;  %v1691_v18 = vld.sshfl [vmem:[#allocation1 + $0x38] sm:$0xff pattern:$0x75316420]  ;;  %1815 = vmatmul.f32.gmra.mxu0 %v1690_v17 }
 0x229   : > { %1992 = vst [vmem:[#allocation1 + $0x30] ss:$2 sm:$0xff] %v1934_v24  ;;  %v893_v55 = vpop.permute.xlu2 %892  ;;  %4062 = vmatmul.msk.f32.gmra.mxu1 %vm357_vm0, %v1691_v18  ;;  %v1547_v24 = vrot.slane %v629_v61, 4  ;;  %v1548_v61 = vrot.slane %v630_v32, 4 }
 0x22a   : > { %v1376_v29 = vsel %vm1353_vm5, %v1351_v46, %v893_v55  ;;  %v1896_v46 = vmax.f32 %v4818_v56, 0.0 }
 0x22b   : > { %v1401_v18 = vsel %vm1378_vm6, %v1376_v29, %v989_v58 }
 0x22c   : > { %v1426_v27 = vsel %vm1403_vm7, %v1401_v18, %v1085_v16  ;;  %v1932_v29 = vrot.slane %v1896_v46, 4 }
 0x22e   : > { %v2013_v50 = vld.sshfl [vmem:[#allocation1 + $0x20] sm:$0xff pattern:$0x75316420] }
 0x22f   : > { %2079 = vst.msk [vmem:[#allocation3 + $0x61] sm:$0xff] %vm357_vm0, %v2013_v50  ;;  %v1179_v28 = vpop.permute.xlu1 %1178  ;;  %v1275_v13 = vpop.permute.xlu0 %1274 }
 0x230   : > { %v1994_v0 = vld.sshfl [vmem:[#allocation1 + $0x30] sm:$0xff pattern:$0x75316420] }
 0x231   : > { %2002 = vst [vmem:[#allocation1 + $0x30] ss:$2 sm:$0xff] %v1937_v48  ;;  %v1083_v34 = vpop.permute.xlu2 %1082  ;;  %v1801_v25 = vpop.f32.mrf.mxu0 }
 0x232   : > { %2072 = vst.msk [vmem:[#allocation3 + $0x29] sm:$0xf] %vm391_vm2, %v1994_v0  ;;  %v1425_v11 = vsel %vm1403_vm7, %v1400_v19, %v1083_v34  ;;  %v1802_v36 = vadd.f32 %v4810_v21, %v1801_v25  ;;  %v1872_v22 = vpop.f32.mrf.mxu1  ;;  %v438_v34 = vld [vmem:[#allocation2 + $0xb8] sm:$0xf] }
 0x233   : > { %v1450_v17 = vsel %vm1428_vm8, %v1425_v11, %v1179_v28 }
 0x234   : > { %v5132_v59 = vadd.f32 %v1872_v22, %v1802_v36  ;;  %v1475_v41 = vsel %vm1453_vm9, %v1450_v17, %v1275_v13 }
 0x235   : > { %v1594_v33 = vsel %vm1550_vm10, %v1475_v41, %v1547_v24 }
 0x236   : > { %v1906_v15 = vmax.f32 %v5132_v59, 0.0  ;;  %1692 = vst [vmem:[#allocation1] ss:$2 sm:$0xff] %v1594_v33 }
 0x238   : > { %v2004_v50 = vld.sshfl [vmem:[#allocation1 + $0x30] sm:$0xff pattern:$0x75316420]  ;;  %v1942_v55 = vrot.slane %v1906_v15, 4  ;;  %v1277_v48 = vpop.permute.xlu1 %1276  ;;  %v799_v24 = vpop.permute.xlu0 %798 }
 0x239   : > { %2012 = vst [vmem:[#allocation1 + $0x30] ss:$2 sm:$0xff] %v1940_v42  ;;  %v1181_v58 = vpop.permute.xlu2 %1180 }
 0x23a   : > { %2076 = vst.msk [vmem:[#allocation3 + $0x49] sm:$0xf] %vm391_vm2, %v2004_v50  ;;  %v1451_v19 = vsel %vm1428_vm8, %v1426_v27, %v1181_v58  ;;  %v1899_v50 = vmax.f32 %v4940_v60, 0.0 }
 0x23b   : > { %2020 = vst [vmem:[#allocation1 + $0x20] ss:$2 sm:$0xff] %v1942_v55  ;;  %v1476_v28 = vsel %vm1453_vm9, %v1451_v19, %v1277_v48  ;;  %v631_v19 = vld [vmem:[#allocation2 + $0xda] sm:$0xf] }
 0x23c   : > { %v1595_v0 = vsel %vm1550_vm10, %v1476_v28, %v1548_v61  ;;  %v1596_v23 = vsel %vm1550_vm10, %v1548_v61, %v1476_v28  ;;  %v1935_v28 = vrot.slane %v1899_v50, 4 }
 0x23d   : > { %v1597_v16 = vrot.slane %v1596_v23, 4  ;;  %1693 = vst [vmem:[#allocation1 + $0x1] ss:$2 sm:$0xff] %v1595_v0 }
 0x23f   : > { %1694 = vst [vmem:[#allocation1 + $0x10] ss:$2 sm:$0xff] %v1597_v16 }
 0x240   : > { %v2014_v13 = vld.sshfl [vmem:[#allocation1 + $0x30] sm:$0xff pattern:$0x75316420]  ;;  %v895_v11 = vpop.permute.xlu1 %894  ;;  %v1087_v48 = vpop.permute.xlu0 %1086 }
 0x241   : > { %2080 = vst.msk [vmem:[#allocation3 + $0x69] sm:$0xf] %vm391_vm2, %v2014_v13  ;;  %v703_v25 = vpop.permute.xlu2 %702 }
 0x242   : > { %v1804_v36 = vpop.f32.mrf.mxu0  ;;  %v1327_v41 = vsel %vm357_vm0, %v438_v34, %v703_v25  ;;  %v1875_v33 = vpop.f32.mrf.mxu1  ;;  %v1902_v34 = vmax.f32 %v5031_v20, 0.0  ;;  %v5162_v25 = vld [vmem:[%s6152_s2] ss:$0 sm:$0xff] }
 0x243   : > { %v1805_v22 = vadd.f32 %v4810_v21, %v1804_v36  ;;  %v1352_v56 = vsel %vm1328_vm4, %v1327_v41, %v799_v24  ;;  %v1799_v24 = vadd.f32 %v5162_v25, %v5112_v47 }
 0x244   : > { %v1696_v17 = vld.sshfl [vmem:[#allocation1] sm:$0xff pattern:$0x75316420]  ;;  %v1697_v18 = vld.sshfl [vmem:[#allocation1 + $0x8] sm:$0xff pattern:$0x75316420]  ;;  %v1377_v27 = vsel %vm1353_vm5, %v1352_v56, %v895_v11 }
 0x245   : > { %1980 = vst [vmem:[#allocation1] ss:$2 sm:$0xff] %v1896_v46  ;;  %v1876_v32 = vadd.f32 %v1875_v33, %v1805_v22  ;;  %1818 = vmatmul.f32.gmra.mxu0 %v1696_v17  ;;  %4063 = vmatmul.msk.f32.gmra.mxu1 %vm357_vm0, %v1697_v18  ;;  %v1549_v46 = vrot.slane %v631_v19, 4  ;;  %v1938_v22 = vrot.slane %v1902_v34, 4  ;;  %v1870_v17 = vadd.f32 %v5115_v53, %v1799_v24  ;;  %v2239_v24 = vld [vmem:[#allocation3 + $0x28] sm:$0xf] }
 0x246   : > { %1982 = vst [vmem:[#allocation1 + $0x1] ss:$2 sm:$0xff] %v1932_v29 }
 0x247   : > { %v1907_v42 = vmax.f32 %v1876_v32, 0.0  ;;  %v1905_v33 = vmax.f32 %v1870_v17, 0.0 }
 0x248   : > { %v1183_v58 = vpop.permute.xlu1 %1182 }
 0x249   : > { %v1943_v55 = vrot.slane %v1907_v42, 4  ;;  %2021 = vst [vmem:[#allocation1 + $0x21] ss:$2 sm:$0xff] %v1907_v42  ;;  %v991_v21 = vpop.permute.xlu2 %990  ;;  %v1941_v42 = vrot.slane %v1905_v33, 4 }
 0x24a   : > { %v1402_v61 = vsel %vm1378_vm6, %v1377_v27, %v991_v21  ;;  %v5182_v21 = vld [vmem:[#allocation3 + $0x20] sm:$0xff] }
 0x24b   : > { %2022 = vst [vmem:[#allocation1 + $0x30] ss:$2 sm:$0xff] %v1943_v55  ;;  %v1427_v23 = vsel %vm1403_vm7, %v1402_v61, %v1087_v48  ;;  %v5180_v55 = vld [vmem:[#allocation3 + $0x21] sm:$0xff]  ;;  %v2142_v48 = vld [vmem:[#allocation3 + $0xa] sm:$0xf] }
 0x24c   : > { %v1452_v16 = vsel %vm1428_vm8, %v1427_v23, %v1183_v58  ;;  %v2118_v23 = vld [vmem:[#allocation3 + $0x9] sm:$0xf] }
 0x24d   : > { %v1985_v0 = vld.sshfl [vmem:[#allocation1] sm:$0xff pattern:$0x75316420] }
 0x24e   : > { %1995 = vst [vmem:[#allocation1] ss:$2 sm:$0xff] %v1899_v50 }
 0x24f   : > { %1996 = vst [vmem:[#allocation1 + $0x1] ss:$2 sm:$0xff] %v1935_v28 }
 0x250   : > { %2069 = vst.msk [vmem:[#allocation3 + $0x11] sm:$0xff] %vm357_vm0, %v1985_v0  ;;  %v2023_v60 = vld.sshfl [vmem:[#allocation1 + $0x20] sm:$0xff pattern:$0x75316420] }
 0x251   : > { %2083 = vst.msk [vmem:[#allocation3 + $0x81] sm:$0xff] %vm357_vm0, %v2023_v60  ;;  %v1279_v13 = vpop.permute.xlu2 %1278 }
 0x252   : > { %v2024_v11 = vld.sshfl [vmem:[#allocation1 + $0x30] sm:$0xff pattern:$0x75316420]  ;;  %v1477_v36 = vsel %vm1453_vm9, %v1452_v16, %v1279_v13 }
 0x253   : > { %2084 = vst.msk [vmem:[#allocation3 + $0x89] sm:$0xf] %vm391_vm2, %v2024_v11  ;;  %v1598_v29 = vsel %vm1550_vm10, %v1477_v36, %v1549_v46 }
 0x254   : > { %1695 = vst [vmem:[#allocation1 + $0x11] ss:$2 sm:$0xff] %v1598_v29 }
 0x255   : > { %v1807_v47 = vpop.f32.mrf.mxu0  ;;  %v1878_v50 = vpop.f32.mrf.mxu1 }
 0x256   : > { %v1998_v20 = vld.sshfl [vmem:[#allocation1] sm:$0xff pattern:$0x75316420]  ;;  %v1808_v53 = vadd.f32 %v5162_v25, %v1807_v47  ;;  %v2192_v47 = vld [vmem:[#allocation3 + $0x29] sm:$0xf] }
 0x257   : > { %2005 = vst [vmem:[#allocation1] ss:$2 sm:$0xff] %v1902_v34  ;;  %v2189_v18 = vld [vmem:[#allocation3 + $0x11] sm:$0xff] }
 0x258   : > { %v5170_v41 = vld [vmem:[#allocation3 + $0x10] sm:$0xff]  ;;  %2006 = vst [vmem:[#allocation1 + $0x1] ss:$2 sm:$0xff] %v1938_v22  ;;  %2622 = vrot.lane.b32.xlu0 %v2189_v18, %s4131_s20  ;;  %v1879_v61 = vadd.f32 %v1878_v50, %v1808_v53 }
 0x259   : > { %2526 = vrot.lane.b32.xlu2 %v5170_v41, %s4128_s17  ;;  %2073 = vst.msk [vmem:[#allocation3 + $0x31] sm:$0xff] %vm357_vm0, %v1998_v20  ;;  %v5222_v20 = vld [vmem:[#allocation3 + $0x22] sm:$0xff] }
 0x25b   : > { %v1698_v32 = vld.sshfl [vmem:[#allocation1 + $0x10] sm:$0xff pattern:$0x75316420]  ;;  %v1699_v56 = vld.sshfl [vmem:[#allocation1 + $0x18] sm:$0xff pattern:$0x75316420] }
 0x25c   : > { %1984 = vst [vmem:[#allocation1 + $0x10] ss:$2 sm:$0xff] %v1897_v49  ;;  %1821 = vmatmul.f32.gmra.mxu0 %v1698_v32  ;;  %4064 = vmatmul.msk.f32.gmra.mxu1 %vm357_vm0, %v1699_v56  ;;  %v1908_v49 = vmax.f32 %v1879_v61, 0.0 }
 0x25e   : > { %v1944_v58 = vrot.slane %v1908_v49, 4 }
 0x25f   : > { %v2008_v27 = vld.sshfl [vmem:[#allocation1] sm:$0xff pattern:$0x75316420] }
 0x260   : > { %2015 = vst [vmem:[#allocation1] ss:$2 sm:$0xff] %v1905_v33  ;;  %2910 = vrot.lane.b32.xlu0 %v5180_v55, %s4132_s21  ;;  %v2264_v22 = vld [vmem:[#allocation3 + $0x31] sm:$0xff] }
 0x261   : > { %2814 = vrot.lane.b32.xlu2 %v5182_v21, %s4130_s19  ;;  %2016 = vst [vmem:[#allocation1 + $0x1] ss:$2 sm:$0xff] %v1941_v42  ;;  %v2263_v42 = vld [vmem:[#allocation3 + $0x29] sm:$0xf] }
 0x262   : > { %2077 = vst.msk [vmem:[#allocation3 + $0x51] sm:$0xff] %vm357_vm0, %v2008_v27 }
 0x263   : > { %v1986_v38 = vld.sshfl [vmem:[#allocation1 + $0x10] sm:$0xff pattern:$0x75316420] }
 0x264   : > { %1997 = vst [vmem:[#allocation1 + $0x10] ss:$2 sm:$0xff] %v1900_v39 }
 0x265   : > { %2070 = vst.msk [vmem:[#allocation3 + $0x19] sm:$0xf] %vm391_vm2, %v1986_v38 }
 0x268   : > { %v2018_v19 = vld.sshfl [vmem:[#allocation1] sm:$0xff pattern:$0x75316420]  ;;  %2432 = vrot.lane.b32.xlu0 %v2142_v48, %s4127_s16 }
 0x269   : > { %2338 = vrot.lane.b32.xlu2 %v2189_v18, %s4126_s15  ;;  %2025 = vst [vmem:[#allocation1] ss:$2 sm:$0xff] %v1908_v49  ;;  %v2168_v18 = vld [vmem:[#allocation3 + $0x28] sm:$0xf] }
 0x26a   : > { %2026 = vst [vmem:[#allocation1 + $0x1] ss:$2 sm:$0xff] %v1944_v58  ;;  %v2216_v58 = vld [vmem:[#allocation3 + $0x2a] sm:$0xf] }
 0x26b   : > { %v1999_v28 = vld.sshfl [vmem:[#allocation1 + $0x10] sm:$0xff pattern:$0x75316420]  ;;  %2081 = vst.msk [vmem:[#allocation3 + $0x71] sm:$0xff] %vm357_vm0, %v2018_v19 }
 0x26c   : > { %2007 = vst [vmem:[#allocation1 + $0x10] ss:$2 sm:$0xff] %v1903_v26  ;;  %v2213_v37 = vld [vmem:[#allocation3 + $0x12] sm:$0xff]  ;;  %v2214_v52 = vld [vmem:[#allocation3 + $0x1a] sm:$0xf] }
 0x26d   : > { %2074 = vst.msk [vmem:[#allocation3 + $0x39] sm:$0xf] %vm391_vm2, %v1999_v28  ;;  %2718 = vrot.lane.b32.xlu1 %v2213_v37, %s4129_s18  ;;  %v2166_v39 = vld [vmem:[#allocation3 + $0x18] sm:$0xf] }
 0x26e   : > { %v2190_v36 = vld [vmem:[#allocation3 + $0x19] sm:$0xf] }
 0x26f   : > { %v2120_v17 = vld [vmem:[#allocation3 + $0x19] sm:$0xf] }
 0x270   : > { %2530 = vrot.lane.b32.xlu0 %v5182_v21, %s4128_s17  ;;  %v2144_v38 = vld [vmem:[#allocation3 + $0x1a] sm:$0xf] }
 0x271   : > { %2528 = vrot.lane.b32.xlu2 %v2166_v39, %s4128_s17  ;;  %v2028_v0 = vld.sshfl [vmem:[#allocation1] sm:$0xff pattern:$0x75316420] }
 0x272   : > { %2085 = vst.msk [vmem:[#allocation3 + $0x91] sm:$0xff] %vm357_vm0, %v2028_v0 }
 0x273   : > { %v2009_v16 = vld.sshfl [vmem:[#allocation1 + $0x10] sm:$0xff pattern:$0x75316420] }
 0x274   : > { %2017 = vst [vmem:[#allocation1 + $0x10] ss:$2 sm:$0xff] %v1906_v15  ;;  %v5213_v15 = vld [vmem:[#allocation3 + $0x30] sm:$0xff]  ;;  %v2241_v50 = vld [vmem:[#allocation3 + $0x38] sm:$0xf] }
 0x275   : > { %2078 = vst.msk [vmem:[#allocation3 + $0x59] sm:$0xf] %vm391_vm2, %v2009_v16  ;;  %2336 = vrot.lane.b32.xlu1 %v2118_v23, %s4126_s15  ;;  %v5244_v39 = vld [vmem:[#allocation3 + $0x32] sm:$0xff] }
 0x278   : > { %2720 = vrot.lane.b32.xlu0 %v2214_v52, %s4129_s18  ;;  %v2265_v52 = vld [vmem:[#allocation3 + $0x39] sm:$0xf] }
 0x279   : > { %2626 = vrot.lane.b32.xlu2 %v5180_v55, %s4131_s20  ;;  %v1810_v26 = vpop.f32.mrf.mxu0  ;;  %v1881_v13 = vpop.f32.mrf.mxu1 }
 0x27a   : > { %v1811_v46 = vadd.f32 %v5162_v25, %v1810_v26  ;;  %v3285_v26 = vld [vmem:[%s6153_s3 + $0x78] sm:$0xff] }
 0x27b   : > { %v2019_v60 = vld.sshfl [vmem:[#allocation1 + $0x10] sm:$0xff pattern:$0x75316420]  ;;  %3425 = vmatpush.msra.mxu2 %v3285_v26  ;;  %v3274_v26 = vld [vmem:[%s6153_s3 + $0x20] sm:$0xff] }
 0x27c   : > { %2082 = vst.msk [vmem:[#allocation3 + $0x79] sm:$0xf] %vm391_vm2, %v2019_v60  ;;  %v1882_v34 = vadd.f32 %v1881_v13, %v1811_v46  ;;  %v3284_v46 = vld [vmem:[%s6153_s3 + $0x70] sm:$0xff]  ;;  %v3283_v13 = vld [vmem:[%s6153_s3 + $0x68] sm:$0xff] }
 0x27d   : > { %2434 = vrot.lane.b32.xlu1 %v2213_v37, %s4127_s16  ;;  %v5242_v37 = vld [vmem:[#allocation3 + $0x40] sm:$0xff]  ;;  %v2122_v60 = vld [vmem:[#allocation3 + $0x29] sm:$0xf]  ;;  %3426 = vmatpush.msra.mxu2 %v3284_v46  ;;  %v3273_v46 = vld [vmem:[%s6153_s3 + $0x18] sm:$0xff] }
 0x27e   : > { %v1909_v59 = vmax.f32 %v1882_v34, 0.0 }
 0x27f   : > { %3427 = vmatpush.msra.mxu2 %v3283_v13  ;;  %v2267_v13 = vld [vmem:[#allocation3 + $0x49] sm:$0xf] }
 0x280   : > { %v1945_v11 = vrot.slane %v1909_v59, 4  ;;  %2027 = vst [vmem:[#allocation1 + $0x10] ss:$2 sm:$0xff] %v1909_v59  ;;  %2818 = vrot.lane.b32.xlu0 %v5213_v15, %s4130_s19  ;;  %v3282_v59 = vld [vmem:[%s6153_s3 + $0x60] sm:$0xff] }
 0x281   : > { %2816 = vrot.lane.b32.xlu2 %v2239_v24, %s4130_s19  ;;  %3428 = vmatpush.msra.mxu2 %v3282_v59  ;;  %v3272_v59 = vld [vmem:[%s6153_s3 + $0x10] sm:$0xff] }
 0x282   : > { %2030 = vst [vmem:[#allocation1 + $0x20] ss:$2 sm:$0xff] %v1945_v11  ;;  %v3281_v11 = vld [vmem:[%s6153_s3 + $0x58] sm:$0xff] }
 0x283   : > { %3429 = vmatpush.msra.mxu2 %v3281_v11 }
 0x285   : > { %2624 = vrot.lane.b32.xlu1 %v2190_v36, %s4131_s20  ;;  %v3280_v36 = vld [vmem:[%s6153_s3 + $0x50] sm:$0xff] }
 0x286   : > { %3430 = vmatpush.msra.mxu2 %v3280_v36 }
 0x287   : > { %v2029_v29 = vld.sshfl [vmem:[#allocation1 + $0x10] sm:$0xff pattern:$0x75316420] }
 0x288   : > { %2086 = vst.msk [vmem:[#allocation3 + $0x99] sm:$0xf] %vm391_vm2, %v2029_v29  ;;  %2340 = vrot.lane.b32.xlu0 %v2120_v17, %s4126_s15  ;;  %v2170_v29 = vld [vmem:[#allocation3 + $0x38] sm:$0xf]  ;;  %v5280_v17 = vld [vmem:[#allocation3 + $0x41] sm:$0xff] }
 0x289   : > { %2914 = vrot.lane.b32.xlu2 %v2264_v22, %s4132_s21 }
 0x28d   : > { %2722 = vrot.lane.b32.xlu1 %v5222_v20, %s4129_s18 }
 0x290   : > { %2628 = vrot.lane.b32.xlu0 %v2192_v47, %s4131_s20  ;;  %v2335_v47 = vpop.permute.xlu0 %2334 }
 0x291   : > { %2532 = vrot.lane.b32.xlu2 %v2168_v18, %s4128_s17  ;;  %v1813_v33 = vpop.f32.mrf.mxu0  ;;  %v1884_v56 = vpop.f32.mrf.mxu1  ;;  %v2194_v18 = vld [vmem:[#allocation3 + $0x39] sm:$0xf] }
 0x292   : > { %v1814_v32 = vadd.f32 %v5162_v25, %v1813_v33 }
 0x294   : > { %v1885_v53 = vadd.f32 %v1884_v56, %v1814_v32 }
 0x295   : > { %2912 = vrot.lane.b32.xlu1 %v2263_v42, %s4132_s21  ;;  %v2146_v42 = vld [vmem:[#allocation3 + $0x2a] sm:$0xf] }
 0x296   : > { %v1910_v27 = vmax.f32 %v1885_v53, 0.0  ;;  %v3279_v53 = vld [vmem:[%s6153_s3 + $0x48] sm:$0xff] }
 0x297   : > { %3431 = vmatpush.msra.mxu2 %v3279_v53  ;;  %v2431_v53 = vpop.permute.xlu1 %2430 }
 0x298   : > { %v1946_v61 = vrot.slane %v1910_v27, 4  ;;  %2031 = vst [vmem:[#allocation1 + $0x21] ss:$2 sm:$0xff] %v1910_v27  ;;  %2342 = vrot.lane.b32.xlu0 %v5180_v55, %s4126_s15 }
 0x299   : > { %2820 = vrot.lane.b32.xlu2 %v2241_v50, %s4130_s19 }
 0x29a   : > { %2032 = vst [vmem:[#allocation1 + $0x30] ss:$2 sm:$0xff] %v1946_v61  ;;  %v3278_v61 = vld [vmem:[%s6153_s3 + $0x40] sm:$0xff] }
 0x29b   : > { %3432 = vmatpush.msra.mxu2 %v3278_v61 }
 0x29d   : > { %2436 = vrot.lane.b32.xlu1 %v2144_v38, %s4127_s16 }
 0x29f   : > { %v2033_v49 = vld.sshfl [vmem:[#allocation1 + $0x20] sm:$0xff pattern:$0x75316420] }
 0x2a0   : > { %2087 = vst.msk [vmem:[#allocation3 + $0xa1] sm:$0xff] %vm357_vm0, %v2033_v49  ;;  %2534 = vrot.lane.b32.xlu0 %v5213_v15, %s4128_s17  ;;  %v2243_v49 = vld [vmem:[#allocation3 + $0x48] sm:$0xf] }
 0x2a1   : > { %2438 = vrot.lane.b32.xlu2 %v5222_v20, %s4127_s16  ;;  %v2034_v48 = vld.sshfl [vmem:[#allocation1 + $0x30] sm:$0xff pattern:$0x75316420] }
 0x2a2   : > { %2088 = vst.msk [vmem:[#allocation3 + $0xa9] sm:$0xf] %vm391_vm2, %v2034_v48  ;;  %v5297_v48 = vld [vmem:[#allocation3 + $0x42] sm:$0xff] }
 0x2a5   : > { %v1816_v55 = vpop.f32.mrf.mxu0  ;;  %2724 = vrot.lane.b32.xlu1 %v2216_v58, %s4129_s18  ;;  %v3277_v58 = vld [vmem:[%s6153_s3 + $0x38] sm:$0xff] }
 0x2a6   : > { %v1817_v19 = vadd.f32 %v5162_v25, %v1816_v55  ;;  %v1887_v28 = vpop.f32.mrf.mxu1  ;;  %v3276_v55 = vld [vmem:[%s6153_s3 + $0x30] sm:$0xff]  ;;  %3433 = vmatpush.msra.mxu2 %v3277_v58 }
 0x2a8   : > { %v1888_v0 = vadd.f32 %v1887_v28, %v1817_v19  ;;  %2822 = vrot.lane.b32.xlu0 %v5242_v37, %s4130_s19  ;;  %3434 = vmatpush.msra.mxu2 %v3276_v55 }
 0x2a9   : > { %2726 = vrot.lane.b32.xlu2 %v5244_v39, %s4129_s18 }
 0x2aa   : > { %v1911_v23 = vmax.f32 %v1888_v0, 0.0 }
 0x2ac   : > { %v1947_v16 = vrot.slane %v1911_v23, 4  ;;  %2035 = vst [vmem:[#allocation1] ss:$2 sm:$0xff] %v1911_v23  ;;  %v3275_v23 = vld [vmem:[%s6153_s3 + $0x28] sm:$0xff] }
 0x2ad   : > { %2916 = vrot.lane.b32.xlu1 %v2265_v52, %s4132_s21  ;;  %v3286_v52 = vld [vmem:[%s6153_s3 + $0x80] sm:$0xff]  ;;  %3435 = vmatpush.msra.mxu2 %v3275_v23 }
 0x2ae   : > { %2036 = vst [vmem:[#allocation1 + $0x1] ss:$2 sm:$0xff] %v1947_v16  ;;  %v3287_v16 = vld [vmem:[%s6153_s3 + $0x88] sm:$0xff] }
 0x2af   : > { %3510 = vmatpush.msra.mxu3 %v3287_v16  ;;  %3436 = vmatpush.msra.mxu2 %v3274_v26  ;;  %v5354_v16 = vld [vmem:[#allocation3 + $0x50] sm:$0xff] }
 0x2b0   : > { %2346 = vrot.lane.b32.xlu0 %v2264_v22, %s4126_s15 }
 0x2b1   : > { %2344 = vrot.lane.b32.xlu2 %v2122_v60, %s4126_s15  ;;  %3511 = vmatpush.msra.mxu3 %v3286_v52  ;;  %v5327_v60 = vld [vmem:[#allocation3 + $0x51] sm:$0xff] }
 0x2b2   : > { %3437 = vmatpush.msra.mxu2 %v3273_v46  ;;  %v2220_v46 = vld [vmem:[#allocation3 + $0x4a] sm:$0xf] }
 0x2b3   : > { %v5262_v34 = vpop.permute.xlu2 %2526 }
 0x2b4   : > { %3438 = vmatpush.msra.mxu2 %v3272_v59 }
 0x2b5   : > { %v2038_v24 = vld.sshfl [vmem:[#allocation1] sm:$0xff pattern:$0x75316420]  ;;  %2630 = vrot.lane.b32.xlu1 %v2264_v22, %s4131_s20 }
 0x2b6   : > { %2089 = vst.msk [vmem:[#allocation3 + $0xb1] sm:$0xff] %vm357_vm0, %v2038_v24 }
 0x2b8   : > { %2536 = vrot.lane.b32.xlu0 %v2170_v29, %s4128_s17  ;;  %v3271_v29 = vld [vmem:[%s6153_s3 + $0x8] sm:$0xff] }
 0x2b9   : > { %2442 = vrot.lane.b32.xlu2 %v5244_v39, %s4127_s16  ;;  %3439 = vmatpush.msra.mxu2 %v3271_v29  ;;  %v3198_v29 = vrot.slane %v5222_v20, 4 }
 0x2bb   : > { %v5278_v22 = vpop.permute.xlu2 %2814 }
 0x2bd   : > { %2918 = vrot.lane.b32.xlu1 %v5280_v17, %s4132_s21 }
 0x2c0   : > { %2634 = vrot.lane.b32.xlu0 %v5280_v17, %s4131_s20 }
 0x2c1   : > { %2632 = vrot.lane.b32.xlu2 %v2194_v18, %s4131_s20  ;;  %v2218_v18 = vld [vmem:[#allocation3 + $0x3a] sm:$0xf] }
 0x2c2   : > { %v1819_v32 = vpop.f32.mrf.mxu0  ;;  %v1890_v27 = vpop.f32.mrf.mxu1 }
 0x2c3   : > { %v5287_v33 = vpop.permute.xlu2 %2338  ;;  %v1820_v56 = vadd.f32 %v5162_v25, %v1819_v32  ;;  %v3270_v32 = vld [vmem:[%s6153_s3] sm:$0xff] }
 0x2c4   : > { %3440 = vmatpush.msra.mxu2 %v3270_v32 }
 0x2c5   : > { %2440 = vrot.lane.b32.xlu1 %v2146_v42, %s4127_s16  ;;  %v1891_v50 = vadd.f32 %v1890_v27, %v1820_v56  ;;  %v2093_v56 = vld [vmem:[#allocation3] sm:$0xff]  ;;  %v2172_v42 = vld [vmem:[#allocation3 + $0x48] sm:$0xf]  ;;  %v2148_v27 = vld [vmem:[#allocation3 + $0x3a] sm:$0xf] }
 0x2c7   : > { %v1912_v38 = vmax.f32 %v1891_v50, 0.0  ;;  %v2982_v50 = vsel %vm357_vm0, %v2093_v56, %v2335_v47 }
 0x2c8   : > { %2824 = vrot.lane.b32.xlu0 %v2243_v49, %s4130_s19  ;;  %v3006_v55 = vsel %vm1328_vm4, %v2982_v50, %v2431_v53 }
 0x2c9   : > { %2730 = vrot.lane.b32.xlu2 %v5297_v48, %s4129_s18  ;;  %v1948_v19 = vrot.slane %v1912_v38, 4  ;;  %2037 = vst [vmem:[#allocation1 + $0x10] ss:$2 sm:$0xff] %v1912_v38  ;;  %v3030_v47 = vsel %vm1353_vm5, %v3006_v55, %v5262_v34  ;;  %v2196_v55 = vld [vmem:[#allocation3 + $0x49] sm:$0xf] }
 0x2ca   : > { %v2623_v28 = vpop.permute.xlu0 %2622 }
 0x2cb   : > { %v5308_v0 = vpop.permute.xlu2 %2528  ;;  %2040 = vst [vmem:[#allocation1 + $0x20] ss:$2 sm:$0xff] %v1948_v19  ;;  %v3054_v26 = vsel %vm1378_vm6, %v3030_v47, %v2623_v28 }
 0x2cd   : > { %2538 = vrot.lane.b32.xlu1 %v5242_v37, %s4128_s17 }
 0x2d0   : > { %2922 = vrot.lane.b32.xlu0 %v5327_v60, %s4132_s21  ;;  %v2039_v24 = vld.sshfl [vmem:[#allocation1 + $0x10] sm:$0xff pattern:$0x75316420] }
 0x2d1   : > { %2920 = vrot.lane.b32.xlu2 %v2267_v13, %s4132_s21  ;;  %2090 = vst.msk [vmem:[#allocation3 + $0xb9] sm:$0xf] %vm391_vm2, %v2039_v24  ;;  %v2245_v13 = vld [vmem:[#allocation3 + $0x58] sm:$0xf] }
 0x2d2   : > { %v2911_v11 = vpop.permute.xlu0 %2910 }
 0x2d3   : > { %v5336_v36 = vpop.permute.xlu2 %2626 }
 0x2d5   : > { %2728 = vrot.lane.b32.xlu1 %v2218_v18, %s4129_s18 }
 0x2d8   : > { %2540 = vrot.lane.b32.xlu0 %v2172_v42, %s4128_s17 }
 0x2d9   : > { %2444 = vrot.lane.b32.xlu2 %v2148_v27, %s4127_s16  ;;  %v1822_v61 = vpop.f32.mrf.mxu0  ;;  %v1893_v19 = vpop.f32.mrf.mxu1  ;;  %v2124_v27 = vld [vmem:[#allocation3 + $0x39] sm:$0xf] }
 0x2da   : > { %v1823_v38 = vadd.f32 %v5162_v25, %v1822_v61  ;;  %v5349_v49 = vpop.permute.xlu0 %2432  ;;  %v2269_v61 = vld [vmem:[#allocation3 + $0x59] sm:$0xf] }
 0x2db   : > { %v5351_v58 = vpop.permute.xlu2 %2816 }
 0x2dc   : > { %v1894_v23 = vadd.f32 %v1893_v19, %v1823_v38 }
 0x2dd   : > { %2826 = vrot.lane.b32.xlu1 %v5354_v16, %s4130_s19 }
 0x2de   : > { %v1913_v52 = vmax.f32 %v1894_v23, 0.0 }
 0x2df   : > { %v2719_v25 = vpop.permute.xlu1 %2718 }
 0x2e0   : > { %v1949_v59 = vrot.slane %v1913_v52, 4  ;;  %2041 = vst [vmem:[#allocation1 + $0x21] ss:$2 sm:$0xff] %v1913_v52  ;;  %v3078_v24 = vsel %vm1403_vm7, %v3054_v26, %v2719_v25  ;;  %2828 = vrot.lane.b32.xlu0 %v2245_v13, %s4130_s19  ;;  %v5380_v52 = vld [vmem:[#allocation3 + $0x52] sm:$0xff] }
 0x2e1   : > { %2732 = vrot.lane.b32.xlu2 %v2220_v46, %s4129_s18  ;;  %v3102_v18 = vsel %vm1428_vm8, %v3078_v24, %v5278_v22  ;;  %v2094_v46 = vld [vmem:[#allocation3 + $0x8] sm:$0xf] }
 0x2e2   : > { %2042 = vst [vmem:[#allocation1 + $0x30] ss:$2 sm:$0xff] %v1949_v59  ;;  %v3126_v34 = vsel %vm1453_vm9, %v3102_v18, %v2911_v11  ;;  %v2531_v28 = vpop.permute.xlu0 %2530  ;;  %v5390_v59 = vld [vmem:[#allocation3 + $0x61] sm:$0xff]  ;;  %v2126_v24 = vld [vmem:[#allocation3 + $0x49] sm:$0xf] }
 0x2e3   : > { %v2915_v32 = vpop.permute.xlu2 %2914  ;;  %v3222_v56 = vsel %vm1550_vm10, %v3126_v34, %v3198_v29  ;;  %v3223_v53 = vsel %vm1550_vm10, %v3198_v29, %v3126_v34  ;;  %v2984_v29 = vsel %vm357_vm0, %v5170_v41, %v5287_v33 }
 0x2e4   : > { %v3224_v42 = vrot.slane %v3223_v53, 4  ;;  %3292 = vst [vmem:[#allocation1] ss:$2 sm:$0xff] %v3222_v56 }
 0x2e5   : > { %2348 = vrot.lane.b32.xlu1 %v2124_v27, %s4126_s15  ;;  %v2150_v27 = vld [vmem:[#allocation3 + $0x4a] sm:$0xf] }
 0x2e6   : > { %3294 = vst [vmem:[#allocation1 + $0x1] ss:$2 sm:$0xff] %v3224_v42 }
 0x2e7   : > { %v2043_v50 = vld.sshfl [vmem:[#allocation1 + $0x20] sm:$0xff pattern:$0x75316420]  ;;  %v2337_v20 = vpop.permute.xlu1 %2336 }
 0x2e8   : > { %2091 = vst.msk [vmem:[#allocation3 + $0xc1] sm:$0xff] %vm357_vm0, %v2043_v50  ;;  %2446 = vrot.lane.b32.xlu0 %v5297_v48, %s4127_s16  ;;  %v2983_v34 = vsel %vm357_vm0, %v2094_v46, %v2337_v20  ;;  %v5424_v46 = vld [vmem:[#allocation3 + $0x60] sm:$0xff] }
 0x2e9   : > { %2924 = vrot.lane.b32.xlu2 %v2269_v61, %s4132_s21  ;;  %v2044_v22 = vld.sshfl [vmem:[#allocation1 + $0x30] sm:$0xff pattern:$0x75316420]  ;;  %v3007_v42 = vsel %vm1328_vm4, %v2983_v34, %v5349_v49  ;;  %v3200_v61 = vrot.slane %v5244_v39, 4 }
 0x2ea   : > { %v2721_v11 = vpop.permute.xlu0 %2720  ;;  %2092 = vst.msk [vmem:[#allocation3 + $0xc9] sm:$0xf] %vm391_vm2, %v2044_v22  ;;  %v3031_v50 = vsel %vm1353_vm5, %v3007_v42, %v5308_v0  ;;  %v5439_v42 = vld [vmem:[#allocation3 + $0x62] sm:$0xff] }
 0x2eb   : > { %v5375_v38 = vpop.permute.xlu2 %2532 }
 0x2ed   : > { %2636 = vrot.lane.b32.xlu1 %v2196_v55, %s4131_s20  ;;  %v3307_v19 = vld.sshfl [vmem:[#allocation1] sm:$0xff pattern:$0x75316420]  ;;  %v3308_v23 = vld.sshfl [vmem:[#allocation1 + $0x8] sm:$0xff pattern:$0x75316420] }
 0x2ee   : > { %3441 = vmatmul.f32.vlgmr.msra.gmra.mxu2 %v3307_v19  ;;  %4065 = vmatmul.msk.f32.vlgmr.msra.gmra.mxu3 %vm357_vm0, %v3308_v23 }
 0x2ef   : > { %v2435_v47 = vpop.permute.xlu1 %2434 }
 0x2f0   : > { %2734 = vrot.lane.b32.xlu0 %v5380_v52, %s4129_s18  ;;  %v3008_v18 = vsel %vm1328_vm4, %v2984_v29, %v2435_v47 }
 0x2f1   : > { %2638 = vrot.lane.b32.xlu2 %v5327_v60, %s4131_s20  ;;  %v3032_v53 = vsel %vm1353_vm5, %v3008_v18, %v2531_v28 }
 0x2f2   : > { %v2819_v26 = vpop.permute.xlu0 %2818  ;;  %v3056_v41 = vsel %vm1378_vm6, %v3032_v53, %v5336_v36  ;;  %v2222_v53 = vld [vmem:[#allocation3 + $0x5a] sm:$0xf] }
 0x2f3   : > { %v5386_v25 = vpop.permute.xlu2 %2820 }
 0x2f5   : > { %2350 = vrot.lane.b32.xlu1 %v5280_v17, %s4126_s15 }
 0x2f7   : > { %v2625_v13 = vpop.permute.xlu1 %2624 }
 0x2f8   : > { %2352 = vrot.lane.b32.xlu0 %v2126_v24, %s4126_s15  ;;  %v3055_v49 = vsel %vm1378_vm6, %v3031_v50, %v2625_v13  ;;  %v2287_v24 = vld [vmem:[#allocation3 + $0x2a] sm:$0xf]  ;;  %v2198_v13 = vld [vmem:[#allocation3 + $0x59] sm:$0xf] }
 0x2f9   : > { %2926 = vrot.lane.b32.xlu2 %v5390_v59, %s4132_s21  ;;  %v3079_v23 = vsel %vm1403_vm7, %v3055_v49, %v2721_v11  ;;  %v2174_v49 = vld [vmem:[#allocation3 + $0x58] sm:$0xf] }
 0x2fa   : > { %v2341_v56 = vpop.permute.xlu0 %2340  ;;  %v3103_v39 = vsel %vm1428_vm8, %v3079_v23, %v5351_v58 }
 0x2fb   : > { %v5400_v17 = vpop.permute.xlu2 %2438 }
 0x2fd   : > { %2542 = vrot.lane.b32.xlu1 %v5354_v16, %s4128_s17 }
 0x2ff   : > { %v2723_v33 = vpop.permute.xlu1 %2722 }
 0x300   : > { %v3080_v20 = vsel %vm1403_vm7, %v3056_v41, %v2723_v33  ;;  %2450 = vrot.lane.b32.xlu0 %v5380_v52, %s4127_s16 }
 0x301   : > { %2448 = vrot.lane.b32.xlu2 %v2150_v27, %s4127_s16  ;;  %v3104_v28 = vsel %vm1428_vm8, %v3080_v20, %v2819_v26  ;;  %v2096_v20 = vld [vmem:[#allocation3 + $0x18] sm:$0xf] }
 0x302   : > { %v3128_v36 = vsel %vm1453_vm9, %v3104_v28, %v2915_v32  ;;  %v2629_v22 = vpop.permute.xlu0 %2628  ;;  %v3199_v32 = vrot.slane %v2287_v24, 4 }
 0x303   : > { %v5419_v55 = vpop.permute.xlu2 %2726  ;;  %v3226_v0 = vsel %vm1550_vm10, %v3128_v36, %v3200_v61  ;;  %v3227_v19 = vsel %vm1550_vm10, %v3200_v61, %v3128_v36  ;;  %v5450_v36 = vld [vmem:[#allocation3 + $0x70] sm:$0xff] }
 0x304   : > { %v3228_v47 = vrot.slane %v3227_v19, 4  ;;  %3298 = vst [vmem:[#allocation1 + $0x11] ss:$2 sm:$0xff] %v3226_v0  ;;  %v2271_v0 = vld [vmem:[#allocation3 + $0x69] sm:$0xf] }
 0x305   : > { %2830 = vrot.lane.b32.xlu1 %v5424_v46, %s4130_s19 }
 0x306   : > { %3300 = vst [vmem:[#allocation1 + $0x20] ss:$2 sm:$0xff] %v3228_v47 }
 0x307   : > { %v2913_v26 = vpop.permute.xlu1 %2912 }
 0x308   : > { %v3127_v29 = vsel %vm1453_vm9, %v3103_v39, %v2913_v26  ;;  %2640 = vrot.lane.b32.xlu0 %v2198_v13, %s4131_s20  ;;  %v2289_v39 = vld [vmem:[#allocation3 + $0x3a] sm:$0xf] }
 0x309   : > { %2546 = vrot.lane.b32.xlu2 %v5424_v46, %s4128_s17  ;;  %v3225_v11 = vsel %vm1550_vm10, %v3127_v29, %v3199_v32  ;;  %v3201_v32 = vrot.slane %v2289_v39, 4  ;;  %v2152_v13 = vld [vmem:[#allocation3 + $0x5a] sm:$0xf] }
 0x30a   : > { %3296 = vst [vmem:[#allocation1 + $0x10] ss:$2 sm:$0xff] %v3225_v11  ;;  %v2343_v18 = vpop.permute.xlu0 %2342  ;;  %v2128_v29 = vld [vmem:[#allocation3 + $0x59] sm:$0xf] }
 0x30b   : > { %v5435_v34 = vpop.permute.xlu2 %2344 }
 0x30d   : > { %2354 = vrot.lane.b32.xlu1 %v5327_v60, %s4126_s15  ;;  %v2985_v60 = vsel %vm357_vm0, %v2096_v20, %v2341_v56 }
 0x30f   : > { %v2437_v58 = vpop.permute.xlu1 %2436 }
 0x310   : > { %2738 = vrot.lane.b32.xlu0 %v5439_v42, %s4129_s18  ;;  %v3009_v28 = vsel %vm1328_vm4, %v2985_v60, %v2437_v58  ;;  %v2224_v60 = vld [vmem:[#allocation3 + $0x6a] sm:$0xf] }
 0x311   : > { %2736 = vrot.lane.b32.xlu2 %v2222_v53, %s4129_s18  ;;  %v3309_v41 = vld.sshfl [vmem:[#allocation1 + $0x10] sm:$0xff pattern:$0x75316420]  ;;  %v3310_v33 = vld.sshfl [vmem:[#allocation1 + $0x18] sm:$0xff pattern:$0x75316420]  ;;  %v3033_v19 = vsel %vm1353_vm5, %v3009_v28, %v5375_v38 }
 0x312   : > { %3444 = vmatmul.f32.gmra.mxu2 %v3309_v41  ;;  %4066 = vmatmul.msk.f32.gmra.mxu3 %vm357_vm0, %v3310_v33  ;;  %v2535_v27 = vpop.permute.xlu0 %2534  ;;  %v3057_v56 = vsel %vm1378_vm6, %v3033_v19, %v2629_v22  ;;  %v2986_v41 = vsel %vm357_vm0, %v5182_v21, %v2343_v18  ;;  %v2247_v33 = vld [vmem:[#allocation3 + $0x68] sm:$0xf] }
 0x313   : > { %v5445_v50 = vpop.permute.xlu2 %2442 }
 0x315   : > { %2544 = vrot.lane.b32.xlu1 %v2174_v49, %s4128_s17  ;;  %v2200_v49 = vld [vmem:[#allocation3 + $0x69] sm:$0xf] }
 0x317   : > { %v2725_v61 = vpop.permute.xlu1 %2724 }
 0x318   : > { %2928 = vrot.lane.b32.xlu0 %v2271_v0, %s4132_s21  ;;  %v3081_v24 = vsel %vm1403_vm7, %v3057_v56, %v2725_v61  ;;  %v2272_v56 = vld [vmem:[#allocation3 + $0x71] sm:$0xff] }
 0x319   : > { %2834 = vrot.lane.b32.xlu2 %v5450_v36, %s4130_s19  ;;  %v3105_v38 = vsel %vm1428_vm8, %v3081_v24, %v5386_v25  ;;  %v3010_v25 = vsel %vm1328_vm4, %v2986_v41, %v5400_v17 }
 0x31a   : > { %v2823_v23 = vpop.permute.xlu0 %2822  ;;  %v3034_v28 = vsel %vm1353_vm5, %v3010_v25, %v2535_v27  ;;  %v3202_v27 = vrot.slane %v5297_v48, 4  ;;  %v2176_v48 = vld [vmem:[#allocation3 + $0x68] sm:$0xf]  ;;  %v2249_v25 = vld [vmem:[#allocation3 + $0x78] sm:$0xf] }
 0x31b   : > { %v5457_v47 = vpop.permute.xlu2 %2632 }
 0x31d   : > { %2642 = vrot.lane.b32.xlu1 %v5390_v59, %s4131_s20 }
 0x31f   : > { %v2917_v26 = vpop.permute.xlu1 %2916 }
 0x320   : > { %v3129_v11 = vsel %vm1453_vm9, %v3105_v38, %v2917_v26  ;;  %2452 = vrot.lane.b32.xlu0 %v2152_v13, %s4127_s16 }
 0x321   : > { %2356 = vrot.lane.b32.xlu2 %v2128_v29, %s4126_s15  ;;  %v3229_v22 = vsel %vm1550_vm10, %v3129_v11, %v3201_v32  ;;  %v2273_v32 = vld [vmem:[#allocation3 + $0x79] sm:$0xf] }
 0x322   : > { %3302 = vst [vmem:[#allocation1 + $0x21] ss:$2 sm:$0xff] %v3229_v22  ;;  %v2347_v58 = vpop.permute.xlu0 %2346 }
 0x323   : > { %v5469_v53 = vpop.permute.xlu2 %2730 }
 0x325   : > { %2832 = vrot.lane.b32.xlu1 %v2247_v33, %s4130_s19 }
 0x327   : > { %v2631_v20 = vpop.permute.xlu1 %2630 }
 0x328   : > { %2740 = vrot.lane.b32.xlu0 %v2224_v60, %s4129_s18  ;;  %v3058_v61 = vsel %vm1378_vm6, %v3034_v28, %v2631_v20  ;;  %v2098_v20 = vld [vmem:[#allocation3 + $0x28] sm:$0xf] }
 0x329   : > { %2644 = vrot.lane.b32.xlu2 %v2200_v49, %s4131_s20  ;;  %v3311_v0 = vld.sshfl [vmem:[#allocation1 + $0x20] sm:$0xff pattern:$0x75316420]  ;;  %v3312_v19 = vld.sshfl [vmem:[#allocation1 + $0x28] sm:$0xff pattern:$0x75316420]  ;;  %v3082_v17 = vsel %vm1403_vm7, %v3058_v61, %v5419_v55  ;;  %v2987_v61 = vsel %vm357_vm0, %v2098_v20, %v5435_v34 }
 0x32a   : > { %3447 = vmatmul.f32.gmra.mxu2 %v3311_v0  ;;  %4067 = vmatmul.msk.f32.gmra.mxu3 %vm357_vm0, %v3312_v19  ;;  %v2537_v21 = vpop.permute.xlu0 %2536  ;;  %v3106_v39 = vsel %vm1428_vm8, %v3082_v17, %v2823_v23  ;;  %v5502_v49 = vld [vmem:[#allocation3 + $0x80] sm:$0xff]  ;;  %v2291_v34 = vld [vmem:[#allocation3 + $0x4a] sm:$0xf] }
 0x32b   : > { %v2921_v18 = vpop.permute.xlu2 %2920  ;;  %v5504_v28 = vld [vmem:[#allocation3 + $0x81] sm:$0xff] }
 0x32d   : > { %2930 = vrot.lane.b32.xlu1 %v2272_v56, %s4132_s21 }
 0x32f   : > { %v2919_v24 = vpop.permute.xlu1 %2918 }
 0x330   : > { %v3130_v26 = vsel %vm1453_vm9, %v3106_v39, %v2919_v24  ;;  %2932 = vrot.lane.b32.xlu0 %v2273_v32, %s4132_s21  ;;  %v2988_v24 = vsel %vm357_vm0, %v5213_v15, %v2347_v58  ;;  %v3203_v58 = vrot.slane %v2291_v34, 4  ;;  %v2100_v34 = vld [vmem:[#allocation3 + $0x38] sm:$0xf] }
 0x331   : > { %2358 = vrot.lane.b32.xlu2 %v5390_v59, %s4126_s15  ;;  %v3230_v38 = vsel %vm1550_vm10, %v3130_v26, %v3202_v27  ;;  %v3231_v55 = vsel %vm1550_vm10, %v3202_v27, %v3130_v26  ;;  %v2154_v26 = vld [vmem:[#allocation3 + $0x6a] sm:$0xf] }
 0x332   : > { %v3232_v13 = vrot.slane %v3231_v55, 4  ;;  %3304 = vst [vmem:[#allocation1 + $0x30] ss:$2 sm:$0xff] %v3230_v38  ;;  %v2635_v29 = vpop.permute.xlu0 %2634  ;;  %v3012_v38 = vsel %vm1328_vm4, %v2988_v24, %v5445_v50  ;;  %v2226_v24 = vld [vmem:[#allocation3 + $0x7a] sm:$0xf] }
 0x333   : > { %v5492_v11 = vpop.permute.xlu2 %2444 }
 0x334   : > { %3306 = vst [vmem:[#allocation1 + $0x31] ss:$2 sm:$0xff] %v3232_v13 }
 0x335   : > { %2548 = vrot.lane.b32.xlu1 %v2176_v48, %s4128_s17 }
 0x337   : > { %v2441_v23 = vpop.permute.xlu1 %2440 }
 0x338   : > { %2646 = vrot.lane.b32.xlu0 %v2272_v56, %s4131_s20  ;;  %v3011_v0 = vsel %vm1328_vm4, %v2987_v61, %v2441_v23 }
 0x339   : > { %2550 = vrot.lane.b32.xlu2 %v5450_v36, %s4128_s17  ;;  %v3035_v27 = vsel %vm1353_vm5, %v3011_v0, %v2537_v21 }
 0x33a   : > { %v2825_v59 = vpop.permute.xlu0 %2824  ;;  %v3059_v32 = vsel %vm1378_vm6, %v3035_v27, %v5457_v47  ;;  %v2130_v27 = vld [vmem:[#allocation3 + $0x69] sm:$0xf] }
 0x33b   : > { %v5498_v22 = vpop.permute.xlu2 %2732  ;;  %v3313_v41 = vld.sshfl [vmem:[#allocation1 + $0x30] sm:$0xff pattern:$0x75316420]  ;;  %v3314_v33 = vld.sshfl [vmem:[#allocation1 + $0x38] sm:$0xff pattern:$0x75316420] }
 0x33c   : > { %3450 = vmatmul.f32.gmra.mxu2 %v3313_v41  ;;  %4068 = vmatmul.msk.f32.gmra.mxu3 %vm357_vm0, %v3314_v33  ;;  %v5534_v41 = vld [vmem:[#allocation3 + $0x72] sm:$0xff] }
 0x33d   : > { %2836 = vrot.lane.b32.xlu1 %v2249_v25, %s4130_s19  ;;  %v3204_v25 = vrot.slane %v5380_v52, 4 }
 0x33f   : > { %v2539_v60 = vpop.permute.xlu1 %2538 }
 0x340   : > { %2934 = vrot.lane.b32.xlu0 %v5504_v28, %s4132_s21  ;;  %v3036_v15 = vsel %vm1353_vm5, %v3012_v38, %v2539_v60 }
 0x341   : > { %2838 = vrot.lane.b32.xlu2 %v5502_v49, %s4130_s19  ;;  %v3060_v50 = vsel %vm1378_vm6, %v3036_v15, %v2635_v29 }
 0x342   : > { %v2923_v19 = vpop.permute.xlu0 %2922  ;;  %v3084_v33 = vsel %vm1403_vm7, %v3060_v50, %v5469_v53 }
 0x343   : > { %v5513_v17 = vpop.permute.xlu2 %2924 }
 0x345   : > { %2454 = vrot.lane.b32.xlu1 %v5439_v42, %s4127_s16 }
 0x347   : > { %v2729_v39 = vpop.permute.xlu1 %2728 }
 0x348   : > { %v3083_v55 = vsel %vm1403_vm7, %v3059_v32, %v2729_v39  ;;  %2456 = vrot.lane.b32.xlu0 %v2154_v26, %s4127_s16 }
 0x349   : > { %2362 = vrot.lane.b32.xlu2 %v2272_v56, %s4126_s15  ;;  %v3107_v21 = vsel %vm1428_vm8, %v3083_v55, %v2825_v59  ;;  %v2178_v59 = vld [vmem:[#allocation3 + $0x78] sm:$0xf] }
 0x34a   : > { %v3131_v13 = vsel %vm1453_vm9, %v3107_v21, %v2921_v18  ;;  %v2541_v48 = vpop.permute.xlu0 %2540 }
 0x34b   : > { %v5530_v23 = vpop.permute.xlu2 %2638  ;;  %v3233_v47 = vsel %vm1550_vm10, %v3131_v13, %v3203_v58  ;;  %v2293_v58 = vld [vmem:[#allocation3 + $0x5a] sm:$0xf]  ;;  %v5563_v13 = vld [vmem:[#allocation3 + $0x90] sm:$0xff] }
 0x34c   : > { %3315 = vst [vmem:[#allocation1] ss:$2 sm:$0xff] %v3233_v47  ;;  %v2251_v47 = vld [vmem:[#allocation3 + $0x88] sm:$0xf] }
 0x34d   : > { %2742 = vrot.lane.b32.xlu1 %v5534_v41, %s4129_s18 }
 0x34f   : > { %v2827_v56 = vpop.permute.xlu1 %2826 }
 0x350   : > { %v3108_v18 = vsel %vm1428_vm8, %v3084_v33, %v2827_v56  ;;  %2554 = vrot.lane.b32.xlu0 %v5502_v49, %s4128_s17  ;;  %v3205_v33 = vrot.slane %v2293_v58, 4 }
 0x351   : > { %2552 = vrot.lane.b32.xlu2 %v2178_v59, %s4128_s17  ;;  %v3132_v29 = vsel %vm1453_vm9, %v3108_v18, %v2923_v19 }
 0x352   : > { %v3234_v20 = vsel %vm1550_vm10, %v3132_v29, %v3204_v25  ;;  %v3235_v60 = vsel %vm1550_vm10, %v3204_v25, %v3132_v29  ;;  %v2829_v0 = vpop.permute.xlu0 %2828  ;;  %v2202_v29 = vld [vmem:[#allocation3 + $0x79] sm:$0xf] }
 0x353   : > { %v5548_v61 = vpop.permute.xlu2 %2926  ;;  %v3236_v53 = vrot.slane %v3235_v60, 4  ;;  %3316 = vst [vmem:[#allocation1 + $0x1] ss:$2 sm:$0xff] %v3234_v20  ;;  %v5578_v60 = vld [vmem:[#allocation3 + $0x91] sm:$0xff] }
 0x355   : > { %3317 = vst [vmem:[#allocation1 + $0x10] ss:$2 sm:$0xff] %v3236_v53  ;;  %2360 = vrot.lane.b32.xlu1 %v2130_v27, %s4126_s15  ;;  %v2132_v53 = vld [vmem:[#allocation3 + $0x79] sm:$0xf] }
 0x357   : > { %v2349_v52 = vpop.permute.xlu1 %2348 }
 0x358   : > { %2744 = vrot.lane.b32.xlu0 %v2226_v24, %s4129_s18  ;;  %v2989_v19 = vsel %vm357_vm0, %v2100_v34, %v2349_v52  ;;  %v5597_v34 = vld [vmem:[%s6154_s4] ss:$0 sm:$0xff] }
 0x359   : > { %2650 = vrot.lane.b32.xlu2 %v5504_v28, %s4131_s20  ;;  %v3013_v55 = vsel %vm1328_vm4, %v2989_v19, %v5492_v11 }
 0x35a   : > { %v3323_v39 = vld.sshfl [vmem:[#allocation1] sm:$0xff pattern:$0x75316420]  ;;  %v3324_v32 = vld.sshfl [vmem:[#allocation1 + $0x8] sm:$0xff pattern:$0x75316420]  ;;  %v2447_v38 = vpop.permute.xlu0 %2446  ;;  %v3037_v21 = vsel %vm1353_vm5, %v3013_v55, %v2541_v48 }
 0x35b   : > { %v5555_v26 = vpop.permute.xlu2 %2448  ;;  %3453 = vmatmul.f32.gmra.mxu2 %v3323_v39  ;;  %4069 = vmatmul.msk.f32.gmra.mxu3 %vm357_vm0, %v3324_v32  ;;  %v2180_v39 = vld [vmem:[#allocation3 + $0x88] sm:$0xf] }
 0x35c   : > { %v2204_v32 = vld [vmem:[#allocation3 + $0x89] sm:$0xf] }
 0x35d   : > { %2458 = vrot.lane.b32.xlu1 %v5534_v41, %s4127_s16 }
 0x35f   : > { %v2637_v15 = vpop.permute.xlu1 %2636 }
 0x360   : > { %v3061_v50 = vsel %vm1378_vm6, %v3037_v21, %v2637_v15  ;;  %2842 = vrot.lane.b32.xlu0 %v5563_v13, %s4130_s19 }
 0x361   : > { %2840 = vrot.lane.b32.xlu2 %v2251_v47, %s4130_s19  ;;  %v3085_v11 = vsel %vm1403_vm7, %v3061_v50, %v5498_v22 }
 0x362   : > { %v3109_v56 = vsel %vm1428_vm8, %v3085_v11, %v2829_v0  ;;  %v2735_v18 = vpop.permute.xlu0 %2734 }
 0x363   : > { %v5572_v59 = vpop.permute.xlu2 %2546  ;;  %v3133_v48 = vsel %vm1453_vm9, %v3109_v56, %v5513_v17  ;;  %v5587_v17 = vld [vmem:[#allocation3 + $0x82] sm:$0xff] }
 0x364   : > { %v3237_v25 = vsel %vm1550_vm10, %v3133_v48, %v3205_v33  ;;  %v2275_v33 = vld [vmem:[#allocation3 + $0x89] sm:$0xf] }
 0x365   : > { %3318 = vst [vmem:[#allocation1 + $0x11] ss:$2 sm:$0xff] %v3237_v25  ;;  %2648 = vrot.lane.b32.xlu1 %v2202_v29, %s4131_s20  ;;  %v2253_v25 = vld [vmem:[#allocation3 + $0x98] sm:$0xf]  ;;  %v3206_v29 = vrot.slane %v5439_v42, 4 }
 0x366   : > { %v2156_v42 = vld [vmem:[#allocation3 + $0x7a] sm:$0xf] }
 0x367   : > { %v2351_v20 = vpop.permute.xlu1 %2350 }
 0x368   : > { %2364 = vrot.lane.b32.xlu0 %v2132_v53, %s4126_s15  ;;  %v2990_v24 = vsel %vm357_vm0, %v5242_v37, %v2351_v20 }
 0x369   : > { %2938 = vrot.lane.b32.xlu2 %v5578_v60, %s4132_s21  ;;  %v3014_v55 = vsel %vm1328_vm4, %v2990_v24, %v2447_v38 }
 0x36a   : > { %v5585_v0 = vpop.permute.xlu0 %2352 }
 0x36b   : > { %v5583_v22 = vpop.permute.xlu2 %2736 }
 0x36c   : > { %v3325_v27 = vld.sshfl [vmem:[#allocation1 + $0x10] sm:$0xff pattern:$0x75316420]  ;;  %v3326_v52 = vld.sshfl [vmem:[#allocation1 + $0x18] sm:$0xff pattern:$0x75316420] }
 0x36d   : > { %2746 = vrot.lane.b32.xlu1 %v5587_v17, %s4129_s18  ;;  %3456 = vmatmul.f32.gmra.mxu2 %v3325_v27 }
 0x36e   : > { %4070 = vmatmul.msk.f32.gmra.mxu3 %vm357_vm0, %v3326_v52 }
 0x36f   : > { %v2543_v19 = vpop.permute.xlu1 %2542 }
 0x370   : > { %2652 = vrot.lane.b32.xlu0 %v2204_v32, %s4131_s20  ;;  %v3038_v37 = vsel %vm1353_vm5, %v3014_v55, %v2543_v19 }
 0x371   : > { %2556 = vrot.lane.b32.xlu2 %v2180_v39, %s4128_s17  ;;  %v3442_v15 = vpop.f32.mrf.mxu2  ;;  %v3513_v50 = vpop.f32.mrf.mxu3  ;;  %v3062_v11 = vsel %vm1378_vm6, %v3038_v37, %v5530_v23  ;;  %v2228_v39 = vld [vmem:[#allocation3 + $0x8a] sm:$0xf] }
 0x372   : > { %v3443_v58 = vadd.f32 %v5597_v34, %v3442_v15  ;;  %v2451_v47 = vpop.permute.xlu0 %2450  ;;  %v3086_v48 = vsel %vm1403_vm7, %v3062_v11, %v2735_v18  ;;  %v5632_v15 = vld [vmem:[#allocation3 + $0xa0] sm:$0xff] }
 0x373   : > { %v5604_v21 = vpop.permute.xlu2 %2834 }
 0x374   : > { %v5608_v56 = vadd.f32 %v3513_v50, %v3443_v58  ;;  %v5634_v58 = vld [vmem:[#allocation3 + $0x92] sm:$0xff] }
 0x375   : > { %2936 = vrot.lane.b32.xlu1 %v2275_v33, %s4132_s21  ;;  %v2102_v33 = vld [vmem:[#allocation3 + $0x48] sm:$0xf] }
 0x377   : > { %v2831_v38 = vpop.permute.xlu1 %2830 }
 0x378   : > { %v3110_v20 = vsel %vm1428_vm8, %v3086_v48, %v2831_v38  ;;  %2366 = vrot.lane.b32.xlu0 %v5504_v28, %s4126_s15  ;;  %v2277_v38 = vld [vmem:[#allocation3 + $0x99] sm:$0xf]  ;;  %v2991_v48 = vsel %vm357_vm0, %v2102_v33, %v5585_v0 }
 0x379   : > { %2844 = vrot.lane.b32.xlu2 %v2253_v25, %s4130_s19  ;;  %v3134_v23 = vsel %vm1453_vm9, %v3110_v20, %v5548_v61  ;;  %v3015_v20 = vsel %vm1328_vm4, %v2991_v48, %v5555_v26 }
 0x37a   : > { %v3238_v53 = vsel %vm1550_vm10, %v3134_v23, %v3206_v29  ;;  %v3239_v27 = vsel %vm1550_vm10, %v3206_v29, %v3134_v23  ;;  %v2641_v52 = vpop.permute.xlu0 %2640  ;;  %v2134_v29 = vld [vmem:[#allocation3 + $0x89] sm:$0xf] }
 0x37b   : > { %v5621_v24 = vpop.permute.xlu2 %2356  ;;  %v3240_v18 = vrot.slane %v3239_v27, 4  ;;  %3319 = vst [vmem:[#allocation1 + $0x20] ss:$2 sm:$0xff] %v3238_v53 }
 0x37d   : > { %3320 = vst [vmem:[#allocation1 + $0x21] ss:$2 sm:$0xff] %v3240_v18  ;;  %2460 = vrot.lane.b32.xlu1 %v2156_v42, %s4127_s16 }
 0x37f   : > { %v2355_v19 = vpop.permute.xlu1 %2354 }
 0x380   : > { %2558 = vrot.lane.b32.xlu0 %v5563_v13, %s4128_s17  ;;  %v2992_v53 = vsel %vm357_vm0, %v5354_v16, %v2355_v19  ;;  %v2182_v16 = vld [vmem:[#allocation3 + $0x98] sm:$0xf] }
 0x381   : > { %2462 = vrot.lane.b32.xlu2 %v5587_v17, %s4127_s16  ;;  %v3016_v42 = vsel %vm1328_vm4, %v2992_v53, %v2451_v47 }
 0x382   : > { %v2739_v28 = vpop.permute.xlu0 %2738  ;;  %v3040_v19 = vsel %vm1353_vm5, %v3016_v42, %v5572_v59 }
 0x383   : > { %v5628_v61 = vpop.permute.xlu2 %2644 }
 0x384   : > { %v3327_v32 = vld.sshfl [vmem:[#allocation1 + $0x20] sm:$0xff pattern:$0x75316420]  ;;  %v3328_v55 = vld.sshfl [vmem:[#allocation1 + $0x28] sm:$0xff pattern:$0x75316420] }
 0x385   : > { %2748 = vrot.lane.b32.xlu1 %v2228_v39, %s4129_s18  ;;  %3459 = vmatmul.f32.gmra.mxu2 %v3327_v32  ;;  %v2295_v39 = vld [vmem:[#allocation3 + $0x6a] sm:$0xf] }
 0x386   : > { %4071 = vmatmul.msk.f32.gmra.mxu3 %vm357_vm0, %v3328_v55 }
 0x387   : > { %v2545_v37 = vpop.permute.xlu1 %2544 }
 0x388   : > { %2846 = vrot.lane.b32.xlu0 %v5632_v15, %s4130_s19  ;;  %v3039_v23 = vsel %vm1353_vm5, %v3015_v20, %v2545_v37 }
 0x389   : > { %2750 = vrot.lane.b32.xlu2 %v5634_v58, %s4129_s18  ;;  %v3063_v0 = vsel %vm1378_vm6, %v3039_v23, %v2641_v52  ;;  %v3207_v52 = vrot.slane %v2295_v39, 4  ;;  %v5676_v23 = vld [vmem:[#allocation3 + $0xa1] sm:$0xff] }
 0x38a   : > { %v2929_v50 = vpop.permute.xlu0 %2928  ;;  %v3087_v37 = vsel %vm1403_vm7, %v3063_v0, %v5583_v22 }
 0x38b   : > { %v5640_v11 = vpop.permute.xlu2 %2358 }
 0x38d   : > { %2940 = vrot.lane.b32.xlu1 %v2277_v38, %s4132_s21 }
 0x38f   : > { %v2643_v25 = vpop.permute.xlu1 %2642 }
 0x390   : > { %2370 = vrot.lane.b32.xlu0 %v5578_v60, %s4126_s15 }
 0x391   : > { %2368 = vrot.lane.b32.xlu2 %v2134_v29, %s4126_s15 }
 0x392   : > { %v2453_v27 = vpop.permute.xlu0 %2452 }
 0x393   : > { %v5653_v18 = vpop.permute.xlu2 %2550 }
 0x395   : > { %2654 = vrot.lane.b32.xlu1 %v5578_v60, %s4131_s20  ;;  %v3445_v26 = vpop.f32.mrf.mxu2  ;;  %v3516_v55 = vpop.f32.mrf.mxu3  ;;  %v3064_v60 = vsel %vm1378_vm6, %v3040_v19, %v2643_v25  ;;  %v3208_v25 = vrot.slane %v5534_v41, 4  ;;  %v2104_v41 = vld [vmem:[#allocation3 + $0x58] sm:$0xf]  ;;  %v5694_v19 = vld [vmem:[#allocation3 + $0xa2] sm:$0xff] }
 0x396   : > { %v3446_v32 = vadd.f32 %v5597_v34, %v3445_v26  ;;  %v3088_v59 = vsel %vm1403_vm7, %v3064_v60, %v2739_v28 }
 0x397   : > { %v2833_v33 = vpop.permute.xlu1 %2832  ;;  %v3112_v0 = vsel %vm1428_vm8, %v3088_v59, %v5604_v21  ;;  %v2158_v21 = vld [vmem:[#allocation3 + $0x8a] sm:$0xf] }
 0x398   : > { %v5664_v38 = vadd.f32 %v3516_v55, %v3446_v32  ;;  %v3111_v47 = vsel %vm1428_vm8, %v3087_v37, %v2833_v33  ;;  %2560 = vrot.lane.b32.xlu0 %v2182_v16, %s4128_s17  ;;  %v2993_v33 = vsel %vm357_vm0, %v2104_v41, %v5621_v24  ;;  %v2255_v16 = vld [vmem:[#allocation3 + $0xa8] sm:$0xf] }
 0x399   : > { %2466 = vrot.lane.b32.xlu2 %v5634_v58, %s4127_s16  ;;  %v3135_v48 = vsel %vm1453_vm9, %v3111_v47, %v2929_v50  ;;  %v2206_v50 = vld [vmem:[#allocation3 + $0x99] sm:$0xf] }
 0x39a   : > { %v3241_v22 = vsel %vm1550_vm10, %v3135_v48, %v3207_v52  ;;  %v2741_v29 = vpop.permute.xlu0 %2740  ;;  %v3017_v52 = vsel %vm1328_vm4, %v2993_v33, %v2453_v27 }
 0x39b   : > { %v5673_v20 = vpop.permute.xlu2 %2838  ;;  %3321 = vst [vmem:[#allocation1 + $0x30] ss:$2 sm:$0xff] %v3241_v22 }
 0x39d   : > { %2942 = vrot.lane.b32.xlu1 %v5676_v23, %s4132_s21 }
 0x39f   : > { %v2931_v53 = vpop.permute.xlu1 %2930 }
 0x3a0   : > { %v3136_v42 = vsel %vm1453_vm9, %v3112_v0, %v2931_v53  ;;  %2658 = vrot.lane.b32.xlu0 %v5676_v23, %s4131_s20  ;;  %v2297_v53 = vld [vmem:[#allocation3 + $0x7a] sm:$0xf] }
 0x3a1   : > { %2656 = vrot.lane.b32.xlu2 %v2206_v50, %s4131_s20  ;;  %v3242_v28 = vsel %vm1550_vm10, %v3136_v42, %v3208_v25  ;;  %v3243_v26 = vsel %vm1550_vm10, %v3208_v25, %v3136_v42 }
 0x3a2   : > { %v3244_v39 = vrot.slane %v3243_v26, 4  ;;  %3322 = vst [vmem:[#allocation1 + $0x31] ss:$2 sm:$0xff] %v3242_v28  ;;  %v2933_v55 = vpop.permute.xlu0 %2932  ;;  %v5710_v28 = vld [vmem:[#allocation3 + $0xb1] sm:$0xff]  ;;  %v2279_v26 = vld [vmem:[#allocation3 + $0xa9] sm:$0xf] }
 0x3a3   : > { %v5689_v32 = vpop.permute.xlu2 %2362 }
 0x3a4   : > { %3331 = vst [vmem:[#allocation1] ss:$2 sm:$0xff] %v3244_v39 }
 0x3a5   : > { %2464 = vrot.lane.b32.xlu1 %v2158_v21, %s4127_s16  ;;  %v3209_v21 = vrot.slane %v2297_v53, 4 }
 0x3a7   : > { %v2549_v37 = vpop.permute.xlu1 %2548 }
 0x3a8   : > { %2848 = vrot.lane.b32.xlu0 %v2255_v16, %s4130_s19  ;;  %v3041_v47 = vsel %vm1353_vm5, %v3017_v52, %v2549_v37  ;;  %v2230_v16 = vld [vmem:[#allocation3 + $0x9a] sm:$0xf] }
 0x3a9   : > { %2754 = vrot.lane.b32.xlu2 %v5694_v19, %s4129_s18  ;;  %v3329_v60 = vld.sshfl [vmem:[#allocation1 + $0x30] sm:$0xff pattern:$0x75316420]  ;;  %v3330_v48 = vld.sshfl [vmem:[#allocation1 + $0x38] sm:$0xff pattern:$0x75316420]  ;;  %v3065_v59 = vsel %vm1378_vm6, %v3041_v47, %v5628_v61 }
 0x3aa   : > { %3462 = vmatmul.f32.gmra.mxu2 %v3329_v60  ;;  %4072 = vmatmul.msk.f32.gmra.mxu3 %vm357_vm0, %v3330_v48  ;;  %v2647_v22 = vpop.permute.xlu0 %2646  ;;  %v3089_v50 = vsel %vm1403_vm7, %v3065_v59, %v2741_v29  ;;  %v2184_v47 = vld [vmem:[#allocation3 + $0xa8] sm:$0xf]  ;;  %v2160_v60 = vld [vmem:[#allocation3 + $0x9a] sm:$0xf]  ;;  %v2994_v48 = vsel %vm357_vm0, %v5424_v46, %v5640_v11 }
 0x3ab   : > { %v5702_v24 = vpop.permute.xlu2 %2552 }
 0x3ad   : > { %2562 = vrot.lane.b32.xlu1 %v5632_v15, %s4128_s17  ;;  %v3448_v27 = vpop.f32.mrf.mxu2  ;;  %v3519_v25 = vpop.f32.mrf.mxu3 }
 0x3ae   : > { %v3449_v0 = vadd.f32 %v5597_v34, %v3448_v27 }
 0x3af   : > { %v2837_v42 = vpop.permute.xlu1 %2836 }
 0x3b0   : > { %v5712_v39 = vadd.f32 %v3519_v25, %v3449_v0  ;;  %v3113_v41 = vsel %vm1428_vm8, %v3089_v50, %v2837_v42  ;;  %2946 = vrot.lane.b32.xlu0 %v5710_v28, %s4132_s21  ;;  %v5734_v50 = vld [vmem:[#allocation3 + $0xb0] sm:$0xff] }
 0x3b1   : > { %2944 = vrot.lane.b32.xlu2 %v2279_v26, %s4132_s21  ;;  %v3137_v61 = vsel %vm1453_vm9, %v3113_v41, %v2933_v55  ;;  %v2232_v26 = vld [vmem:[#allocation3 + $0xaa] sm:$0xf] }
 0x3b2   : > { %v3245_v33 = vsel %vm1550_vm10, %v3137_v61, %v3209_v21  ;;  %v2935_v37 = vpop.permute.xlu0 %2934  ;;  %v2257_v21 = vld [vmem:[#allocation3 + $0xb8] sm:$0xf] }
 0x3b3   : > { %v5720_v29 = vpop.permute.xlu2 %2650  ;;  %3332 = vst [vmem:[#allocation1 + $0x1] ss:$2 sm:$0xff] %v3245_v33 }
 0x3b5   : > { %2752 = vrot.lane.b32.xlu1 %v2230_v16, %s4129_s18 }
 0x3b7   : > { %v2455_v52 = vpop.permute.xlu1 %2454 }
 0x3b8   : > { %2564 = vrot.lane.b32.xlu0 %v2184_v47, %s4128_s17  ;;  %v3018_v55 = vsel %vm1328_vm4, %v2994_v48, %v2455_v52 }
 0x3b9   : > { %2468 = vrot.lane.b32.xlu2 %v2160_v60, %s4127_s16  ;;  %v3042_v25 = vsel %vm1353_vm5, %v3018_v55, %v5653_v18  ;;  %v3210_v18 = vrot.slane %v5587_v17, 4 }
 0x3ba   : > { %v3339_v59 = vld.sshfl [vmem:[#allocation1] sm:$0xff pattern:$0x75316420]  ;;  %v3340_v27 = vld.sshfl [vmem:[#allocation1 + $0x8] sm:$0xff pattern:$0x75316420]  ;;  %v2457_v53 = vpop.permute.xlu0 %2456  ;;  %v3066_v46 = vsel %vm1378_vm6, %v3042_v25, %v2647_v22 }
 0x3bb   : > { %v5729_v0 = vpop.permute.xlu2 %2840  ;;  %3465 = vmatmul.f32.gmra.mxu2 %v3339_v59  ;;  %4073 = vmatmul.msk.f32.gmra.mxu3 %vm357_vm0, %v3340_v27  ;;  %v2136_v27 = vld [vmem:[#allocation3 + $0x99] sm:$0xf] }
 0x3bc   : > { %v2281_v25 = vld [vmem:[#allocation3 + $0xb9] sm:$0xf] }
 0x3bd   : > { %2850 = vrot.lane.b32.xlu1 %v5734_v50, %s4130_s19 }
 0x3bf   : > { %v2743_v11 = vpop.permute.xlu1 %2742  ;;  %v3451_v42 = vpop.f32.mrf.mxu2 }
 0x3c0   : > { %v3090_v41 = vsel %vm1403_vm7, %v3066_v46, %v2743_v11  ;;  %v3452_v61 = vadd.f32 %v5597_v34, %v3451_v42  ;;  %2852 = vrot.lane.b32.xlu0 %v2257_v21, %s4130_s19  ;;  %v3522_v16 = vpop.f32.mrf.mxu3  ;;  %v2208_v46 = vld [vmem:[#allocation3 + $0xa9] sm:$0xf]  ;;  %v5759_v21 = vld [vmem:[#allocation3 + $0xb2] sm:$0xff] }
 0x3c1   : > { %2756 = vrot.lane.b32.xlu2 %v2232_v26, %s4129_s18  ;;  %v3114_v33 = vsel %vm1428_vm8, %v3090_v41, %v5673_v20 }
 0x3c2   : > { %v3138_v22 = vsel %vm1453_vm9, %v3114_v33, %v2935_v37  ;;  %v5747_v52 = vadd.f32 %v3522_v16, %v3452_v61  ;;  %v2555_v47 = vpop.permute.xlu0 %2554  ;;  %v2138_v33 = vld [vmem:[#allocation3 + $0xa9] sm:$0xf]  ;;  %v5769_v16 = vld [vmem:[#allocation3 + $0xc1] sm:$0xff] }
 0x3c3   : > { %v2939_v60 = vpop.permute.xlu2 %2938  ;;  %v3246_v48 = vsel %vm1550_vm10, %v3138_v22, %v3210_v18  ;;  %v3247_v55 = vsel %vm1550_vm10, %v3210_v18, %v3138_v22  ;;  %v2996_v22 = vsel %vm357_vm0, %v5450_v36, %v5689_v32 }
 0x3c4   : > { %v3248_v59 = vrot.slane %v3247_v55, 4  ;;  %3333 = vst [vmem:[#allocation1 + $0x10] ss:$2 sm:$0xff] %v3246_v48  ;;  %v2106_v48 = vld [vmem:[#allocation3 + $0x68] sm:$0xf] }
 0x3c5   : > { %2372 = vrot.lane.b32.xlu1 %v2136_v27, %s4126_s15 }
 0x3c6   : > { %3334 = vst [vmem:[#allocation1 + $0x11] ss:$2 sm:$0xff] %v3248_v59 }
 0x3c7   : > { %v2361_v17 = vpop.permute.xlu1 %2360 }
 0x3c8   : > { %2470 = vrot.lane.b32.xlu0 %v5694_v19, %s4127_s16  ;;  %v2995_v59 = vsel %vm357_vm0, %v2106_v48, %v2361_v17 }
 0x3c9   : > { %2948 = vrot.lane.b32.xlu2 %v2281_v25, %s4132_s21 }
 0x3ca   : > { %v2745_v20 = vpop.permute.xlu0 %2744 }
 0x3cb   : > { %v5755_v37 = vpop.permute.xlu2 %2556 }
 0x3cd   : > { %2660 = vrot.lane.b32.xlu1 %v2208_v46, %s4131_s20  ;;  %v3341_v11 = vld.sshfl [vmem:[#allocation1 + $0x10] sm:$0xff pattern:$0x75316420]  ;;  %v3342_v42 = vld.sshfl [vmem:[#allocation1 + $0x18] sm:$0xff pattern:$0x75316420]  ;;  %v3019_v46 = vsel %vm1328_vm4, %v2995_v59, %v2457_v53 }
 0x3ce   : > { %3468 = vmatmul.f32.gmra.mxu2 %v3341_v11  ;;  %4074 = vmatmul.msk.f32.gmra.mxu3 %vm357_vm0, %v3342_v42  ;;  %v3043_v17 = vsel %vm1353_vm5, %v3019_v46, %v5702_v24 }
 0x3cf   : > { %v2459_v26 = vpop.permute.xlu1 %2458 }
 0x3d0   : > { %2758 = vrot.lane.b32.xlu0 %v5759_v21, %s4129_s18  ;;  %v3020_v55 = vsel %vm1328_vm4, %v2996_v22, %v2459_v26  ;;  %v2162_v26 = vld [vmem:[#allocation3 + $0xaa] sm:$0xf] }
 0x3d1   : > { %2662 = vrot.lane.b32.xlu2 %v5710_v28, %s4131_s20 }
 0x3d2   : > { %v2843_v41 = vpop.permute.xlu0 %2842 }
 0x3d3   : > { %v5765_v61 = vpop.permute.xlu2 %2844 }
 0x3d5   : > { %2374 = vrot.lane.b32.xlu1 %v5676_v23, %s4126_s15  ;;  %v3044_v23 = vsel %vm1353_vm5, %v3020_v55, %v2555_v47 }
 0x3d6   : > { %v3068_v11 = vsel %vm1378_vm6, %v3044_v23, %v5720_v29  ;;  %v3212_v29 = vrot.slane %v5634_v58, 4 }
 0x3d7   : > { %v2649_v18 = vpop.permute.xlu1 %2648 }
 0x3d8   : > { %2376 = vrot.lane.b32.xlu0 %v2138_v33, %s4126_s15  ;;  %v3067_v53 = vsel %vm1378_vm6, %v3043_v17, %v2649_v18 }
 0x3d9   : > { %2950 = vrot.lane.b32.xlu2 %v5769_v16, %s4132_s21  ;;  %v3091_v46 = vsel %vm1403_vm7, %v3067_v53, %v2745_v20  ;;  %v5814_v53 = vld [vmem:[#allocation3 + $0xc2] sm:$0xff] }
 0x3da   : > { %v2365_v27 = vpop.permute.xlu0 %2364  ;;  %v3115_v58 = vsel %vm1428_vm8, %v3091_v46, %v5729_v0  ;;  %v2108_v46 = vld [vmem:[#allocation3 + $0x78] sm:$0xf] }
 0x3db   : > { %v5780_v25 = vpop.permute.xlu2 %2462 }
 0x3dd   : > { %2566 = vrot.lane.b32.xlu1 %v5734_v50, %s4128_s17 }
 0x3de   : > { %v3454_v36 = vpop.f32.mrf.mxu2  ;;  %v3525_v33 = vpop.f32.mrf.mxu3 }
 0x3df   : > { %v3455_v32 = vadd.f32 %v5597_v34, %v3454_v36  ;;  %v2747_v42 = vpop.permute.xlu1 %2746 }
 0x3e0   : > { %v3092_v47 = vsel %vm1403_vm7, %v3068_v11, %v2747_v42  ;;  %2474 = vrot.lane.b32.xlu0 %v5759_v21, %s4127_s16  ;;  %v2258_v11 = vld [vmem:[#allocation3 + $0xc0] sm:$0xff]  ;;  %v2299_v42 = vld [vmem:[#allocation3 + $0x8a] sm:$0xf] }
 0x3e1   : > { %2472 = vrot.lane.b32.xlu2 %v2162_v26, %s4127_s16  ;;  %v5795_v22 = vadd.f32 %v3525_v33, %v3455_v32  ;;  %v3116_v48 = vsel %vm1428_vm8, %v3092_v47, %v2843_v41  ;;  %v2210_v32 = vld [vmem:[#allocation3 + $0xb9] sm:$0xf] }
 0x3e2   : > { %v3140_v55 = vsel %vm1453_vm9, %v3116_v48, %v2939_v60  ;;  %v2653_v59 = vpop.permute.xlu0 %2652  ;;  %v3211_v60 = vrot.slane %v2299_v42, 4  ;;  %v2234_v47 = vld [vmem:[#allocation3 + $0xba] sm:$0xf] }
 0x3e3   : > { %v3250_v24 = vsel %vm1550_vm10, %v3140_v55, %v3212_v29  ;;  %v3251_v23 = vsel %vm1550_vm10, %v3212_v29, %v3140_v55  ;;  %v5804_v18 = vpop.permute.xlu2 %2750  ;;  %v2186_v42 = vld [vmem:[#allocation3 + $0xb8] sm:$0xf] }
 0x3e4   : > { %v3252_v36 = vrot.slane %v3251_v23, 4  ;;  %3336 = vst [vmem:[#allocation1 + $0x21] ss:$2 sm:$0xff] %v3250_v24 }
 0x3e5   : > { %2854 = vrot.lane.b32.xlu1 %v2258_v11, %s4130_s19 }
 0x3e6   : > { %3337 = vst [vmem:[#allocation1 + $0x30] ss:$2 sm:$0xff] %v3252_v36 }
 0x3e7   : > { %v2937_v41 = vpop.permute.xlu1 %2936 }
 0x3e8   : > { %v3139_v26 = vsel %vm1453_vm9, %v3115_v58, %v2937_v41  ;;  %2664 = vrot.lane.b32.xlu0 %v2210_v32, %s4131_s20  ;;  %v2283_v32 = vld [vmem:[#allocation3 + $0xc9] sm:$0xf] }
 0x3e9   : > { %2570 = vrot.lane.b32.xlu2 %v2258_v11, %s4128_s17  ;;  %v3249_v20 = vsel %vm1550_vm10, %v3139_v26, %v3211_v60  ;;  %v2997_v11 = vsel %vm357_vm0, %v2108_v46, %v2365_v27  ;;  %v2260_v60 = vld [vmem:[#allocation3 + $0xd0] sm:$0xff] }
 0x3ea   : > { %3335 = vst [vmem:[#allocation1 + $0x20] ss:$2 sm:$0xff] %v3249_v20  ;;  %v2367_v17 = vpop.permute.xlu0 %2366 }
 0x3eb   : > { %v5816_v0 = vpop.permute.xlu2 %2368 }
 0x3ed   : > { %2378 = vrot.lane.b32.xlu1 %v5710_v28, %s4126_s15 }
 0x3ef   : > { %v2461_v33 = vpop.permute.xlu1 %2460 }
 0x3f0   : > { %v3457_v48 = vpop.f32.mrf.mxu2  ;;  %2762 = vrot.lane.b32.xlu0 %v5814_v53, %s4129_s18  ;;  %v3021_v58 = vsel %vm1328_vm4, %v2997_v11, %v2461_v33  ;;  %v2301_v33 = vld [vmem:[#allocation3 + $0x9a] sm:$0xf] }
 0x3f1   : > { %2760 = vrot.lane.b32.xlu2 %v2234_v47, %s4129_s18  ;;  %v3458_v29 = vadd.f32 %v5597_v34, %v3457_v48  ;;  %v3343_v55 = vld.sshfl [vmem:[#allocation1 + $0x20] sm:$0xff pattern:$0x75316420]  ;;  %v3344_v24 = vld.sshfl [vmem:[#allocation1 + $0x28] sm:$0xff pattern:$0x75316420]  ;;  %v3528_v23 = vpop.f32.mrf.mxu3  ;;  %v3045_v26 = vsel %vm1353_vm5, %v3021_v58, %v5755_v37 }
 0x3f2   : > { %3471 = vmatmul.f32.gmra.mxu2 %v3343_v55  ;;  %4075 = vmatmul.msk.f32.gmra.mxu3 %vm357_vm0, %v3344_v24  ;;  %v2559_v28 = vpop.permute.xlu0 %2558  ;;  %v3069_v27 = vsel %vm1378_vm6, %v3045_v26, %v2653_v59  ;;  %v2140_v24 = vld [vmem:[#allocation3 + $0xb9] sm:$0xf]  ;;  %v2259_v58 = vld [vmem:[#allocation3 + $0xc8] sm:$0xf] }
 0x3f3   : > { %v5823_v36 = vadd.f32 %v3528_v23, %v3458_v29  ;;  %v5832_v20 = vpop.permute.xlu2 %2466  ;;  %v3213_v29 = vrot.slane %v2301_v33, 4  ;;  %v2164_v23 = vld [vmem:[#allocation3 + $0xba] sm:$0xf] }
 0x3f5   : > { %2568 = vrot.lane.b32.xlu1 %v2186_v42, %s4128_s17 }
 0x3f7   : > { %v2749_v41 = vpop.permute.xlu1 %2748 }
 0x3f8   : > { %2952 = vrot.lane.b32.xlu0 %v2283_v32, %s4132_s21  ;;  %v3093_v48 = vsel %vm1403_vm7, %v3069_v27, %v2749_v41  ;;  %v2236_v41 = vld [vmem:[#allocation3 + $0xca] sm:$0xf] }
 0x3f9   : > { %2858 = vrot.lane.b32.xlu2 %v2260_v60, %s4130_s19  ;;  %v3117_v37 = vsel %vm1428_vm8, %v3093_v48, %v5765_v61  ;;  %v2212_v32 = vld [vmem:[#allocation3 + $0xc9] sm:$0xf] }
 0x3fa   : > { %v2847_v47 = vpop.permute.xlu0 %2846 }
 0x3fb   : > { %v2657_v42 = vpop.permute.xlu2 %2656 }
 0x3fd   : > { %2666 = vrot.lane.b32.xlu1 %v5769_v16, %s4131_s20  ;;  %v2998_v16 = vsel %vm357_vm0, %v5502_v49, %v2367_v17 }
 0x3fe   : > { %v3022_v61 = vsel %vm1328_vm4, %v2998_v16, %v5780_v25  ;;  %v2284_v25 = vld [vmem:[#allocation3 + $0xd1] sm:$0xff] }
 0x3ff   : > { %v2941_v55 = vpop.permute.xlu1 %2940  ;;  %v3046_v26 = vsel %vm1353_vm5, %v3022_v61, %v2559_v28 }
 0x400   : > { %v3141_v46 = vsel %vm1453_vm9, %v3117_v37, %v2941_v55  ;;  %2476 = vrot.lane.b32.xlu0 %v2164_v23, %s4127_s16  ;;  %v3214_v23 = vrot.slane %v5694_v19, 4 }
 0x401   : > { %2380 = vrot.lane.b32.xlu2 %v2140_v24, %s4126_s15  ;;  %v3253_v59 = vsel %vm1550_vm10, %v3141_v46, %v3213_v29 }
 0x402   : > { %3338 = vst [vmem:[#allocation1 + $0x31] ss:$2 sm:$0xff] %v3253_v59  ;;  %v2371_v11 = vpop.permute.xlu0 %2370 }
 0x403   : > { %v2755_v24 = vpop.permute.xlu2 %2754 }
 0x405   : > { %2856 = vrot.lane.b32.xlu1 %v2259_v58, %s4130_s19 }
 0x407   : > { %v2655_v60 = vpop.permute.xlu1 %2654 }
 0x408   : > { %v3460_v27 = vpop.f32.mrf.mxu2  ;;  %2764 = vrot.lane.b32.xlu0 %v2236_v41, %s4129_s18  ;;  %v3070_v48 = vsel %vm1378_vm6, %v3046_v26, %v2655_v60  ;;  %v2188_v41 = vld [vmem:[#allocation3 + $0xc8] sm:$0xf]  ;;  %v2261_v26 = vld [vmem:[#allocation3 + $0xd8] sm:$0xf] }
 0x409   : > { %2668 = vrot.lane.b32.xlu2 %v2212_v32, %s4131_s20  ;;  %v3461_v49 = vadd.f32 %v5597_v34, %v3460_v27  ;;  %v3345_v17 = vld.sshfl [vmem:[#allocation1 + $0x30] sm:$0xff pattern:$0x75316420]  ;;  %v3346_v33 = vld.sshfl [vmem:[#allocation1 + $0x38] sm:$0xff pattern:$0x75316420]  ;;  %v3531_v29 = vpop.f32.mrf.mxu3  ;;  %v3094_v28 = vsel %vm1403_vm7, %v3070_v48, %v5804_v18 }
 0x40a   : > { %3474 = vmatmul.f32.gmra.mxu2 %v3345_v17  ;;  %4076 = vmatmul.msk.f32.gmra.mxu3 %vm357_vm0, %v3346_v33  ;;  %v2561_v55 = vpop.permute.xlu0 %2560  ;;  %v3118_v34 = vsel %vm1428_vm8, %v3094_v28, %v2847_v47  ;;  %v2285_v18 = vld [vmem:[#allocation3 + $0xd9] sm:$0xf] }
 0x40b   : > { %v5855_v37 = vadd.f32 %v3531_v29, %v3461_v49  ;;  %v2945_v32 = vpop.permute.xlu2 %2944  ;;  %v2110_v49 = vld [vmem:[#allocation3 + $0x88] sm:$0xf] }
 0x40c   : > { %v2999_v33 = vsel %vm357_vm0, %v2110_v49, %v5816_v0 }
 0x40d   : > { %2954 = vrot.lane.b32.xlu1 %v2284_v25, %s4132_s21 }
 0x40f   : > { %v2943_v46 = vpop.permute.xlu1 %2942 }
 0x410   : > { %v3142_v59 = vsel %vm1453_vm9, %v3118_v34, %v2943_v46  ;;  %v3000_v46 = vsel %vm357_vm0, %v5563_v13, %v2371_v11  ;;  %v2303_v34 = vld [vmem:[#allocation3 + $0xaa] sm:$0xf] }
 0x411   : > { %v3254_v16 = vsel %vm1550_vm10, %v3142_v59, %v3214_v23  ;;  %v3255_v58 = vsel %vm1550_vm10, %v3214_v23, %v3142_v59  ;;  %2956 = vrot.lane.b32.xlu2 %v2285_v18, %s4132_s21 }
 0x412   : > { %v3256_v61 = vrot.slane %v3255_v58, 4  ;;  %3347 = vst [vmem:[#allocation1] ss:$2 sm:$0xff] %v3254_v16  ;;  %v2659_v60 = vpop.permute.xlu0 %2658  ;;  %v3024_v58 = vsel %vm1328_vm4, %v3000_v46, %v5832_v20 }
 0x413   : > { %v2469_v25 = vpop.permute.xlu2 %2468 }
 0x414   : > { %3348 = vst [vmem:[#allocation1 + $0x1] ss:$2 sm:$0xff] %v3256_v61 }
 0x415   : > { %2572 = vrot.lane.b32.xlu1 %v2188_v41, %s4128_s17  ;;  %v3215_v41 = vrot.slane %v2303_v34, 4 }
 0x417   : > { %v2465_v19 = vpop.permute.xlu1 %2464 }
 0x418   : > { %v3023_v29 = vsel %vm1328_vm4, %v2999_v33, %v2465_v19 }
 0x419   : > { %v3047_v23 = vsel %vm1353_vm5, %v3023_v29, %v2561_v55 }
 0x41a   : > { %v2849_v47 = vpop.permute.xlu0 %2848  ;;  %v3071_v16 = vsel %vm1378_vm6, %v3047_v23, %v2657_v42  ;;  %v2112_v23 = vld [vmem:[#allocation3 + $0x98] sm:$0xf] }
 0x41b   : > { %v3355_v27 = vld.sshfl [vmem:[#allocation1] sm:$0xff pattern:$0x75316420]  ;;  %v3356_v48 = vld.sshfl [vmem:[#allocation1 + $0x8] sm:$0xff pattern:$0x75316420]  ;;  %v2757_v13 = vpop.permute.xlu2 %2756 }
 0x41c   : > { %3477 = vmatmul.f32.gmra.mxu2 %v3355_v27  ;;  %4077 = vmatmul.msk.f32.gmra.mxu3 %vm357_vm0, %v3356_v48  ;;  %v3216_v48 = vrot.slane %v5759_v21, 4 }
 0x41d   : > { %2860 = vrot.lane.b32.xlu1 %v2261_v26, %s4130_s19 }
 0x41f   : > { %v2563_v17 = vpop.permute.xlu1 %2562 }
 0x420   : > { %v3048_v0 = vsel %vm1353_vm5, %v3024_v58, %v2563_v17 }
 0x421   : > { %v3072_v11 = vsel %vm1378_vm6, %v3048_v0, %v2659_v60 }
 0x422   : > { %v2947_v28 = vpop.permute.xlu0 %2946  ;;  %v3096_v27 = vsel %vm1403_vm7, %v3072_v11, %v2755_v24 }
 0x423   : > { %v2949_v29 = vpop.permute.xlu2 %2948 }
 0x427   : > { %v2753_v59 = vpop.permute.xlu1 %2752 }
 0x428   : > { %v3095_v61 = vsel %vm1403_vm7, %v3071_v16, %v2753_v59  ;;  %v2305_v16 = vld [vmem:[#allocation3 + $0xba] sm:$0xf] }
 0x429   : > { %v3119_v18 = vsel %vm1428_vm8, %v3095_v61, %v2849_v47 }
 0x42a   : > { %v3143_v19 = vsel %vm1453_vm9, %v3119_v18, %v2945_v32  ;;  %v2565_v55 = vpop.permute.xlu0 %2564 }
 0x42b   : > { %v3257_v26 = vsel %vm1550_vm10, %v3143_v19, %v3215_v41  ;;  %v2663_v61 = vpop.permute.xlu2 %2662  ;;  %v3217_v19 = vrot.slane %v2305_v16, 4 }
 0x42c   : > { %3349 = vst [vmem:[#allocation1 + $0x10] ss:$2 sm:$0xff] %v3257_v26 }
 0x42f   : > { %v2851_v42 = vpop.permute.xlu1 %2850 }
 0x430   : > { %v3120_v20 = vsel %vm1428_vm8, %v3096_v27, %v2851_v42 }
 0x431   : > { %v3144_v49 = vsel %vm1453_vm9, %v3120_v20, %v2947_v28 }
 0x432   : > { %v3258_v47 = vsel %vm1550_vm10, %v3144_v49, %v3216_v48  ;;  %v3259_v32 = vsel %vm1550_vm10, %v3216_v48, %v3144_v49  ;;  %v2853_v17 = vpop.permute.xlu0 %2852 }
 0x433   : > { %v3260_v33 = vrot.slane %v3259_v32, 4  ;;  %3350 = vst [vmem:[#allocation1 + $0x11] ss:$2 sm:$0xff] %v3258_v47  ;;  %v2951_v27 = vpop.permute.xlu2 %2950 }
 0x435   : > { %3351 = vst [vmem:[#allocation1 + $0x20] ss:$2 sm:$0xff] %v3260_v33 }
 0x437   : > { %v2373_v60 = vpop.permute.xlu1 %2372 }
 0x438   : > { %v3001_v46 = vsel %vm357_vm0, %v2112_v23, %v2373_v60 }
 0x439   : > { %v3025_v21 = vsel %vm1328_vm4, %v3001_v46, %v2469_v25  ;;  %v3218_v46 = vrot.slane %v5814_v53, 4 }
 0x43a   : > { %v3357_v24 = vld.sshfl [vmem:[#allocation1 + $0x10] sm:$0xff pattern:$0x75316420]  ;;  %v3358_v34 = vld.sshfl [vmem:[#allocation1 + $0x18] sm:$0xff pattern:$0x75316420]  ;;  %v2471_v28 = vpop.permute.xlu0 %2470  ;;  %v3049_v58 = vsel %vm1353_vm5, %v3025_v21, %v2565_v55 }
 0x43b   : > { %3480 = vmatmul.f32.gmra.mxu2 %v3357_v24  ;;  %4078 = vmatmul.msk.f32.gmra.mxu3 %vm357_vm0, %v3358_v34 }
 0x43f   : > { %v2661_v59 = vpop.permute.xlu1 %2660 }
 0x440   : > { %v3073_v0 = vsel %vm1378_vm6, %v3049_v58, %v2661_v59 }
 0x441   : > { %v3097_v41 = vsel %vm1403_vm7, %v3073_v0, %v2757_v13 }
 0x442   : > { %v3121_v18 = vsel %vm1428_vm8, %v3097_v41, %v2853_v17  ;;  %v2759_v42 = vpop.permute.xlu0 %2758  ;;  %v2473_v17 = vpop.permute.xlu2 %2472 }
 0x443   : > { %v3145_v26 = vsel %vm1453_vm9, %v3121_v18, %v2949_v29  ;;  %v2114_v18 = vld [vmem:[#allocation3 + $0xa8] sm:$0xf] }
 0x444   : > { %v3261_v11 = vsel %vm1550_vm10, %v3145_v26, %v3217_v19 }
 0x445   : > { %3352 = vst [vmem:[#allocation1 + $0x21] ss:$2 sm:$0xff] %v3261_v11 }
 0x447   : > { %v2375_v25 = vpop.permute.xlu1 %2374 }
 0x448   : > { %v3002_v55 = vsel %vm357_vm0, %v5632_v15, %v2375_v25 }
 0x449   : > { %v3026_v47 = vsel %vm1328_vm4, %v3002_v55, %v2471_v28 }
 0x44a   : > { %v2377_v49 = vpop.permute.xlu0 %2376  ;;  %v2571_v59 = vpop.permute.xlu2 %2570 }
 0x44b   : > { %v3003_v19 = vsel %vm357_vm0, %v2114_v18, %v2377_v49 }
 0x44c   : > { %v3359_v20 = vld.sshfl [vmem:[#allocation1 + $0x20] sm:$0xff pattern:$0x75316420]  ;;  %v3360_v48 = vld.sshfl [vmem:[#allocation1 + $0x28] sm:$0xff pattern:$0x75316420] }
 0x44d   : > { %3483 = vmatmul.f32.gmra.mxu2 %v3359_v20  ;;  %4079 = vmatmul.msk.f32.gmra.mxu3 %vm357_vm0, %v3360_v48 }
 0x44f   : > { %v2567_v13 = vpop.permute.xlu1 %2566 }
 0x450   : > { %v3050_v32 = vsel %vm1353_vm5, %v3026_v47, %v2567_v13  ;;  %v2307_v13 = vld [vmem:[#allocation3 + $0xca] sm:$0xf] }
 0x451   : > { %v3074_v33 = vsel %vm1378_vm6, %v3050_v32, %v2663_v61 }
 0x452   : > { %v3098_v29 = vsel %vm1403_vm7, %v3074_v33, %v2759_v42  ;;  %v2475_v24 = vpop.permute.xlu0 %2474  ;;  %v2761_v53 = vpop.permute.xlu2 %2760  ;;  %v3027_v42 = vsel %vm1328_vm4, %v3003_v19, %v2473_v17 }
 0x457   : > { %v2855_v60 = vpop.permute.xlu1 %2854 }
 0x458   : > { %v3122_v23 = vsel %vm1428_vm8, %v3098_v29, %v2855_v60  ;;  %v3219_v29 = vrot.slane %v2307_v13, 4 }
 0x459   : > { %v3146_v15 = vsel %vm1453_vm9, %v3122_v23, %v2951_v27 }
 0x45a   : > { %v3262_v34 = vsel %vm1550_vm10, %v3146_v15, %v3218_v46  ;;  %v3263_v21 = vsel %vm1550_vm10, %v3218_v46, %v3146_v15  ;;  %v2665_v58 = vpop.permute.xlu0 %2664  ;;  %v2859_v27 = vpop.permute.xlu2 %2858  ;;  %v2308_v46 = vld [vmem:[#allocation3 + $0xd2] sm:$0xff] }
 0x45b   : > { %v3264_v28 = vrot.slane %v3263_v21, 4  ;;  %3353 = vst [vmem:[#allocation1 + $0x30] ss:$2 sm:$0xff] %v3262_v34  ;;  %v3220_v34 = vrot.slane %v2308_v46, 4  ;;  %v3616_v46 = vld [vmem:[%s6155_s5] sm:$0xff] }
 0x45d   : > { %3354 = vst [vmem:[#allocation1 + $0x31] ss:$2 sm:$0xff] %v3264_v28 }
 0x45f   : > { %v2379_v16 = vpop.permute.xlu1 %2378 }
 0x460   : > { %v3004_v20 = vsel %vm357_vm0, %v5734_v50, %v2379_v16 }
 0x461   : > { %v3028_v55 = vsel %vm1328_vm4, %v3004_v20, %v2475_v24  ;;  %v2309_v20 = vld [vmem:[#allocation3 + $0xda] sm:$0xf] }
 0x462   : > { %v2763_v26 = vpop.permute.xlu0 %2762  ;;  %v3052_v49 = vsel %vm1353_vm5, %v3028_v55, %v2571_v59  ;;  %v2381_v15 = vpop.permute.xlu2 %2380  ;;  %v3221_v13 = vrot.slane %v2309_v20, 4  ;;  %v4116_v20 = vld [vmem:[%s6154_s4] ss:$0 sm:$0xff] }
 0x464   : > { %v3361_v61 = vld.sshfl [vmem:[#allocation1 + $0x30] sm:$0xff pattern:$0x75316420]  ;;  %v3362_v0 = vld.sshfl [vmem:[#allocation1 + $0x38] sm:$0xff pattern:$0x75316420] }
 0x465   : > { %3486 = vmatmul.f32.gmra.mxu2 %v3361_v61  ;;  %4080 = vmatmul.msk.f32.gmra.mxu3 %vm357_vm0, %v3362_v0 }
 0x467   : > { %v2569_v41 = vpop.permute.xlu1 %2568 }
 0x468   : > { %v3051_v25 = vsel %vm1353_vm5, %v3027_v42, %v2569_v41  ;;  %v3617_v41 = vld [vmem:[%s6155_s5 + $0x8] sm:$0xff] }
 0x469   : > { %v3075_v48 = vsel %vm1378_vm6, %v3051_v25, %v2665_v58  ;;  %3636 = vmatpush.msrb.mxu1 %v3617_v41 }
 0x46a   : > { %v3099_v47 = vsel %vm1403_vm7, %v3075_v48, %v2761_v53  ;;  %v2953_v33 = vpop.permute.xlu0 %2952  ;;  %v2116_v53 = vld [vmem:[#allocation3 + $0xb8] sm:$0xf]  ;;  %v2669_v18 = vpop.permute.xlu2 %2668 }
 0x46b   : > { %v3005_v19 = vsel %vm357_vm0, %v2116_v53, %v2381_v15  ;;  %3637 = vmatpush.msrb.mxu1 %v3616_v46  ;;  %v3534_v15 = vpop.f32.mrf.mxu3 }
 0x46f   : > { %v2667_v11 = vpop.permute.xlu1 %2666 }
 0x470   : > { %v3076_v60 = vsel %vm1378_vm6, %v3052_v49, %v2667_v11 }
 0x471   : > { %v3100_v24 = vsel %vm1403_vm7, %v3076_v60, %v2763_v26 }
 0x472   : > { %v3124_v28 = vsel %vm1428_vm8, %v3100_v24, %v2859_v27  ;;  %v2477_v0 = vpop.permute.xlu0 %2476 }
 0x473   : > { %v3029_v11 = vsel %vm1328_vm4, %v3005_v19, %v2477_v0  ;;  %v3568_v19 = vsel %vm357_vm0, %v5664_v38, 0.0 }
 0x477   : > { %v2857_v32 = vpop.permute.xlu1 %2856 }
 0x478   : > { %v3123_v17 = vsel %vm1428_vm8, %v3099_v47, %v2857_v32  ;;  %v2957_v47 = vpop.permute.xlu2 %2956 }
 0x479   : > { %v3147_v23 = vsel %vm1453_vm9, %v3123_v17, %v2953_v33 }
 0x47a   : > { %v3265_v50 = vsel %vm1550_vm10, %v3147_v23, %v3219_v29  ;;  %v2765_v55 = vpop.permute.xlu0 %2764 }
 0x47b   : > { %3363 = vst [vmem:[#allocation1] ss:$2 sm:$0xff] %v3265_v50  ;;  %v3463_v50 = vpop.f32.mrf.mxu2 }
 0x47f   : > { %v2955_v21 = vpop.permute.xlu1 %2954 }
 0x480   : > { %v3148_v59 = vsel %vm1453_vm9, %v3124_v28, %v2955_v21 }
 0x481   : > { %v3266_v16 = vsel %vm1550_vm10, %v3148_v59, %v3220_v34  ;;  %v3267_v58 = vsel %vm1550_vm10, %v3220_v34, %v3148_v59  ;;  %v3537_v34 = vpop.f32.mrf.mxu3 }
 0x482   : > { %v3268_v61 = vrot.slane %v3267_v58, 4  ;;  %3364 = vst [vmem:[#allocation1 + $0x1] ss:$2 sm:$0xff] %v3266_v16 }
 0x483   : > { %v3466_v24 = vpop.f32.mrf.mxu2 }
 0x484   : > { %3365 = vst [vmem:[#allocation1 + $0x10] ss:$2 sm:$0xff] %v3268_v61 }
 0x487   : > { %v2573_v26 = vpop.permute.xlu1 %2572 }
 0x488   : > { %v3053_v42 = vsel %vm1353_vm5, %v3029_v11, %v2573_v26  ;;  %v3567_v26 = vsel %vm357_vm0, %v5608_v56, 0.0  ;;  %v3570_v11 = vsel %vm357_vm0, %v5712_v39, 0.0 }
 0x489   : > { %v3367_v25 = vld.sshfl [vmem:[#allocation1] sm:$0xff pattern:$0x75316420]  ;;  %v3368_v27 = vld.sshfl [vmem:[#allocation1 + $0x8] sm:$0xff pattern:$0x75316420]  ;;  %v3077_v48 = vsel %vm1378_vm6, %v3053_v42, %v2669_v18  ;;  %v3540_v28 = vpop.f32.mrf.mxu3  ;;  %v3569_v42 = vadd.f32 %v3568_v19, %v3567_v26 }
 0x48a   : > { %3489 = vmatmul.f32.gmra.mxu2 %v3367_v25  ;;  %4081 = vmatmul.msk.f32.gmra.mxu3 %vm357_vm0, %v3368_v27  ;;  %v3101_v32 = vsel %vm1403_vm7, %v3077_v48, %v2765_v55  ;;  %v3572_v27 = vsel %vm357_vm0, %v5747_v52, 0.0  ;;  %v3464_v48 = vadd.f32 %v4116_v20, %v3463_v50 }
 0x48b   : > { %v3469_v21 = vpop.f32.mrf.mxu2  ;;  %v3571_v55 = vadd.f32 %v3570_v11, %v3569_v42 }
 0x48f   : > { %v2861_v33 = vpop.permute.xlu1 %2860 }
 0x490   : > { %v3125_v49 = vsel %vm1428_vm8, %v3101_v32, %v2861_v33  ;;  %v3573_v32 = vadd.f32 %v3572_v27, %v3571_v55 }
 0x491   : > { %v3149_v29 = vsel %vm1453_vm9, %v3125_v49, %v2957_v47  ;;  %v3543_v16 = vpop.f32.mrf.mxu3  ;;  %v3467_v47 = vadd.f32 %v4116_v20, %v3466_v24  ;;  %v3576_v49 = vsel %vm357_vm0, %v5823_v36, 0.0 }
 0x492   : > { %v3269_v17 = vsel %vm1550_vm10, %v3149_v29, %v3221_v13  ;;  %v3574_v13 = vsel %vm357_vm0, %v5795_v22, 0.0  ;;  %v5961_v29 = vadd.f32 %v3534_v15, %v3464_v48  ;;  %v3643_v15 = vld [vmem:[%s6157_s7] sm:$0xf] }
 0x493   : > { %3366 = vst [vmem:[#allocation1 + $0x11] ss:$2 sm:$0xff] %v3269_v17  ;;  %v3472_v59 = vpop.f32.mrf.mxu2  ;;  %v3470_v17 = vadd.f32 %v4116_v20, %v3469_v21  ;;  %v5965_v46 = vadd.f32 %v3537_v34, %v3467_v47  ;;  %4084 = vmatpush.msk.msrb.mxu3 %vm1550_vm10, %v3643_v15 }
 0x494   : > { %v3473_v50 = vadd.f32 %v4116_v20, %v3472_v59  ;;  %v3580_v24 = vsel %vm357_vm0, %v5961_v29, 0.0 }
 0x495   : > { %v5969_v11 = vadd.f32 %v3540_v28, %v3470_v17  ;;  %v3582_v21 = vsel %vm357_vm0, %v5965_v46, 0.0 }
 0x496   : > { %v5976_v48 = vadd.f32 %v3543_v16, %v3473_v50 }
 0x497   : > { %v3584_v28 = vsel %vm357_vm0, %v5969_v11, 0.0 }
 0x499   : > { %v3546_v61 = vpop.f32.mrf.mxu3 }
 0x49a   : > { %v3369_v60 = vld.sshfl [vmem:[#allocation1 + $0x10] sm:$0xff pattern:$0x75316420]  ;;  %v3370_v23 = vld.sshfl [vmem:[#allocation1 + $0x18] sm:$0xff pattern:$0x75316420] }
 0x49b   : > { %3492 = vmatmul.f32.gmra.mxu2 %v3369_v60  ;;  %4082 = vmatmul.msk.f32.gmra.mxu3 %vm357_vm0, %v3370_v23  ;;  %v3475_v58 = vpop.f32.mrf.mxu2  ;;  %v3575_v60 = vadd.f32 %v3574_v13, %v3573_v32  ;;  %v3578_v23 = vsel %vm357_vm0, %v5855_v37, 0.0  ;;  %v3586_v32 = vsel %vm357_vm0, %v5976_v48, 0.0 }
 0x49c   : > { %v3476_v42 = vadd.f32 %v4116_v20, %v3475_v58 }
 0x49d   : > { %v3577_v19 = vadd.f32 %v3576_v49, %v3575_v60 }
 0x49e   : > { %v5981_v13 = vadd.f32 %v3546_v61, %v3476_v42 }
 0x49f   : > { %v3579_v27 = vadd.f32 %v3578_v23, %v3577_v19 }
 0x4a1   : > { %v3549_v41 = vpop.f32.mrf.mxu3  ;;  %v3581_v59 = vadd.f32 %v3580_v24, %v3579_v27  ;;  %v4133_v24 = vmov 144.0  }
 0x4a2   : > { %4109 = vrcp.f32 %v4133_v24 }
 0x4a3   : > { %v3478_v0 = vpop.f32.mrf.mxu2  ;;  %v3583_v47 = vadd.f32 %v3582_v21, %v3581_v59 }
 0x4a4   : > { %v3479_v34 = vadd.f32 %v4116_v20, %v3478_v0  ;;  %v3588_v0 = vsel %vm357_vm0, %v5981_v13, 0.0 }
 0x4a5   : > { %v3585_v16 = vadd.f32 %v3584_v28, %v3583_v47 }
 0x4a6   : > { %v5985_v49 = vadd.f32 %v3549_v41, %v3479_v34 }
 0x4a7   : > { %v3587_v19 = vadd.f32 %v3586_v32, %v3585_v16 }
 0x4a8   : > { %v3590_v61 = vsel %vm357_vm0, %v5985_v49, 0.0  ;;  %v4110_v34 = vpop.eup %4109 }
 0x4a9   : > { %v3589_v41 = vadd.f32 %v3588_v0, %v3587_v19  ;;  %vm3613_vm11 = vweird.f32 %v4110_v34 }
 0x4ab   : > { %v3591_v21 = vadd.f32 %v3590_v61, %v3589_v41 }
 0x4be   : > { %v3481_v53 = vpop.f32.mrf.mxu2  ;;  %v3552_v18 = vpop.f32.mrf.mxu3 }
 0x4bf   : > { %v3482_v58 = vadd.f32 %v4116_v20, %v3481_v53 }
 0x4c1   : > { %v5989_v23 = vadd.f32 %v3552_v18, %v3482_v58 }
 0x4d0   : > { %v3484_v25 = vpop.f32.mrf.mxu2  ;;  %v3555_v33 = vpop.f32.mrf.mxu3 }
 0x4d1   : > { %v3485_v17 = vadd.f32 %v4116_v20, %v3484_v25  ;;  %v3592_v25 = vsel %vm357_vm0, %v5989_v23, 0.0 }
 0x4d2   : > { %v3593_v59 = vadd.f32 %v3592_v25, %v3591_v21 }
 0x4d3   : > { %v5993_v53 = vadd.f32 %v3555_v33, %v3485_v17  ;;  %v3609_v17 = vmul.f32 144.0, %v4110_v34 }
 0x4d5   : > { %v3594_v18 = vsel %vm357_vm0, %v5993_v53, 0.0  ;;  %v3610_v19 = vsub.f32 1.0, %v3609_v17  ;;  %v3644_v17 = vld [vmem:[%s6158_s8] sm:$0x1] }
 0x4d6   : > { %v3595_v28 = vadd.f32 %v3594_v18, %v3593_v59 }
 0x4e8   : > { %v3487_v26 = vpop.f32.mrf.mxu2  ;;  %v3558_v55 = vpop.f32.mrf.mxu3 }
 0x4e9   : > { %v3488_v50 = vadd.f32 %v4116_v20, %v3487_v26 }
 0x4eb   : > { %v5997_v15 = vadd.f32 %v3558_v55, %v3488_v50 }
 0x4ed   : > { %v3596_v33 = vsel %vm357_vm0, %v5997_v15, 0.0 }
 0x4ee   : > { %v3597_v55 = vadd.f32 %v3596_v33, %v3595_v28  ;;  %v3618_v28 = vld [vmem:[%s6156_s6] sm:$0x1] }
 0x50d   : > { %v3490_v60 = vpop.f32.mrf.mxu2  ;;  %v3561_v27 = vpop.f32.mrf.mxu3 }
 0x50e   : > { %v3491_v42 = vadd.f32 %v4116_v20, %v3490_v60 }
 0x510   : > { %v6001_v26 = vadd.f32 %v3561_v27, %v3491_v42  ;;  %v3611_v42 = vmul.f32 %v4110_v34, %v3610_v19 }
 0x512   : > { %v3598_v47 = vsel %vm357_vm0, %v6001_v26, 0.0  ;;  %v3612_v25 = vadd.f32 %v4110_v34, %v3611_v42 }
 0x513   : > { %v3599_v0 = vadd.f32 %v3598_v47, %v3597_v55 }
 0x51e   : > { %v3493_v58 = vpop.f32.mrf.mxu2  ;;  %v3564_v16 = vpop.f32.mrf.mxu3 }
 0x51f   : > { %v3494_v32 = vadd.f32 %v4116_v20, %v3493_v58  ;;  %v3614_v20 = vsel %vm3613_vm11, %v4110_v34, %v3612_v25 }
 0x521   : > { %v6007_v60 = vadd.f32 %v3564_v16, %v3494_v32 }
 0x523   : > { %v3600_v50 = vsel %vm357_vm0, %v6007_v60, 0.0 }
 0x524   : > { %v3601_v24 = vadd.f32 %v3600_v50, %v3599_v0 }
 0x526   : > { %v3602_v61 = vrot.slane %v3601_v24, 4 }
 0x528   : > { %v3603_v41 = vadd.f32 %v3602_v61, %v3601_v24 }
 0x52a   : > { %v3604_v27 = vrot.slane %v3603_v41, 2 }
 0x52c   : > { %v3605_v21 = vadd.f32 %v3604_v27, %v3603_v41 }
 0x52e   : > { %v3606_v18 = vrot.slane %v3605_v21, 1 }
 0x530   : > { %v3607_v59 = vadd.f32 %v3606_v18, %v3605_v21 }
 0x532   : > { %v3615_v33 = vmul.f32 %v3614_v20, %v3607_v59 }
 0x534   : > { %4083 = vmatmul.msk.f32.vlgmr.msrb.gmra.mxu1 %vm357_vm0, %v3615_v33 }
 0x5b1   : > { %v3639_v58 = vpop.f32.mrf.mxu1 }
 0x5b2   : > { %v3640_v47 = vadd.f32 %v3639_v58, %v3618_v28 }
 0x5b4   : > { %v3642_v32 = vmax.f32 %v3640_v47, 0.0  ;;  %v3776_v47 = vrot.slane %v4217_v1, 4 }
 0x5b6   : > { %4085 = vmatmul.msk.f32.vlgmr.msrb.gmra.mxu3 %vm3645_vm12, %v3642_v32 }
 0x639   : > { %v3669_v55 = vpop.f32.mrf.mxu3 }
 0x63a   : > { %v3670_v16 = vadd.f32 %v3669_v55, %v3644_v17  ;;  %v3777_v55 = vrot.slane %v4241_v7, 4 }
 0x63c   : > { %v4086_v34 = vmul.f32 -1.442695, %v3670_v16 }
 0x63e   : > { %4111 = vpow2.f32 %v4086_v34 }
 0x644   : > { %v4112_v0 = vpop.eup %4111 }
 0x645   : > { %v3675_v50 = vadd.f32 1.0, %v4112_v0 }
 0x647   : > { %4113 = vrcp.f32 %v3675_v50  ;;  %v3687_v42 = vand.u32 2147483648, %v3675_v50  ;;  %v3685_v27 = vand.u32 2147483647, %v3675_v50  ;;  %vm3681_vm14 = vweird.f32 %v3675_v50 }
 0x649   : > { %v3688_v21 = vor.u32 1.1754944e-38, %v3687_v42  ;;  %vm3686_vm1 = vcmp.eq.f32.partialorder %v3685_v27, 8.507059e+37 }
 0x64d   : > { %v4114_v19 = vpop.eup %4113 }
 0x64e   : > { %v3677_v24 = vmul.f32 %v4114_v19, %v3675_v50  ;;  %vm3682_vm13 = vweird.f32 %v4114_v19 }
 0x64f   : > { %vm3683_vm15 = vmor %vm3681_vm14, %vm3682_vm13 }
 0x650   : > { %v3678_v61 = vsub.f32 1.0, %v3677_v24 }
 0x652   : > { %v3679_v41 = vmul.f32 %v4114_v19, %v3678_v61 }
 0x654   : > { %v3680_v25 = vadd.f32 %v4114_v19, %v3679_v41 }
 0x656   : > { %v3684_v18 = vsel %vm3683_vm15, %v4114_v19, %v3680_v25 }
 0x657   : > { %v3689_v20 = vsel %vm3686_vm1, %v3688_v21, %v3684_v18 }
 0x658   : > { %v6018_v59 = vperm.slane %v3689_v20, 0 }
 0x65a   : > { %v3692_v33 = vmul.f32 %v6018_v59, %v5608_v56  ;;  %v3693_v28 = vmul.f32 %v6018_v59, %v5664_v38  ;;  %v3694_v58 = vmul.f32 %v6018_v59, %v5712_v39  ;;  %v3695_v38 = vmul.f32 %v6018_v59, %v5747_v52 }
 0x65b   : > { %v3696_v24 = vmul.f32 %v6018_v59, %v5795_v22  ;;  %v3779_v52 = vrot.slane %v4268_v14, 4  ;;  %v3698_v22 = vmul.f32 %v6018_v59, %v5855_v37  ;;  %v3699_v18 = vmul.f32 %v6018_v59, %v5961_v29 }
 0x65c   : > { %v3728_v32 = vrot.slane %v3692_v33, 4  ;;  %v3729_v17 = vrot.slane %v3693_v28, 4  ;;  %v3730_v16 = vrot.slane %v3694_v58, 4  ;;  %v3800_v34 = vadd.f32 %v3692_v33, %v4217_v1 }
 0x65d   : > { %v3802_v50 = vadd.f32 %v3693_v28, %v4220_v2  ;;  %v3804_v19 = vadd.f32 %v3777_v55, %v3694_v58  ;;  %v3778_v1 = vrot.slane %v4225_v3, 4  ;;  %v3697_v2 = vmul.f32 %v6018_v59, %v5823_v36 }
 0x65e   : > { %v3801_v0 = vadd.f32 %v3776_v47, %v3728_v32  ;;  %v3803_v56 = vadd.f32 %v3729_v17, %v4241_v7  ;;  %3872 = vst [vmem:[#allocation1] ss:$2 sm:$0xff] %v3800_v34  ;;  %v3805_v39 = vadd.f32 %v3730_v16, %v4256_v10  ;;  %v3731_v61 = vrot.slane %v3695_v38, 4 }
 0x65f   : > { %3876 = vst [vmem:[#allocation1 + $0x10] ss:$2 sm:$0xff] %v3802_v50  ;;  %v3732_v7 = vrot.slane %v3696_v24, 4  ;;  %v3806_v42 = vadd.f32 %v3695_v38, %v4225_v3  ;;  %v3733_v10 = vrot.slane %v3697_v2, 4  ;;  %v3808_v25 = vadd.f32 %v3696_v24, %v4230_v5 }
 0x660   : > { %3874 = vst [vmem:[#allocation1 + $0x1] ss:$2 sm:$0xff] %v3801_v0  ;;  %v3807_v41 = vadd.f32 %v3778_v1, %v3731_v61  ;;  %v3810_v20 = vadd.f32 %v3779_v52, %v3697_v2  ;;  %v3780_v5 = vrot.slane %v4246_v8, 4  ;;  %v3734_v37 = vrot.slane %v3698_v22, 4 }
 0x661   : > { %3880 = vst [vmem:[#allocation1 + $0x20] ss:$2 sm:$0xff] %v3803_v56  ;;  %v3809_v36 = vadd.f32 %v3732_v7, %v4268_v14  ;;  %v3811_v3 = vadd.f32 %v3733_v10, %v4236_v6  ;;  %v3700_v14 = vmul.f32 %v6018_v59, %v5965_v46  ;;  %v3735_v6 = vrot.slane %v3699_v18, 4 }
 0x662   : > { %3882 = vst [vmem:[#allocation1 + $0x21] ss:$2 sm:$0xff] %v3804_v19  ;;  %v3781_v29 = vrot.slane %v4251_v9, 4  ;;  %v3812_v58 = vadd.f32 %v3698_v22, %v4246_v8  ;;  %v3813_v32 = vadd.f32 %v3780_v5, %v3734_v37  ;;  %v3701_v46 = vmul.f32 %v6018_v59, %v5969_v11 }
 0x663   : > { %3884 = vst [vmem:[#allocation1 + $0x30] ss:$2 sm:$0xff] %v3805_v39  ;;  %v3736_v47 = vrot.slane %v3700_v14, 4  ;;  %v3814_v55 = vadd.f32 %v3699_v18, %v4405_v30  ;;  %v3815_v34 = vadd.f32 %v3735_v6, %v4251_v9  ;;  %v3702_v8 = vmul.f32 %v6018_v59, %v5976_v48 }
 0x664   : > { %v3816_v0 = vadd.f32 %v3781_v29, %v3700_v14  ;;  %v3782_v30 = vrot.slane %v4413_v31, 4  ;;  %v3703_v11 = vmul.f32 %v6018_v59, %v5981_v13  ;;  %v3737_v19 = vrot.slane %v3701_v46, 4 }
 0x665   : > { %v3817_v56 = vadd.f32 %v3736_v47, %v4261_v12  ;;  %v3738_v9 = vrot.slane %v3702_v8, 4  ;;  %v3783_v48 = vrot.slane %v4662_v4, 4  ;;  %v3818_v39 = vadd.f32 %v3701_v46, %v4413_v31 }
 0x666   : > { %v3878_v21 = vld.sshfl [vmem:[#allocation1 + $0x10] sm:$0xff pattern:$0x75316420]  ;;  %v3739_v12 = vrot.slane %v3703_v11, 4  ;;  %v3819_v24 = vadd.f32 %v3782_v30, %v3737_v19  ;;  %v3704_v13 = vmul.f32 %v6018_v59, %v5985_v49  ;;  %v3820_v2 = vadd.f32 %v3702_v8, %v4638_v40 }
 0x667   : > { %v3877_v27 = vld.sshfl [vmem:[#allocation1] sm:$0xff pattern:$0x75316420]  ;;  %3889 = vst [vmem:[#allocation1 + $0x10] ss:$2 sm:$0xff] %v3808_v25  ;;  %v3821_v7 = vadd.f32 %v3738_v9, %v4662_v4  ;;  %v3705_v31 = vmul.f32 %v6018_v59, %v5989_v23  ;;  %v3822_v52 = vadd.f32 %v3783_v48, %v3703_v11  ;;  %v3784_v40 = vrot.slane %v4707_v57, 4 }
 0x668   : > { %3887 = vst [vmem:[#allocation1] ss:$2 sm:$0xff] %v3806_v42  ;;  %v3823_v10 = vadd.f32 %v3739_v12, %v4704_v63  ;;  %v3706_v49 = vmul.f32 %v6018_v59, %v5993_v53  ;;  %v3785_v23 = vrot.slane %v4772_v62, 4  ;;  %v3824_v22 = vadd.f32 %v3704_v13, %v4707_v57 }
 0x669   : > { %3888 = vst [vmem:[#allocation1 + $0x1] ss:$2 sm:$0xff] %v3807_v41  ;;  %v3885_v33 = vld.sshfl [vmem:[#allocation1 + $0x20] sm:$0xff pattern:$0x75316420]  ;;  %v3741_v4 = vrot.slane %v3705_v31, 4  ;;  %v3707_v53 = vmul.f32 %v6018_v59, %v5997_v15  ;;  %v3708_v57 = vmul.f32 %v6018_v59, %v6001_v26  ;;  %v3709_v15 = vmul.f32 %v6018_v59, %v6007_v60 }
 0x66a   : > { %v3886_v28 = vld.sshfl [vmem:[#allocation1 + $0x30] sm:$0xff pattern:$0x75316420]  ;;  %3892 = vst [vmem:[#allocation1 + $0x20] ss:$2 sm:$0xff] %v3809_v36  ;;  %v3742_v63 = vrot.slane %v3706_v49, 4  ;;  %v3826_v36 = vadd.f32 %v3705_v31, %v4756_v43 }
 0x66b   : > { %3893 = vst [vmem:[#allocation1 + $0x21] ss:$2 sm:$0xff] %v3810_v20  ;;  %v3827_v20 = vadd.f32 %v3741_v4, %v4772_v62  ;;  %v3786_v43 = vrot.slane %v4836_v54, 4  ;;  %v3743_v14 = vrot.slane %v3707_v53, 4  ;;  %v3744_v62 = vrot.slane %v3708_v57, 4 }
 0x66c   : > { %3894 = vst [vmem:[#allocation1 + $0x30] ss:$2 sm:$0xff] %v3811_v3  ;;  %v3787_v26 = vrot.slane %v4906_v45, 4  ;;  %v3830_v37 = vadd.f32 %v3707_v53, %v4836_v54  ;;  %v3832_v60 = vadd.f32 %v3708_v57, %v4867_v44 }
 0x66d   : > { %3961 = vst.msk [vmem:[%s6053_s22] sm:$0xff] %vm357_vm0, %v3877_v27  ;;  %v3740_v27 = vrot.slane %v3704_v13, 4  ;;  %v3831_v6 = vadd.f32 %v3786_v43, %v3743_v14 }
 0x66e   : > { %3962 = vst.msk [vmem:[%s6053_s22 + $0x8] sm:$0xf] %vm391_vm2, %v3878_v21  ;;  %v3891_v16 = vld.sshfl [vmem:[#allocation1 + $0x10] sm:$0xff pattern:$0x75316420]  ;;  %v3834_v54 = vadd.f32 %v3787_v26, %v3709_v15 }
 0x66f   : > { %3963 = vst.msk [vmem:[%s6053_s22 + $0x10] sm:$0xff] %vm357_vm0, %v3885_v33  ;;  %v3825_v25 = vadd.f32 %v3784_v40, %v3740_v27  ;;  %v3828_v33 = vadd.f32 %v3785_v23, %v3706_v49 }
 0x670   : > { %v3890_v17 = vld.sshfl [vmem:[#allocation1] sm:$0xff pattern:$0x75316420]  ;;  %3899 = vst [vmem:[#allocation1 + $0x10] ss:$2 sm:$0xff] %v3814_v55 }
 0x671   : > { %3897 = vst [vmem:[#allocation1] ss:$2 sm:$0xff] %v3812_v58  ;;  %v3833_v58 = vadd.f32 %v3744_v62, %v4906_v45 }
 0x672   : > { %3898 = vst [vmem:[#allocation1 + $0x1] ss:$2 sm:$0xff] %v3813_v32  ;;  %v3895_v50 = vld.sshfl [vmem:[#allocation1 + $0x20] sm:$0xff pattern:$0x75316420] }
 0x673   : > { %v3896_v38 = vld.sshfl [vmem:[#allocation1 + $0x30] sm:$0xff pattern:$0x75316420]  ;;  %3902 = vst [vmem:[#allocation1 + $0x20] ss:$2 sm:$0xff] %v3815_v34 }
 0x674   : > { %3903 = vst [vmem:[#allocation1 + $0x21] ss:$2 sm:$0xff] %v3816_v0 }
 0x675   : > { %3904 = vst [vmem:[#allocation1 + $0x30] ss:$2 sm:$0xff] %v3817_v56 }
 0x676   : > { %3964 = vst.msk [vmem:[%s6053_s22 + $0x18] sm:$0xf] %vm391_vm2, %v3886_v28  ;;  %v3829_v28 = vadd.f32 %v3742_v63, %v4822_v35  ;;  %v3745_v35 = vrot.slane %v3709_v15, 4 }
 0x677   : > { %3965 = vst.msk [vmem:[%s6053_s22 + $0x20] sm:$0xff] %vm357_vm0, %v3890_v17  ;;  %v3901_v61 = vld.sshfl [vmem:[#allocation1 + $0x10] sm:$0xff pattern:$0x75316420] }
 0x678   : > { %3966 = vst.msk [vmem:[%s6053_s22 + $0x28] sm:$0xf] %vm391_vm2, %v3891_v16  ;;  %v3835_v32 = vadd.f32 %v3745_v35, %v4959_v51 }
 0x679   : > { %v3900_v1 = vld.sshfl [vmem:[#allocation1] sm:$0xff pattern:$0x75316420]  ;;  %3909 = vst [vmem:[#allocation1 + $0x10] ss:$2 sm:$0xff] %v3820_v2 }
 0x67a   : > { %3907 = vst [vmem:[#allocation1] ss:$2 sm:$0xff] %v3818_v39 }
 0x67b   : > { %3908 = vst [vmem:[#allocation1 + $0x1] ss:$2 sm:$0xff] %v3819_v24  ;;  %v3905_v42 = vld.sshfl [vmem:[#allocation1 + $0x20] sm:$0xff pattern:$0x75316420] }
 0x67c   : > { %v3906_v41 = vld.sshfl [vmem:[#allocation1 + $0x30] sm:$0xff pattern:$0x75316420]  ;;  %3912 = vst [vmem:[#allocation1 + $0x20] ss:$2 sm:$0xff] %v3821_v7 }
 0x67d   : > { %3913 = vst [vmem:[#allocation1 + $0x21] ss:$2 sm:$0xff] %v3822_v52 }
 0x67e   : > { %3914 = vst [vmem:[#allocation1 + $0x30] ss:$2 sm:$0xff] %v3823_v10 }
 0x67f   : > { %3967 = vst.msk [vmem:[%s6053_s22 + $0x30] sm:$0xff] %vm357_vm0, %v3895_v50 }
 0x680   : > { %3968 = vst.msk [vmem:[%s6053_s22 + $0x38] sm:$0xf] %vm391_vm2, %v3896_v38  ;;  %v3911_v18 = vld.sshfl [vmem:[#allocation1 + $0x10] sm:$0xff pattern:$0x75316420] }
 0x681   : > { %3969 = vst.msk [vmem:[%s6053_s22 + $0x40] sm:$0xff] %vm357_vm0, %v3900_v1 }
 0x682   : > { %v3910_v21 = vld.sshfl [vmem:[#allocation1] sm:$0xff pattern:$0x75316420]  ;;  %3919 = vst [vmem:[#allocation1 + $0x10] ss:$2 sm:$0xff] %v3826_v36 }
 0x683   : > { %3917 = vst [vmem:[#allocation1] ss:$2 sm:$0xff] %v3824_v22 }
 0x684   : > { %3918 = vst [vmem:[#allocation1 + $0x1] ss:$2 sm:$0xff] %v3825_v25  ;;  %v3915_v3 = vld.sshfl [vmem:[#allocation1 + $0x20] sm:$0xff pattern:$0x75316420] }
 0x685   : > { %v3916_v5 = vld.sshfl [vmem:[#allocation1 + $0x30] sm:$0xff pattern:$0x75316420]  ;;  %3922 = vst [vmem:[#allocation1 + $0x20] ss:$2 sm:$0xff] %v3827_v20 }
 0x686   : > { %3923 = vst [vmem:[#allocation1 + $0x21] ss:$2 sm:$0xff] %v3828_v33 }
 0x687   : > { %3924 = vst [vmem:[#allocation1 + $0x30] ss:$2 sm:$0xff] %v3829_v28 }
 0x688   : > { %3970 = vst.msk [vmem:[%s6053_s22 + $0x48] sm:$0xf] %vm391_vm2, %v3901_v61 }
 0x689   : > { %3971 = vst.msk [vmem:[%s6053_s22 + $0x50] sm:$0xff] %vm357_vm0, %v3905_v42  ;;  %v3921_v59 = vld.sshfl [vmem:[#allocation1 + $0x10] sm:$0xff pattern:$0x75316420] }
 0x68a   : > { %3972 = vst.msk [vmem:[%s6053_s22 + $0x58] sm:$0xf] %vm391_vm2, %v3906_v41 }
 0x68b   : > { %v3920_v29 = vld.sshfl [vmem:[#allocation1] sm:$0xff pattern:$0x75316420]  ;;  %3929 = vst [vmem:[#allocation1 + $0x10] ss:$2 sm:$0xff] %v3832_v60 }
 0x68c   : > { %3927 = vst [vmem:[#allocation1] ss:$2 sm:$0xff] %v3830_v37 }
 0x68d   : > { %3928 = vst [vmem:[#allocation1 + $0x1] ss:$2 sm:$0xff] %v3831_v6  ;;  %v3925_v47 = vld.sshfl [vmem:[#allocation1 + $0x20] sm:$0xff pattern:$0x75316420] }
 0x68e   : > { %v3926_v17 = vld.sshfl [vmem:[#allocation1 + $0x30] sm:$0xff pattern:$0x75316420]  ;;  %3932 = vst [vmem:[#allocation1 + $0x20] ss:$2 sm:$0xff] %v3833_v58 }
 0x68f   : > { %3933 = vst [vmem:[#allocation1 + $0x21] ss:$2 sm:$0xff] %v3834_v54 }
 0x690   : > { %3934 = vst [vmem:[#allocation1 + $0x30] ss:$2 sm:$0xff] %v3835_v32 }
 0x691   : > { %3973 = vst.msk [vmem:[%s6053_s22 + $0x60] sm:$0xff] %vm357_vm0, %v3910_v21 }
 0x692   : > { %3974 = vst.msk [vmem:[%s6053_s22 + $0x68] sm:$0xf] %vm391_vm2, %v3911_v18  ;;  %v3931_v45 = vld.sshfl [vmem:[#allocation1 + $0x10] sm:$0xff pattern:$0x75316420] }
 0x693   : > { %3975 = vst.msk [vmem:[%s6053_s22 + $0x70] sm:$0xff] %vm357_vm0, %v3915_v3 }
 0x694   : > { %3976 = vst.msk [vmem:[%s6053_s22 + $0x78] sm:$0xf] %vm391_vm2, %v3916_v5  ;;  %v3930_v44 = vld.sshfl [vmem:[#allocation1] sm:$0xff pattern:$0x75316420] }
 0x695   : > { %3977 = vst.msk [vmem:[%s6053_s22 + $0x80] sm:$0xff] %vm357_vm0, %v3920_v29 }
 0x696   : > { %3978 = vst.msk [vmem:[%s6053_s22 + $0x88] sm:$0xf] %vm391_vm2, %v3921_v59  ;;  %v3935_v51 = vld.sshfl [vmem:[#allocation1 + $0x20] sm:$0xff pattern:$0x75316420] }
 0x697   : > { %3979 = vst.msk [vmem:[%s6053_s22 + $0x90] sm:$0xff] %vm357_vm0, %v3925_v47  ;;  %v3936_v46 = vld.sshfl [vmem:[#allocation1 + $0x30] sm:$0xff pattern:$0x75316420] }
 0x698   : > { %3980 = vst.msk [vmem:[%s6053_s22 + $0x98] sm:$0xf] %vm391_vm2, %v3926_v17 }
 0x699   : > { %3981 = vst.msk [vmem:[%s6053_s22 + $0xa0] sm:$0xff] %vm357_vm0, %v3930_v44 }
 0x69a   : > { %3982 = vst.msk [vmem:[%s6053_s22 + $0xa8] sm:$0xf] %vm391_vm2, %v3931_v45 }
 0x69b   : > { %3983 = vst.msk [vmem:[%s6053_s22 + $0xb0] sm:$0xff] %vm357_vm0, %v3935_v51 }
 0x69c   : > { %3984 = vst.msk [vmem:[%s6053_s22 + $0xb8] sm:$0xf] %vm391_vm2, %v3936_v46 }
 0x69d PF: > { %s19_s30 = sadd.s32 1, %s4123_s30  }
 0x69e   : > { %p16_p4 = scmp.ge.s32.totalorder %s19_s30, 4  }
 0x6a0   :  { %18 = sbr.rel (!%p16_p4) target bundleno = 1 (0x1), region = 116 }

</bundles_post_ra>
